<compile_context>
chip_gen: v7x
topology: tpu7x:2x2x1
jax: 0.10.0
libtpu: 0.0.40
codegen_flags: <defaults>
</compile_context>

<pallas_src>
import math
import jax
import jax.numpy as jnp
from jax.experimental import pallas as pl
from jax.experimental.pallas import tpu as pltpu

# ----------------------------- module config -----------------------------
HIDDEN = 32          # hidden_channels
N_LAYERS = 2
BIDIRECTIONAL = True
DROPOUT = 0.0        # nn.Dropout in eval mode == identity
REDUCTION_FACTOR = 2 # unused when data_len is None
B, T = 2, 8          # batch, sequence length


# --------------------------- fused Pallas kernel --------------------------
def build_fused_kernel(T_, B_, H, n_layers, n_dirs):
    """Build the fully fused forward kernel.

    Ref order (pallas_call convention: inputs, outputs, scratch):
      x_ref                          (T*B, Cin)      time-major flattened input
      for each layer, direction:     wih_T (Cin,4H), whh_T (H,4H), b (1,4H)
      wf_T (n_dirs*H, H), bf (1,H), gamma (1,H), beta (1,H)
      o_ref                          (T*B, H)
      act[l]                         (T*B, n_dirs*H) VMEM scratch, one per layer
    """
    n_w = 3 * n_layers * n_dirs
    n_in = 1 + n_w + 4

    def kernel(*refs):
        x_ref = refs[0]
        lw = refs[1:1 + n_w]
        wf_ref, bf_ref, gamma_ref, beta_ref = refs[n_in - 4:n_in]
        o_ref = refs[n_in]
        acts = refs[n_in + 1:]

        def run_direction(pre_gates, whh, out_scr, col, reverse):
            # pre_gates: (T*B, 4H) value = X @ W_ih^T + (b_ih + b_hh)  (hoisted)
            # whh      : (H, 4H)  value = W_hh^T
            h = jnp.zeros((B_, H), jnp.float32)
            c = jnp.zeros((B_, H), jnp.float32)
            order = range(T_ - 1, -1, -1) if reverse else range(T_)
            for t in order:                      # static, fully unrolled
                g = pre_gates[t * B_:(t + 1) * B_, :] + jnp.dot(
                    h, whh, preferred_element_type=jnp.float32)
                # full-vreg transcendentals (EUP), then static lane slices
                sg = jax.nn.sigmoid(g)
                th = jnp.tanh(g)
                i_g = sg[:, 0 * H:1 * H]
                f_g = sg[:, 1 * H:2 * H]
                g_g = th[:, 2 * H:3 * H]
                o_g = sg[:, 3 * H:4 * H]
                c = f_g * c + i_g * g_g
                h = o_g * jnp.tanh(c)
                out_scr[t * B_:(t + 1) * B_, col:col + H] = h

        cur = x_ref[...]                                     # (T*B, Cin)
        for l in range(n_layers):
            for d in range(n_dirs):
                k = 3 * (l * n_dirs + d)
                wih_ref, whh_ref, b_ref = lw[k], lw[k + 1], lw[k + 2]
                # hoisted input projection: one matmul for all timesteps
                pg = jnp.dot(cur, wih_ref[...],
                             preferred_element_type=jnp.float32) + b_ref[...]
                run_direction(pg, whh_ref[...], acts[l], d * H,
                              reverse=(d == 1))
            cur = acts[l][...]                               # (T*B, n_dirs*H)

        # fc -> LayerNorm -> ReLU head (fused, single lane-dense store)
        y = jnp.dot(cur, wf_ref[...],
                    preferred_element_type=jnp.float32) + bf_ref[...]
        mean = jnp.mean(y, axis=-1, keepdims=True)
        var = jnp.mean(jnp.square(y - mean), axis=-1, keepdims=True)
        yn = (y - mean) * jax.lax.rsqrt(var + 1e-5)
        yn = yn * gamma_ref[...] + beta_ref[...]
        o_ref[...] = jnp.maximum(yn, 0.0)

    return kernel


# ----------------------------- wrapper -------------------------------------
def lstm_encoder_forward(x_bct, params):
    """x_bct: (B, C, T) float32 -> (B, T, H) float32 (data_len=None path)."""
    B_, C, T_ = x_bct.shape
    H = params["wf_T"].shape[1]
    dirs = ["fwd", "bwd"] if BIDIRECTIONAL else ["fwd"]
    n_dirs = len(dirs)
    n_layers = len(params["lstm"])

    # dropout(p) in eval mode is identity; time-major flatten to (T*B, C)
    x_flat = jnp.transpose(x_bct, (2, 0, 1)).reshape(T_ * B_, C)

    flat_w = []
    for layer in params["lstm"]:
        for d in dirs:
            flat_w += [layer[d]["wih_T"], layer[d]["whh_T"], layer[d]["b"]]

    kernel = build_fused_kernel(T_, B_, H, n_layers, n_dirs)
    vmem = pl.BlockSpec(memory_space=pltpu.MemorySpace.VMEM)
    n_in = 1 + len(flat_w) + 4

    out_flat = pl.pallas_call(
        kernel,
        out_shape=jax.ShapeDtypeStruct((T_ * B_, H), jnp.float32),
        in_specs=[vmem] * n_in,
        out_specs=vmem,
        scratch_shapes=[pltpu.VMEM((T_ * B_, n_dirs * H), jnp.float32)
                        for _ in range(n_layers)],
    )(x_flat, *flat_w, params["wf_T"], params["bf"],
      params["gamma"], params["beta"])

    return out_flat.reshape(T_, B_, H).transpose(1, 0, 2)     # (B, T, H)


# --------------------------- parameter init -------------------------------
def init_params(key, H, n_layers, bidirectional):
    bound = 1.0 / math.sqrt(H)
    dirs = ["fwd", "bwd"] if bidirectional else ["fwd"]
    D = len(dirs)
    params = {"lstm": []}
    for l in range(n_layers):
        cin = H if l == 0 else H * D
        layer = {}
        for d in dirs:
            key, k1, k2, k3, k4 = jax.random.split(key, 5)
            wih = jax.random.uniform(k1, (4 * H, cin), jnp.float32, -bound, bound)
            whh = jax.random.uniform(k2, (4 * H, H), jnp.float32, -bound, bound)
            bih = jax.random.uniform(k3, (4 * H,), jnp.float32, -bound, bound)
            bhh = jax.random.uniform(k4, (4 * H,), jnp.float32, -bound, bound)
            layer[d] = {"wih_T": wih.T, "whh_T": whh.T,
                        "b": (bih + bhh)[None, :]}
        params["lstm"].append(layer)
    key, kf1, kf2 = jax.random.split(key, 3)
    fb = 1.0 / math.sqrt(H * D)
    wf = jax.random.uniform(kf1, (H, H * D), jnp.float32, -fb, fb)
    bf = jax.random.uniform(kf2, (H,), jnp.float32, -fb, fb)
    params["wf_T"] = wf.T                 # (H*D, H)
    params["bf"] = bf[None, :]            # (1, H)
    params["gamma"] = jnp.ones((1, H), jnp.float32)   # LayerNorm default init
    params["beta"] = jnp.zeros((1, H), jnp.float32)
    return params


# ----------------------- pure-JAX reference (check) ------------------------
def _scan_lstm(x_seq, wih_T, whh_T, b, reverse):
    H = whh_T.shape[0]
    Bn = x_seq.shape[1]

    def step(carry, x_t):
        h, c = carry
        g = x_t @ wih_T + h @ whh_T + b
        i, f, gg, o = jnp.split(g, 4, axis=-1)
        c = jax.nn.sigmoid(f) * c + jax.nn.sigmoid(i) * jnp.tanh(gg)
        h = jax.nn.sigmoid(o) * jnp.tanh(c)
        return (h, c), h

    init = (jnp.zeros((Bn, H), jnp.float32), jnp.zeros((Bn, H), jnp.float32))
    _, hs = jax.lax.scan(step, init, x_seq, reverse=reverse)
    return hs


def reference_forward(x_bct, params):
    x = jnp.transpose(x_bct, (2, 0, 1))
    inp = x
    dirs = [("fwd", False)] + ([("bwd", True)] if BIDIRECTIONAL else [])
    for layer in params["lstm"]:
        outs = [_scan_lstm(inp, layer[n]["wih_T"], layer[n]["whh_T"],
                           layer[n]["b"], rev) for n, rev in dirs]
        inp = jnp.concatenate(outs, axis=-1) if len(outs) > 1 else outs[0]
    y = inp @ params["wf_T"] + params["bf"]
    mean = y.mean(-1, keepdims=True)
    var = ((y - mean) ** 2).mean(-1, keepdims=True)
    yn = (y - mean) / jnp.sqrt(var + 1e-5)
    yn = yn * params["gamma"] + params["beta"]
    return jnp.maximum(yn, 0.0).transpose(1, 0, 2)


# ------------------------------- main --------------------------------------
if __name__ == "__main__":
    key = jax.random.PRNGKey(0)
    kx, kp = jax.random.split(key)
    x = jax.random.normal(kx, (B, HIDDEN, T), jnp.float32)   # (B, C, T)
    params = init_params(kp, HIDDEN, N_LAYERS, BIDIRECTIONAL)

    out = lstm_encoder_forward(x, params)
    out = jax.block_until_ready(out)

    assert out.shape == (B, T, HIDDEN), out.shape
    ref = reference_forward(x, params)
    assert float(jnp.max(jnp.abs(out - ref))) < 1e-3, "mismatch vs reference"

    print("KERNEL_OK")
</pallas_src>

<mosaic_0001>
module attributes {stable_mosaic.version = 11 : i64} {
  func.func @kernel(%arg0: memref<16x32xf32, #tpu.memory_space<vmem>>, %arg1: memref<32x128xf32, #tpu.memory_space<vmem>>, %arg2: memref<32x128xf32, #tpu.memory_space<vmem>>, %arg3: memref<1x128xf32, #tpu.memory_space<vmem>>, %arg4: memref<32x128xf32, #tpu.memory_space<vmem>>, %arg5: memref<32x128xf32, #tpu.memory_space<vmem>>, %arg6: memref<1x128xf32, #tpu.memory_space<vmem>>, %arg7: memref<64x128xf32, #tpu.memory_space<vmem>>, %arg8: memref<32x128xf32, #tpu.memory_space<vmem>>, %arg9: memref<1x128xf32, #tpu.memory_space<vmem>>, %arg10: memref<64x128xf32, #tpu.memory_space<vmem>>, %arg11: memref<32x128xf32, #tpu.memory_space<vmem>>, %arg12: memref<1x128xf32, #tpu.memory_space<vmem>>, %arg13: memref<64x32xf32, #tpu.memory_space<vmem>>, %arg14: memref<1x32xf32, #tpu.memory_space<vmem>>, %arg15: memref<1x32xf32, #tpu.memory_space<vmem>>, %arg16: memref<1x32xf32, #tpu.memory_space<vmem>>, %arg17: memref<16x32xf32, #tpu.memory_space<vmem>>, %arg18: memref<16x64xf32, #tpu.memory_space<vmem>>, %arg19: memref<16x64xf32, #tpu.memory_space<vmem>>) attributes {dimension_semantics = [], scalar_prefetch = 0 : i64, scratch_operands = 2 : i64, tpu.core_type = #tpu.core_type<tc>} {
    %c0 = arith.constant 0 : index
    %c0_0 = arith.constant 0 : index
    %0 = vector.load %arg0[%c0, %c0_0] : memref<16x32xf32, #tpu.memory_space<vmem>>, vector<16x32xf32>
    %c0_1 = arith.constant 0 : index
    %c0_2 = arith.constant 0 : index
    %1 = vector.load %arg1[%c0_1, %c0_2] : memref<32x128xf32, #tpu.memory_space<vmem>>, vector<32x128xf32>
    %cst = arith.constant dense<0.000000e+00> : vector<16x128xf32>
    %2 = tpu.matmul %0, %1, %cst {dimension_numbers = #tpu.dot_dimension_numbers<[1], [0], [0], [1], [0, 0, 1, 1], [], []>} : vector<16x32xf32>, vector<32x128xf32>, vector<16x128xf32> -> vector<16x128xf32>
    %c0_3 = arith.constant 0 : index
    %c0_4 = arith.constant 0 : index
    %3 = vector.load %arg3[%c0_3, %c0_4] : memref<1x128xf32, #tpu.memory_space<vmem>>, vector<1x128xf32>
    %4 = vector.broadcast %3 : vector<1x128xf32> to vector<16x128xf32>
    %5 = arith.addf %2, %4 : vector<16x128xf32>
    %c0_5 = arith.constant 0 : index
    %c0_6 = arith.constant 0 : index
    %6 = vector.load %arg2[%c0_5, %c0_6] : memref<32x128xf32, #tpu.memory_space<vmem>>, vector<32x128xf32>
    %cst_7 = arith.constant 0.000000e+00 : f32
    %7 = vector.broadcast %cst_7 : f32 to vector<2x32xf32>
    %cst_8 = arith.constant 0.000000e+00 : f32
    %8 = vector.broadcast %cst_8 : f32 to vector<2x32xf32>
    %9 = vector.extract_strided_slice %5 {offsets = [0, 0], sizes = [2, 128], strides = [1, 1]} : vector<16x128xf32> to vector<2x128xf32>
    %cst_9 = arith.constant dense<0.000000e+00> : vector<2x128xf32>
    %10 = tpu.matmul %7, %6, %cst_9 {dimension_numbers = #tpu.dot_dimension_numbers<[1], [0], [0], [1], [0, 0, 1, 1], [], []>} : vector<2x32xf32>, vector<32x128xf32>, vector<2x128xf32> -> vector<2x128xf32>
    %11 = arith.addf %9, %10 : vector<2x128xf32>
    %12 = arith.negf %11 : vector<2x128xf32>
    %13 = math.exp %12 : vector<2x128xf32>
    %cst_10 = arith.constant 1.000000e+00 : f32
    %14 = vector.broadcast %cst_10 : f32 to vector<2x128xf32>
    %15 = arith.addf %14, %13 : vector<2x128xf32>
    %16 = arith.divf %14, %15 : vector<2x128xf32>
    %17 = math.tanh %11 : vector<2x128xf32>
    %18 = vector.extract_strided_slice %16 {offsets = [0, 0], sizes = [2, 32], strides = [1, 1]} : vector<2x128xf32> to vector<2x32xf32>
    %19 = vector.extract_strided_slice %16 {offsets = [0, 32], sizes = [2, 32], strides = [1, 1]} : vector<2x128xf32> to vector<2x32xf32>
    %20 = vector.extract_strided_slice %17 {offsets = [0, 64], sizes = [2, 32], strides = [1, 1]} : vector<2x128xf32> to vector<2x32xf32>
    %21 = vector.extract_strided_slice %16 {offsets = [0, 96], sizes = [2, 32], strides = [1, 1]} : vector<2x128xf32> to vector<2x32xf32>
    %22 = arith.mulf %19, %8 : vector<2x32xf32>
    %23 = arith.mulf %18, %20 : vector<2x32xf32>
    %24 = arith.addf %22, %23 : vector<2x32xf32>
    %25 = math.tanh %24 : vector<2x32xf32>
    %26 = arith.mulf %21, %25 : vector<2x32xf32>
    %c0_11 = arith.constant 0 : index
    %c0_12 = arith.constant 0 : index
    %27 = vector.load %arg18[%c0_11, %c0_12] : memref<16x64xf32, #tpu.memory_space<vmem>>, vector<2x32xf32>
    tpu.vector_store %arg18[%c0_11, %c0_12], %26 {strides = array<i32>} : memref<16x64xf32, #tpu.memory_space<vmem>>, vector<2x32xf32>,
    %28 = vector.extract_strided_slice %5 {offsets = [2, 0], sizes = [2, 128], strides = [1, 1]} : vector<16x128xf32> to vector<2x128xf32>
    %cst_13 = arith.constant dense<0.000000e+00> : vector<2x128xf32>
    %29 = tpu.matmul %26, %6, %cst_13 {dimension_numbers = #tpu.dot_dimension_numbers<[1], [0], [0], [1], [0, 0, 1, 1], [], []>} : vector<2x32xf32>, vector<32x128xf32>, vector<2x128xf32> -> vector<2x128xf32>
    %30 = arith.addf %28, %29 : vector<2x128xf32>
    %31 = arith.negf %30 : vector<2x128xf32>
    %32 = math.exp %31 : vector<2x128xf32>
    %cst_14 = arith.constant 1.000000e+00 : f32
    %33 = vector.broadcast %cst_14 : f32 to vector<2x128xf32>
    %34 = arith.addf %33, %32 : vector<2x128xf32>
    %35 = arith.divf %33, %34 : vector<2x128xf32>
    %36 = math.tanh %30 : vector<2x128xf32>
    %37 = vector.extract_strided_slice %35 {offsets = [0, 0], sizes = [2, 32], strides = [1, 1]} : vector<2x128xf32> to vector<2x32xf32>
    %38 = vector.extract_strided_slice %35 {offsets = [0, 32], sizes = [2, 32], strides = [1, 1]} : vector<2x128xf32> to vector<2x32xf32>
    %39 = vector.extract_strided_slice %36 {offsets = [0, 64], sizes = [2, 32], strides = [1, 1]} : vector<2x128xf32> to vector<2x32xf32>
    %40 = vector.extract_strided_slice %35 {offsets = [0, 96], sizes = [2, 32], strides = [1, 1]} : vector<2x128xf32> to vector<2x32xf32>
    %41 = arith.mulf %38, %24 : vector<2x32xf32>
    %42 = arith.mulf %37, %39 : vector<2x32xf32>
    %43 = arith.addf %41, %42 : vector<2x32xf32>
    %44 = math.tanh %43 : vector<2x32xf32>
    %45 = arith.mulf %40, %44 : vector<2x32xf32>
    %c2 = arith.constant 2 : index
    %c0_15 = arith.constant 0 : index
    %46 = vector.load %arg18[%c2, %c0_15] : memref<16x64xf32, #tpu.memory_space<vmem>>, vector<2x32xf32>
    tpu.vector_store %arg18[%c2, %c0_15], %45 {strides = array<i32>} : memref<16x64xf32, #tpu.memory_space<vmem>>, vector<2x32xf32>,
    %47 = vector.extract_strided_slice %5 {offsets = [4, 0], sizes = [2, 128], strides = [1, 1]} : vector<16x128xf32> to vector<2x128xf32>
    %cst_16 = arith.constant dense<0.000000e+00> : vector<2x128xf32>
    %48 = tpu.matmul %45, %6, %cst_16 {dimension_numbers = #tpu.dot_dimension_numbers<[1], [0], [0], [1], [0, 0, 1, 1], [], []>} : vector<2x32xf32>, vector<32x128xf32>, vector<2x128xf32> -> vector<2x128xf32>
    %49 = arith.addf %47, %48 : vector<2x128xf32>
    %50 = arith.negf %49 : vector<2x128xf32>
    %51 = math.exp %50 : vector<2x128xf32>
    %cst_17 = arith.constant 1.000000e+00 : f32
    %52 = vector.broadcast %cst_17 : f32 to vector<2x128xf32>
    %53 = arith.addf %52, %51 : vector<2x128xf32>
    %54 = arith.divf %52, %53 : vector<2x128xf32>
    %55 = math.tanh %49 : vector<2x128xf32>
    %56 = vector.extract_strided_slice %54 {offsets = [0, 0], sizes = [2, 32], strides = [1, 1]} : vector<2x128xf32> to vector<2x32xf32>
    %57 = vector.extract_strided_slice %54 {offsets = [0, 32], sizes = [2, 32], strides = [1, 1]} : vector<2x128xf32> to vector<2x32xf32>
    %58 = vector.extract_strided_slice %55 {offsets = [0, 64], sizes = [2, 32], strides = [1, 1]} : vector<2x128xf32> to vector<2x32xf32>
    %59 = vector.extract_strided_slice %54 {offsets = [0, 96], sizes = [2, 32], strides = [1, 1]} : vector<2x128xf32> to vector<2x32xf32>
    %60 = arith.mulf %57, %43 : vector<2x32xf32>
    %61 = arith.mulf %56, %58 : vector<2x32xf32>
    %62 = arith.addf %60, %61 : vector<2x32xf32>
    %63 = math.tanh %62 : vector<2x32xf32>
    %64 = arith.mulf %59, %63 : vector<2x32xf32>
    %c4 = arith.constant 4 : index
    %c0_18 = arith.constant 0 : index
    %65 = vector.load %arg18[%c4, %c0_18] : memref<16x64xf32, #tpu.memory_space<vmem>>, vector<2x32xf32>
    tpu.vector_store %arg18[%c4, %c0_18], %64 {strides = array<i32>} : memref<16x64xf32, #tpu.memory_space<vmem>>, vector<2x32xf32>,
    %66 = vector.extract_strided_slice %5 {offsets = [6, 0], sizes = [2, 128], strides = [1, 1]} : vector<16x128xf32> to vector<2x128xf32>
    %cst_19 = arith.constant dense<0.000000e+00> : vector<2x128xf32>
    %67 = tpu.matmul %64, %6, %cst_19 {dimension_numbers = #tpu.dot_dimension_numbers<[1], [0], [0], [1], [0, 0, 1, 1], [], []>} : vector<2x32xf32>, vector<32x128xf32>, vector<2x128xf32> -> vector<2x128xf32>
    %68 = arith.addf %66, %67 : vector<2x128xf32>
    %69 = arith.negf %68 : vector<2x128xf32>
    %70 = math.exp %69 : vector<2x128xf32>
    %cst_20 = arith.constant 1.000000e+00 : f32
    %71 = vector.broadcast %cst_20 : f32 to vector<2x128xf32>
    %72 = arith.addf %71, %70 : vector<2x128xf32>
    %73 = arith.divf %71, %72 : vector<2x128xf32>
    %74 = math.tanh %68 : vector<2x128xf32>
    %75 = vector.extract_strided_slice %73 {offsets = [0, 0], sizes = [2, 32], strides = [1, 1]} : vector<2x128xf32> to vector<2x32xf32>
    %76 = vector.extract_strided_slice %73 {offsets = [0, 32], sizes = [2, 32], strides = [1, 1]} : vector<2x128xf32> to vector<2x32xf32>
    %77 = vector.extract_strided_slice %74 {offsets = [0, 64], sizes = [2, 32], strides = [1, 1]} : vector<2x128xf32> to vector<2x32xf32>
    %78 = vector.extract_strided_slice %73 {offsets = [0, 96], sizes = [2, 32], strides = [1, 1]} : vector<2x128xf32> to vector<2x32xf32>
    %79 = arith.mulf %76, %62 : vector<2x32xf32>
    %80 = arith.mulf %75, %77 : vector<2x32xf32>
    %81 = arith.addf %79, %80 : vector<2x32xf32>
    %82 = math.tanh %81 : vector<2x32xf32>
    %83 = arith.mulf %78, %82 : vector<2x32xf32>
    %c6 = arith.constant 6 : index
    %c0_21 = arith.constant 0 : index
    %84 = vector.load %arg18[%c6, %c0_21] : memref<16x64xf32, #tpu.memory_space<vmem>>, vector<2x32xf32>
    tpu.vector_store %arg18[%c6, %c0_21], %83 {strides = array<i32>} : memref<16x64xf32, #tpu.memory_space<vmem>>, vector<2x32xf32>,
    %85 = vector.extract_strided_slice %5 {offsets = [8, 0], sizes = [2, 128], strides = [1, 1]} : vector<16x128xf32> to vector<2x128xf32>
    %cst_22 = arith.constant dense<0.000000e+00> : vector<2x128xf32>
    %86 = tpu.matmul %83, %6, %cst_22 {dimension_numbers = #tpu.dot_dimension_numbers<[1], [0], [0], [1], [0, 0, 1, 1], [], []>} : vector<2x32xf32>, vector<32x128xf32>, vector<2x128xf32> -> vector<2x128xf32>
    %87 = arith.addf %85, %86 : vector<2x128xf32>
    %88 = arith.negf %87 : vector<2x128xf32>
    %89 = math.exp %88 : vector<2x128xf32>
    %cst_23 = arith.constant 1.000000e+00 : f32
    %90 = vector.broadcast %cst_23 : f32 to vector<2x128xf32>
    %91 = arith.addf %90, %89 : vector<2x128xf32>
    %92 = arith.divf %90, %91 : vector<2x128xf32>
    %93 = math.tanh %87 : vector<2x128xf32>
    %94 = vector.extract_strided_slice %92 {offsets = [0, 0], sizes = [2, 32], strides = [1, 1]} : vector<2x128xf32> to vector<2x32xf32>
    %95 = vector.extract_strided_slice %92 {offsets = [0, 32], sizes = [2, 32], strides = [1, 1]} : vector<2x128xf32> to vector<2x32xf32>
    %96 = vector.extract_strided_slice %93 {offsets = [0, 64], sizes = [2, 32], strides = [1, 1]} : vector<2x128xf32> to vector<2x32xf32>
    %97 = vector.extract_strided_slice %92 {offsets = [0, 96], sizes = [2, 32], strides = [1, 1]} : vector<2x128xf32> to vector<2x32xf32>
    %98 = arith.mulf %95, %81 : vector<2x32xf32>
    %99 = arith.mulf %94, %96 : vector<2x32xf32>
    %100 = arith.addf %98, %99 : vector<2x32xf32>
    %101 = math.tanh %100 : vector<2x32xf32>
    %102 = arith.mulf %97, %101 : vector<2x32xf32>
    %c8 = arith.constant 8 : index
    %c0_24 = arith.constant 0 : index
    %103 = vector.load %arg18[%c8, %c0_24] : memref<16x64xf32, #tpu.memory_space<vmem>>, vector<2x32xf32>
    tpu.vector_store %arg18[%c8, %c0_24], %102 {strides = array<i32>} : memref<16x64xf32, #tpu.memory_space<vmem>>, vector<2x32xf32>,
    %104 = vector.extract_strided_slice %5 {offsets = [10, 0], sizes = [2, 128], strides = [1, 1]} : vector<16x128xf32> to vector<2x128xf32>
    %cst_25 = arith.constant dense<0.000000e+00> : vector<2x128xf32>
    %105 = tpu.matmul %102, %6, %cst_25 {dimension_numbers = #tpu.dot_dimension_numbers<[1], [0], [0], [1], [0, 0, 1, 1], [], []>} : vector<2x32xf32>, vector<32x128xf32>, vector<2x128xf32> -> vector<2x128xf32>
    %106 = arith.addf %104, %105 : vector<2x128xf32>
    %107 = arith.negf %106 : vector<2x128xf32>
    %108 = math.exp %107 : vector<2x128xf32>
    %cst_26 = arith.constant 1.000000e+00 : f32
    %109 = vector.broadcast %cst_26 : f32 to vector<2x128xf32>
    %110 = arith.addf %109, %108 : vector<2x128xf32>
    %111 = arith.divf %109, %110 : vector<2x128xf32>
    %112 = math.tanh %106 : vector<2x128xf32>
    %113 = vector.extract_strided_slice %111 {offsets = [0, 0], sizes = [2, 32], strides = [1, 1]} : vector<2x128xf32> to vector<2x32xf32>
    %114 = vector.extract_strided_slice %111 {offsets = [0, 32], sizes = [2, 32], strides = [1, 1]} : vector<2x128xf32> to vector<2x32xf32>
    %115 = vector.extract_strided_slice %112 {offsets = [0, 64], sizes = [2, 32], strides = [1, 1]} : vector<2x128xf32> to vector<2x32xf32>
    %116 = vector.extract_strided_slice %111 {offsets = [0, 96], sizes = [2, 32], strides = [1, 1]} : vector<2x128xf32> to vector<2x32xf32>
    %117 = arith.mulf %114, %100 : vector<2x32xf32>
    %118 = arith.mulf %113, %115 : vector<2x32xf32>
    %119 = arith.addf %117, %118 : vector<2x32xf32>
    %120 = math.tanh %119 : vector<2x32xf32>
    %121 = arith.mulf %116, %120 : vector<2x32xf32>
    %c10 = arith.constant 10 : index
    %c0_27 = arith.constant 0 : index
    %122 = vector.load %arg18[%c10, %c0_27] : memref<16x64xf32, #tpu.memory_space<vmem>>, vector<2x32xf32>
    tpu.vector_store %arg18[%c10, %c0_27], %121 {strides = array<i32>} : memref<16x64xf32, #tpu.memory_space<vmem>>, vector<2x32xf32>,
    %123 = vector.extract_strided_slice %5 {offsets = [12, 0], sizes = [2, 128], strides = [1, 1]} : vector<16x128xf32> to vector<2x128xf32>
    %cst_28 = arith.constant dense<0.000000e+00> : vector<2x128xf32>
    %124 = tpu.matmul %121, %6, %cst_28 {dimension_numbers = #tpu.dot_dimension_numbers<[1], [0], [0], [1], [0, 0, 1, 1], [], []>} : vector<2x32xf32>, vector<32x128xf32>, vector<2x128xf32> -> vector<2x128xf32>
    %125 = arith.addf %123, %124 : vector<2x128xf32>
    %126 = arith.negf %125 : vector<2x128xf32>
    %127 = math.exp %126 : vector<2x128xf32>
    %cst_29 = arith.constant 1.000000e+00 : f32
    %128 = vector.broadcast %cst_29 : f32 to vector<2x128xf32>
    %129 = arith.addf %128, %127 : vector<2x128xf32>
    %130 = arith.divf %128, %129 : vector<2x128xf32>
    %131 = math.tanh %125 : vector<2x128xf32>
    %132 = vector.extract_strided_slice %130 {offsets = [0, 0], sizes = [2, 32], strides = [1, 1]} : vector<2x128xf32> to vector<2x32xf32>
    %133 = vector.extract_strided_slice %130 {offsets = [0, 32], sizes = [2, 32], strides = [1, 1]} : vector<2x128xf32> to vector<2x32xf32>
    %134 = vector.extract_strided_slice %131 {offsets = [0, 64], sizes = [2, 32], strides = [1, 1]} : vector<2x128xf32> to vector<2x32xf32>
    %135 = vector.extract_strided_slice %130 {offsets = [0, 96], sizes = [2, 32], strides = [1, 1]} : vector<2x128xf32> to vector<2x32xf32>
    %136 = arith.mulf %133, %119 : vector<2x32xf32>
    %137 = arith.mulf %132, %134 : vector<2x32xf32>
    %138 = arith.addf %136, %137 : vector<2x32xf32>
    %139 = math.tanh %138 : vector<2x32xf32>
    %140 = arith.mulf %135, %139 : vector<2x32xf32>
    %c12 = arith.constant 12 : index
    %c0_30 = arith.constant 0 : index
    %141 = vector.load %arg18[%c12, %c0_30] : memref<16x64xf32, #tpu.memory_space<vmem>>, vector<2x32xf32>
    tpu.vector_store %arg18[%c12, %c0_30], %140 {strides = array<i32>} : memref<16x64xf32, #tpu.memory_space<vmem>>, vector<2x32xf32>,
    %142 = vector.extract_strided_slice %5 {offsets = [14, 0], sizes = [2, 128], strides = [1, 1]} : vector<16x128xf32> to vector<2x128xf32>
    %cst_31 = arith.constant dense<0.000000e+00> : vector<2x128xf32>
    %143 = tpu.matmul %140, %6, %cst_31 {dimension_numbers = #tpu.dot_dimension_numbers<[1], [0], [0], [1], [0, 0, 1, 1], [], []>} : vector<2x32xf32>, vector<32x128xf32>, vector<2x128xf32> -> vector<2x128xf32>
    %144 = arith.addf %142, %143 : vector<2x128xf32>
    %145 = arith.negf %144 : vector<2x128xf32>
    %146 = math.exp %145 : vector<2x128xf32>
    %cst_32 = arith.constant 1.000000e+00 : f32
    %147 = vector.broadcast %cst_32 : f32 to vector<2x128xf32>
    %148 = arith.addf %147, %146 : vector<2x128xf32>
    %149 = arith.divf %147, %148 : vector<2x128xf32>
    %150 = math.tanh %144 : vector<2x128xf32>
    %151 = vector.extract_strided_slice %149 {offsets = [0, 0], sizes = [2, 32], strides = [1, 1]} : vector<2x128xf32> to vector<2x32xf32>
    %152 = vector.extract_strided_slice %149 {offsets = [0, 32], sizes = [2, 32], strides = [1, 1]} : vector<2x128xf32> to vector<2x32xf32>
    %153 = vector.extract_strided_slice %150 {offsets = [0, 64], sizes = [2, 32], strides = [1, 1]} : vector<2x128xf32> to vector<2x32xf32>
    %154 = vector.extract_strided_slice %149 {offsets = [0, 96], sizes = [2, 32], strides = [1, 1]} : vector<2x128xf32> to vector<2x32xf32>
    %155 = arith.mulf %152, %138 : vector<2x32xf32>
    %156 = arith.mulf %151, %153 : vector<2x32xf32>
    %157 = arith.addf %155, %156 : vector<2x32xf32>
    %158 = math.tanh %157 : vector<2x32xf32>
    %159 = arith.mulf %154, %158 : vector<2x32xf32>
    %c14 = arith.constant 14 : index
    %c0_33 = arith.constant 0 : index
    %160 = vector.load %arg18[%c14, %c0_33] : memref<16x64xf32, #tpu.memory_space<vmem>>, vector<2x32xf32>
    tpu.vector_store %arg18[%c14, %c0_33], %159 {strides = array<i32>} : memref<16x64xf32, #tpu.memory_space<vmem>>, vector<2x32xf32>,
    %c0_34 = arith.constant 0 : index
    %c0_35 = arith.constant 0 : index
    %161 = vector.load %arg4[%c0_34, %c0_35] : memref<32x128xf32, #tpu.memory_space<vmem>>, vector<32x128xf32>
    %cst_36 = arith.constant dense<0.000000e+00> : vector<16x128xf32>
    %162 = tpu.matmul %0, %161, %cst_36 {dimension_numbers = #tpu.dot_dimension_numbers<[1], [0], [0], [1], [0, 0, 1, 1], [], []>} : vector<16x32xf32>, vector<32x128xf32>, vector<16x128xf32> -> vector<16x128xf32>
    %c0_37 = arith.constant 0 : index
    %c0_38 = arith.constant 0 : index
    %163 = vector.load %arg6[%c0_37, %c0_38] : memref<1x128xf32, #tpu.memory_space<vmem>>, vector<1x128xf32>
    %164 = vector.broadcast %163 : vector<1x128xf32> to vector<16x128xf32>
    %165 = arith.addf %162, %164 : vector<16x128xf32>
    %c0_39 = arith.constant 0 : index
    %c0_40 = arith.constant 0 : index
    %166 = vector.load %arg5[%c0_39, %c0_40] : memref<32x128xf32, #tpu.memory_space<vmem>>, vector<32x128xf32>
    %cst_41 = arith.constant 0.000000e+00 : f32
    %167 = vector.broadcast %cst_41 : f32 to vector<2x32xf32>
    %cst_42 = arith.constant 0.000000e+00 : f32
    %168 = vector.broadcast %cst_42 : f32 to vector<2x32xf32>
    %169 = vector.extract_strided_slice %165 {offsets = [14, 0], sizes = [2, 128], strides = [1, 1]} : vector<16x128xf32> to vector<2x128xf32>
    %cst_43 = arith.constant dense<0.000000e+00> : vector<2x128xf32>
    %170 = tpu.matmul %167, %166, %cst_43 {dimension_numbers = #tpu.dot_dimension_numbers<[1], [0], [0], [1], [0, 0, 1, 1], [], []>} : vector<2x32xf32>, vector<32x128xf32>, vector<2x128xf32> -> vector<2x128xf32>
    %171 = arith.addf %169, %170 : vector<2x128xf32>
    %172 = arith.negf %171 : vector<2x128xf32>
    %173 = math.exp %172 : vector<2x128xf32>
    %cst_44 = arith.constant 1.000000e+00 : f32
    %174 = vector.broadcast %cst_44 : f32 to vector<2x128xf32>
    %175 = arith.addf %174, %173 : vector<2x128xf32>
    %176 = arith.divf %174, %175 : vector<2x128xf32>
    %177 = math.tanh %171 : vector<2x128xf32>
    %178 = vector.extract_strided_slice %176 {offsets = [0, 0], sizes = [2, 32], strides = [1, 1]} : vector<2x128xf32> to vector<2x32xf32>
    %179 = vector.extract_strided_slice %176 {offsets = [0, 32], sizes = [2, 32], strides = [1, 1]} : vector<2x128xf32> to vector<2x32xf32>
    %180 = vector.extract_strided_slice %177 {offsets = [0, 64], sizes = [2, 32], strides = [1, 1]} : vector<2x128xf32> to vector<2x32xf32>
    %181 = vector.extract_strided_slice %176 {offsets = [0, 96], sizes = [2, 32], strides = [1, 1]} : vector<2x128xf32> to vector<2x32xf32>
    %182 = arith.mulf %179, %168 : vector<2x32xf32>
    %183 = arith.mulf %178, %180 : vector<2x32xf32>
    %184 = arith.addf %182, %183 : vector<2x32xf32>
    %185 = math.tanh %184 : vector<2x32xf32>
    %186 = arith.mulf %181, %185 : vector<2x32xf32>
    %c14_45 = arith.constant 14 : index
    %c32 = arith.constant 32 : index
    %187 = vector.load %arg18[%c14_45, %c32] : memref<16x64xf32, #tpu.memory_space<vmem>>, vector<2x32xf32>
    tpu.vector_store %arg18[%c14_45, %c32], %186 {strides = array<i32>} : memref<16x64xf32, #tpu.memory_space<vmem>>, vector<2x32xf32>,
    %188 = vector.extract_strided_slice %165 {offsets = [12, 0], sizes = [2, 128], strides = [1, 1]} : vector<16x128xf32> to vector<2x128xf32>
    %cst_46 = arith.constant dense<0.000000e+00> : vector<2x128xf32>
    %189 = tpu.matmul %186, %166, %cst_46 {dimension_numbers = #tpu.dot_dimension_numbers<[1], [0], [0], [1], [0, 0, 1, 1], [], []>} : vector<2x32xf32>, vector<32x128xf32>, vector<2x128xf32> -> vector<2x128xf32>
    %190 = arith.addf %188, %189 : vector<2x128xf32>
    %191 = arith.negf %190 : vector<2x128xf32>
    %192 = math.exp %191 : vector<2x128xf32>
    %cst_47 = arith.constant 1.000000e+00 : f32
    %193 = vector.broadcast %cst_47 : f32 to vector<2x128xf32>
    %194 = arith.addf %193, %192 : vector<2x128xf32>
    %195 = arith.divf %193, %194 : vector<2x128xf32>
    %196 = math.tanh %190 : vector<2x128xf32>
    %197 = vector.extract_strided_slice %195 {offsets = [0, 0], sizes = [2, 32], strides = [1, 1]} : vector<2x128xf32> to vector<2x32xf32>
    %198 = vector.extract_strided_slice %195 {offsets = [0, 32], sizes = [2, 32], strides = [1, 1]} : vector<2x128xf32> to vector<2x32xf32>
    %199 = vector.extract_strided_slice %196 {offsets = [0, 64], sizes = [2, 32], strides = [1, 1]} : vector<2x128xf32> to vector<2x32xf32>
    %200 = vector.extract_strided_slice %195 {offsets = [0, 96], sizes = [2, 32], strides = [1, 1]} : vector<2x128xf32> to vector<2x32xf32>
    %201 = arith.mulf %198, %184 : vector<2x32xf32>
    %202 = arith.mulf %197, %199 : vector<2x32xf32>
    %203 = arith.addf %201, %202 : vector<2x32xf32>
    %204 = math.tanh %203 : vector<2x32xf32>
    %205 = arith.mulf %200, %204 : vector<2x32xf32>
    %c12_48 = arith.constant 12 : index
    %c32_49 = arith.constant 32 : index
    %206 = vector.load %arg18[%c12_48, %c32_49] : memref<16x64xf32, #tpu.memory_space<vmem>>, vector<2x32xf32>
    tpu.vector_store %arg18[%c12_48, %c32_49], %205 {strides = array<i32>} : memref<16x64xf32, #tpu.memory_space<vmem>>, vector<2x32xf32>,
    %207 = vector.extract_strided_slice %165 {offsets = [10, 0], sizes = [2, 128], strides = [1, 1]} : vector<16x128xf32> to vector<2x128xf32>
    %cst_50 = arith.constant dense<0.000000e+00> : vector<2x128xf32>
    %208 = tpu.matmul %205, %166, %cst_50 {dimension_numbers = #tpu.dot_dimension_numbers<[1], [0], [0], [1], [0, 0, 1, 1], [], []>} : vector<2x32xf32>, vector<32x128xf32>, vector<2x128xf32> -> vector<2x128xf32>
    %209 = arith.addf %207, %208 : vector<2x128xf32>
    %210 = arith.negf %209 : vector<2x128xf32>
    %211 = math.exp %210 : vector<2x128xf32>
    %cst_51 = arith.constant 1.000000e+00 : f32
    %212 = vector.broadcast %cst_51 : f32 to vector<2x128xf32>
    %213 = arith.addf %212, %211 : vector<2x128xf32>
    %214 = arith.divf %212, %213 : vector<2x128xf32>
    %215 = math.tanh %209 : vector<2x128xf32>
    %216 = vector.extract_strided_slice %214 {offsets = [0, 0], sizes = [2, 32], strides = [1, 1]} : vector<2x128xf32> to vector<2x32xf32>
    %217 = vector.extract_strided_slice %214 {offsets = [0, 32], sizes = [2, 32], strides = [1, 1]} : vector<2x128xf32> to vector<2x32xf32>
    %218 = vector.extract_strided_slice %215 {offsets = [0, 64], sizes = [2, 32], strides = [1, 1]} : vector<2x128xf32> to vector<2x32xf32>
    %219 = vector.extract_strided_slice %214 {offsets = [0, 96], sizes = [2, 32], strides = [1, 1]} : vector<2x128xf32> to vector<2x32xf32>
    %220 = arith.mulf %217, %203 : vector<2x32xf32>
    %221 = arith.mulf %216, %218 : vector<2x32xf32>
    %222 = arith.addf %220, %221 : vector<2x32xf32>
    %223 = math.tanh %222 : vector<2x32xf32>
    %224 = arith.mulf %219, %223 : vector<2x32xf32>
    %c10_52 = arith.constant 10 : index
    %c32_53 = arith.constant 32 : index
    %225 = vector.load %arg18[%c10_52, %c32_53] : memref<16x64xf32, #tpu.memory_space<vmem>>, vector<2x32xf32>
    tpu.vector_store %arg18[%c10_52, %c32_53], %224 {strides = array<i32>} : memref<16x64xf32, #tpu.memory_space<vmem>>, vector<2x32xf32>,
    %226 = vector.extract_strided_slice %165 {offsets = [8, 0], sizes = [2, 128], strides = [1, 1]} : vector<16x128xf32> to vector<2x128xf32>
    %cst_54 = arith.constant dense<0.000000e+00> : vector<2x128xf32>
    %227 = tpu.matmul %224, %166, %cst_54 {dimension_numbers = #tpu.dot_dimension_numbers<[1], [0], [0], [1], [0, 0, 1, 1], [], []>} : vector<2x32xf32>, vector<32x128xf32>, vector<2x128xf32> -> vector<2x128xf32>
    %228 = arith.addf %226, %227 : vector<2x128xf32>
    %229 = arith.negf %228 : vector<2x128xf32>
    %230 = math.exp %229 : vector<2x128xf32>
    %cst_55 = arith.constant 1.000000e+00 : f32
    %231 = vector.broadcast %cst_55 : f32 to vector<2x128xf32>
    %232 = arith.addf %231, %230 : vector<2x128xf32>
    %233 = arith.divf %231, %232 : vector<2x128xf32>
    %234 = math.tanh %228 : vector<2x128xf32>
    %235 = vector.extract_strided_slice %233 {offsets = [0, 0], sizes = [2, 32], strides = [1, 1]} : vector<2x128xf32> to vector<2x32xf32>
    %236 = vector.extract_strided_slice %233 {offsets = [0, 32], sizes = [2, 32], strides = [1, 1]} : vector<2x128xf32> to vector<2x32xf32>
    %237 = vector.extract_strided_slice %234 {offsets = [0, 64], sizes = [2, 32], strides = [1, 1]} : vector<2x128xf32> to vector<2x32xf32>
    %238 = vector.extract_strided_slice %233 {offsets = [0, 96], sizes = [2, 32], strides = [1, 1]} : vector<2x128xf32> to vector<2x32xf32>
    %239 = arith.mulf %236, %222 : vector<2x32xf32>
    %240 = arith.mulf %235, %237 : vector<2x32xf32>
    %241 = arith.addf %239, %240 : vector<2x32xf32>
    %242 = math.tanh %241 : vector<2x32xf32>
    %243 = arith.mulf %238, %242 : vector<2x32xf32>
    %c8_56 = arith.constant 8 : index
    %c32_57 = arith.constant 32 : index
    %244 = vector.load %arg18[%c8_56, %c32_57] : memref<16x64xf32, #tpu.memory_space<vmem>>, vector<2x32xf32>
    tpu.vector_store %arg18[%c8_56, %c32_57], %243 {strides = array<i32>} : memref<16x64xf32, #tpu.memory_space<vmem>>, vector<2x32xf32>,
    %245 = vector.extract_strided_slice %165 {offsets = [6, 0], sizes = [2, 128], strides = [1, 1]} : vector<16x128xf32> to vector<2x128xf32>
    %cst_58 = arith.constant dense<0.000000e+00> : vector<2x128xf32>
    %246 = tpu.matmul %243, %166, %cst_58 {dimension_numbers = #tpu.dot_dimension_numbers<[1], [0], [0], [1], [0, 0, 1, 1], [], []>} : vector<2x32xf32>, vector<32x128xf32>, vector<2x128xf32> -> vector<2x128xf32>
    %247 = arith.addf %245, %246 : vector<2x128xf32>
    %248 = arith.negf %247 : vector<2x128xf32>
    %249 = math.exp %248 : vector<2x128xf32>
    %cst_59 = arith.constant 1.000000e+00 : f32
    %250 = vector.broadcast %cst_59 : f32 to vector<2x128xf32>
    %251 = arith.addf %250, %249 : vector<2x128xf32>
    %252 = arith.divf %250, %251 : vector<2x128xf32>
    %253 = math.tanh %247 : vector<2x128xf32>
    %254 = vector.extract_strided_slice %252 {offsets = [0, 0], sizes = [2, 32], strides = [1, 1]} : vector<2x128xf32> to vector<2x32xf32>
    %255 = vector.extract_strided_slice %252 {offsets = [0, 32], sizes = [2, 32], strides = [1, 1]} : vector<2x128xf32> to vector<2x32xf32>
    %256 = vector.extract_strided_slice %253 {offsets = [0, 64], sizes = [2, 32], strides = [1, 1]} : vector<2x128xf32> to vector<2x32xf32>
    %257 = vector.extract_strided_slice %252 {offsets = [0, 96], sizes = [2, 32], strides = [1, 1]} : vector<2x128xf32> to vector<2x32xf32>
    %258 = arith.mulf %255, %241 : vector<2x32xf32>
    %259 = arith.mulf %254, %256 : vector<2x32xf32>
    %260 = arith.addf %258, %259 : vector<2x32xf32>
    %261 = math.tanh %260 : vector<2x32xf32>
    %262 = arith.mulf %257, %261 : vector<2x32xf32>
    %c6_60 = arith.constant 6 : index
    %c32_61 = arith.constant 32 : index
    %263 = vector.load %arg18[%c6_60, %c32_61] : memref<16x64xf32, #tpu.memory_space<vmem>>, vector<2x32xf32>
    tpu.vector_store %arg18[%c6_60, %c32_61], %262 {strides = array<i32>} : memref<16x64xf32, #tpu.memory_space<vmem>>, vector<2x32xf32>,
    %264 = vector.extract_strided_slice %165 {offsets = [4, 0], sizes = [2, 128], strides = [1, 1]} : vector<16x128xf32> to vector<2x128xf32>
    %cst_62 = arith.constant dense<0.000000e+00> : vector<2x128xf32>
    %265 = tpu.matmul %262, %166, %cst_62 {dimension_numbers = #tpu.dot_dimension_numbers<[1], [0], [0], [1], [0, 0, 1, 1], [], []>} : vector<2x32xf32>, vector<32x128xf32>, vector<2x128xf32> -> vector<2x128xf32>
    %266 = arith.addf %264, %265 : vector<2x128xf32>
    %267 = arith.negf %266 : vector<2x128xf32>
    %268 = math.exp %267 : vector<2x128xf32>
    %cst_63 = arith.constant 1.000000e+00 : f32
    %269 = vector.broadcast %cst_63 : f32 to vector<2x128xf32>
    %270 = arith.addf %269, %268 : vector<2x128xf32>
    %271 = arith.divf %269, %270 : vector<2x128xf32>
    %272 = math.tanh %266 : vector<2x128xf32>
    %273 = vector.extract_strided_slice %271 {offsets = [0, 0], sizes = [2, 32], strides = [1, 1]} : vector<2x128xf32> to vector<2x32xf32>
    %274 = vector.extract_strided_slice %271 {offsets = [0, 32], sizes = [2, 32], strides = [1, 1]} : vector<2x128xf32> to vector<2x32xf32>
    %275 = vector.extract_strided_slice %272 {offsets = [0, 64], sizes = [2, 32], strides = [1, 1]} : vector<2x128xf32> to vector<2x32xf32>
    %276 = vector.extract_strided_slice %271 {offsets = [0, 96], sizes = [2, 32], strides = [1, 1]} : vector<2x128xf32> to vector<2x32xf32>
    %277 = arith.mulf %274, %260 : vector<2x32xf32>
    %278 = arith.mulf %273, %275 : vector<2x32xf32>
    %279 = arith.addf %277, %278 : vector<2x32xf32>
    %280 = math.tanh %279 : vector<2x32xf32>
    %281 = arith.mulf %276, %280 : vector<2x32xf32>
    %c4_64 = arith.constant 4 : index
    %c32_65 = arith.constant 32 : index
    %282 = vector.load %arg18[%c4_64, %c32_65] : memref<16x64xf32, #tpu.memory_space<vmem>>, vector<2x32xf32>
    tpu.vector_store %arg18[%c4_64, %c32_65], %281 {strides = array<i32>} : memref<16x64xf32, #tpu.memory_space<vmem>>, vector<2x32xf32>,
    %283 = vector.extract_strided_slice %165 {offsets = [2, 0], sizes = [2, 128], strides = [1, 1]} : vector<16x128xf32> to vector<2x128xf32>
    %cst_66 = arith.constant dense<0.000000e+00> : vector<2x128xf32>
    %284 = tpu.matmul %281, %166, %cst_66 {dimension_numbers = #tpu.dot_dimension_numbers<[1], [0], [0], [1], [0, 0, 1, 1], [], []>} : vector<2x32xf32>, vector<32x128xf32>, vector<2x128xf32> -> vector<2x128xf32>
    %285 = arith.addf %283, %284 : vector<2x128xf32>
    %286 = arith.negf %285 : vector<2x128xf32>
    %287 = math.exp %286 : vector<2x128xf32>
    %cst_67 = arith.constant 1.000000e+00 : f32
    %288 = vector.broadcast %cst_67 : f32 to vector<2x128xf32>
    %289 = arith.addf %288, %287 : vector<2x128xf32>
    %290 = arith.divf %288, %289 : vector<2x128xf32>
    %291 = math.tanh %285 : vector<2x128xf32>
    %292 = vector.extract_strided_slice %290 {offsets = [0, 0], sizes = [2, 32], strides = [1, 1]} : vector<2x128xf32> to vector<2x32xf32>
    %293 = vector.extract_strided_slice %290 {offsets = [0, 32], sizes = [2, 32], strides = [1, 1]} : vector<2x128xf32> to vector<2x32xf32>
    %294 = vector.extract_strided_slice %291 {offsets = [0, 64], sizes = [2, 32], strides = [1, 1]} : vector<2x128xf32> to vector<2x32xf32>
    %295 = vector.extract_strided_slice %290 {offsets = [0, 96], sizes = [2, 32], strides = [1, 1]} : vector<2x128xf32> to vector<2x32xf32>
    %296 = arith.mulf %293, %279 : vector<2x32xf32>
    %297 = arith.mulf %292, %294 : vector<2x32xf32>
    %298 = arith.addf %296, %297 : vector<2x32xf32>
    %299 = math.tanh %298 : vector<2x32xf32>
    %300 = arith.mulf %295, %299 : vector<2x32xf32>
    %c2_68 = arith.constant 2 : index
    %c32_69 = arith.constant 32 : index
    %301 = vector.load %arg18[%c2_68, %c32_69] : memref<16x64xf32, #tpu.memory_space<vmem>>, vector<2x32xf32>
    tpu.vector_store %arg18[%c2_68, %c32_69], %300 {strides = array<i32>} : memref<16x64xf32, #tpu.memory_space<vmem>>, vector<2x32xf32>,
    %302 = vector.extract_strided_slice %165 {offsets = [0, 0], sizes = [2, 128], strides = [1, 1]} : vector<16x128xf32> to vector<2x128xf32>
    %cst_70 = arith.constant dense<0.000000e+00> : vector<2x128xf32>
    %303 = tpu.matmul %300, %166, %cst_70 {dimension_numbers = #tpu.dot_dimension_numbers<[1], [0], [0], [1], [0, 0, 1, 1], [], []>} : vector<2x32xf32>, vector<32x128xf32>, vector<2x128xf32> -> vector<2x128xf32>
    %304 = arith.addf %302, %303 : vector<2x128xf32>
    %305 = arith.negf %304 : vector<2x128xf32>
    %306 = math.exp %305 : vector<2x128xf32>
    %cst_71 = arith.constant 1.000000e+00 : f32
    %307 = vector.broadcast %cst_71 : f32 to vector<2x128xf32>
    %308 = arith.addf %307, %306 : vector<2x128xf32>
    %309 = arith.divf %307, %308 : vector<2x128xf32>
    %310 = math.tanh %304 : vector<2x128xf32>
    %311 = vector.extract_strided_slice %309 {offsets = [0, 0], sizes = [2, 32], strides = [1, 1]} : vector<2x128xf32> to vector<2x32xf32>
    %312 = vector.extract_strided_slice %309 {offsets = [0, 32], sizes = [2, 32], strides = [1, 1]} : vector<2x128xf32> to vector<2x32xf32>
    %313 = vector.extract_strided_slice %310 {offsets = [0, 64], sizes = [2, 32], strides = [1, 1]} : vector<2x128xf32> to vector<2x32xf32>
    %314 = vector.extract_strided_slice %309 {offsets = [0, 96], sizes = [2, 32], strides = [1, 1]} : vector<2x128xf32> to vector<2x32xf32>
    %315 = arith.mulf %312, %298 : vector<2x32xf32>
    %316 = arith.mulf %311, %313 : vector<2x32xf32>
    %317 = arith.addf %315, %316 : vector<2x32xf32>
    %318 = math.tanh %317 : vector<2x32xf32>
    %319 = arith.mulf %314, %318 : vector<2x32xf32>
    %c0_72 = arith.constant 0 : index
    %c32_73 = arith.constant 32 : index
    %320 = vector.load %arg18[%c0_72, %c32_73] : memref<16x64xf32, #tpu.memory_space<vmem>>, vector<2x32xf32>
    tpu.vector_store %arg18[%c0_72, %c32_73], %319 {strides = array<i32>} : memref<16x64xf32, #tpu.memory_space<vmem>>, vector<2x32xf32>,
    %c0_74 = arith.constant 0 : index
    %c0_75 = arith.constant 0 : index
    %321 = vector.load %arg18[%c0_74, %c0_75] : memref<16x64xf32, #tpu.memory_space<vmem>>, vector<16x64xf32>
    %c0_76 = arith.constant 0 : index
    %c0_77 = arith.constant 0 : index
    %322 = vector.load %arg7[%c0_76, %c0_77] : memref<64x128xf32, #tpu.memory_space<vmem>>, vector<64x128xf32>
    %cst_78 = arith.constant dense<0.000000e+00> : vector<16x128xf32>
    %323 = tpu.matmul %321, %322, %cst_78 {dimension_numbers = #tpu.dot_dimension_numbers<[1], [0], [0], [1], [0, 0, 1, 1], [], []>} : vector<16x64xf32>, vector<64x128xf32>, vector<16x128xf32> -> vector<16x128xf32>
    %c0_79 = arith.constant 0 : index
    %c0_80 = arith.constant 0 : index
    %324 = vector.load %arg9[%c0_79, %c0_80] : memref<1x128xf32, #tpu.memory_space<vmem>>, vector<1x128xf32>
    %325 = vector.broadcast %324 : vector<1x128xf32> to vector<16x128xf32>
    %326 = arith.addf %323, %325 : vector<16x128xf32>
    %c0_81 = arith.constant 0 : index
    %c0_82 = arith.constant 0 : index
    %327 = vector.load %arg8[%c0_81, %c0_82] : memref<32x128xf32, #tpu.memory_space<vmem>>, vector<32x128xf32>
    %cst_83 = arith.constant 0.000000e+00 : f32
    %328 = vector.broadcast %cst_83 : f32 to vector<2x32xf32>
    %cst_84 = arith.constant 0.000000e+00 : f32
    %329 = vector.broadcast %cst_84 : f32 to vector<2x32xf32>
    %330 = vector.extract_strided_slice %326 {offsets = [0, 0], sizes = [2, 128], strides = [1, 1]} : vector<16x128xf32> to vector<2x128xf32>
    %cst_85 = arith.constant dense<0.000000e+00> : vector<2x128xf32>
    %331 = tpu.matmul %328, %327, %cst_85 {dimension_numbers = #tpu.dot_dimension_numbers<[1], [0], [0], [1], [0, 0, 1, 1], [], []>} : vector<2x32xf32>, vector<32x128xf32>, vector<2x128xf32> -> vector<2x128xf32>
    %332 = arith.addf %330, %331 : vector<2x128xf32>
    %333 = arith.negf %332 : vector<2x128xf32>
    %334 = math.exp %333 : vector<2x128xf32>
    %cst_86 = arith.constant 1.000000e+00 : f32
    %335 = vector.broadcast %cst_86 : f32 to vector<2x128xf32>
    %336 = arith.addf %335, %334 : vector<2x128xf32>
    %337 = arith.divf %335, %336 : vector<2x128xf32>
    %338 = math.tanh %332 : vector<2x128xf32>
    %339 = vector.extract_strided_slice %337 {offsets = [0, 0], sizes = [2, 32], strides = [1, 1]} : vector<2x128xf32> to vector<2x32xf32>
    %340 = vector.extract_strided_slice %337 {offsets = [0, 32], sizes = [2, 32], strides = [1, 1]} : vector<2x128xf32> to vector<2x32xf32>
    %341 = vector.extract_strided_slice %338 {offsets = [0, 64], sizes = [2, 32], strides = [1, 1]} : vector<2x128xf32> to vector<2x32xf32>
    %342 = vector.extract_strided_slice %337 {offsets = [0, 96], sizes = [2, 32], strides = [1, 1]} : vector<2x128xf32> to vector<2x32xf32>
    %343 = arith.mulf %340, %329 : vector<2x32xf32>
    %344 = arith.mulf %339, %341 : vector<2x32xf32>
    %345 = arith.addf %343, %344 : vector<2x32xf32>
    %346 = math.tanh %345 : vector<2x32xf32>
    %347 = arith.mulf %342, %346 : vector<2x32xf32>
    %c0_87 = arith.constant 0 : index
    %c0_88 = arith.constant 0 : index
    %348 = vector.load %arg19[%c0_87, %c0_88] : memref<16x64xf32, #tpu.memory_space<vmem>>, vector<2x32xf32>
    tpu.vector_store %arg19[%c0_87, %c0_88], %347 {strides = array<i32>} : memref<16x64xf32, #tpu.memory_space<vmem>>, vector<2x32xf32>,
    %349 = vector.extract_strided_slice %326 {offsets = [2, 0], sizes = [2, 128], strides = [1, 1]} : vector<16x128xf32> to vector<2x128xf32>
    %cst_89 = arith.constant dense<0.000000e+00> : vector<2x128xf32>
    %350 = tpu.matmul %347, %327, %cst_89 {dimension_numbers = #tpu.dot_dimension_numbers<[1], [0], [0], [1], [0, 0, 1, 1], [], []>} : vector<2x32xf32>, vector<32x128xf32>, vector<2x128xf32> -> vector<2x128xf32>
    %351 = arith.addf %349, %350 : vector<2x128xf32>
    %352 = arith.negf %351 : vector<2x128xf32>
    %353 = math.exp %352 : vector<2x128xf32>
    %cst_90 = arith.constant 1.000000e+00 : f32
    %354 = vector.broadcast %cst_90 : f32 to vector<2x128xf32>
    %355 = arith.addf %354, %353 : vector<2x128xf32>
    %356 = arith.divf %354, %355 : vector<2x128xf32>
    %357 = math.tanh %351 : vector<2x128xf32>
    %358 = vector.extract_strided_slice %356 {offsets = [0, 0], sizes = [2, 32], strides = [1, 1]} : vector<2x128xf32> to vector<2x32xf32>
    %359 = vector.extract_strided_slice %356 {offsets = [0, 32], sizes = [2, 32], strides = [1, 1]} : vector<2x128xf32> to vector<2x32xf32>
    %360 = vector.extract_strided_slice %357 {offsets = [0, 64], sizes = [2, 32], strides = [1, 1]} : vector<2x128xf32> to vector<2x32xf32>
    %361 = vector.extract_strided_slice %356 {offsets = [0, 96], sizes = [2, 32], strides = [1, 1]} : vector<2x128xf32> to vector<2x32xf32>
    %362 = arith.mulf %359, %345 : vector<2x32xf32>
    %363 = arith.mulf %358, %360 : vector<2x32xf32>
    %364 = arith.addf %362, %363 : vector<2x32xf32>
    %365 = math.tanh %364 : vector<2x32xf32>
    %366 = arith.mulf %361, %365 : vector<2x32xf32>
    %c2_91 = arith.constant 2 : index
    %c0_92 = arith.constant 0 : index
    %367 = vector.load %arg19[%c2_91, %c0_92] : memref<16x64xf32, #tpu.memory_space<vmem>>, vector<2x32xf32>
    tpu.vector_store %arg19[%c2_91, %c0_92], %366 {strides = array<i32>} : memref<16x64xf32, #tpu.memory_space<vmem>>, vector<2x32xf32>,
    %368 = vector.extract_strided_slice %326 {offsets = [4, 0], sizes = [2, 128], strides = [1, 1]} : vector<16x128xf32> to vector<2x128xf32>
    %cst_93 = arith.constant dense<0.000000e+00> : vector<2x128xf32>
    %369 = tpu.matmul %366, %327, %cst_93 {dimension_numbers = #tpu.dot_dimension_numbers<[1], [0], [0], [1], [0, 0, 1, 1], [], []>} : vector<2x32xf32>, vector<32x128xf32>, vector<2x128xf32> -> vector<2x128xf32>
    %370 = arith.addf %368, %369 : vector<2x128xf32>
    %371 = arith.negf %370 : vector<2x128xf32>
    %372 = math.exp %371 : vector<2x128xf32>
    %cst_94 = arith.constant 1.000000e+00 : f32
    %373 = vector.broadcast %cst_94 : f32 to vector<2x128xf32>
    %374 = arith.addf %373, %372 : vector<2x128xf32>
    %375 = arith.divf %373, %374 : vector<2x128xf32>
    %376 = math.tanh %370 : vector<2x128xf32>
    %377 = vector.extract_strided_slice %375 {offsets = [0, 0], sizes = [2, 32], strides = [1, 1]} : vector<2x128xf32> to vector<2x32xf32>
    %378 = vector.extract_strided_slice %375 {offsets = [0, 32], sizes = [2, 32], strides = [1, 1]} : vector<2x128xf32> to vector<2x32xf32>
    %379 = vector.extract_strided_slice %376 {offsets = [0, 64], sizes = [2, 32], strides = [1, 1]} : vector<2x128xf32> to vector<2x32xf32>
    %380 = vector.extract_strided_slice %375 {offsets = [0, 96], sizes = [2, 32], strides = [1, 1]} : vector<2x128xf32> to vector<2x32xf32>
    %381 = arith.mulf %378, %364 : vector<2x32xf32>
    %382 = arith.mulf %377, %379 : vector<2x32xf32>
    %383 = arith.addf %381, %382 : vector<2x32xf32>
    %384 = math.tanh %383 : vector<2x32xf32>
    %385 = arith.mulf %380, %384 : vector<2x32xf32>
    %c4_95 = arith.constant 4 : index
    %c0_96 = arith.constant 0 : index
    %386 = vector.load %arg19[%c4_95, %c0_96] : memref<16x64xf32, #tpu.memory_space<vmem>>, vector<2x32xf32>
    tpu.vector_store %arg19[%c4_95, %c0_96], %385 {strides = array<i32>} : memref<16x64xf32, #tpu.memory_space<vmem>>, vector<2x32xf32>,
    %387 = vector.extract_strided_slice %326 {offsets = [6, 0], sizes = [2, 128], strides = [1, 1]} : vector<16x128xf32> to vector<2x128xf32>
    %cst_97 = arith.constant dense<0.000000e+00> : vector<2x128xf32>
    %388 = tpu.matmul %385, %327, %cst_97 {dimension_numbers = #tpu.dot_dimension_numbers<[1], [0], [0], [1], [0, 0, 1, 1], [], []>} : vector<2x32xf32>, vector<32x128xf32>, vector<2x128xf32> -> vector<2x128xf32>
    %389 = arith.addf %387, %388 : vector<2x128xf32>
    %390 = arith.negf %389 : vector<2x128xf32>
    %391 = math.exp %390 : vector<2x128xf32>
    %cst_98 = arith.constant 1.000000e+00 : f32
    %392 = vector.broadcast %cst_98 : f32 to vector<2x128xf32>
    %393 = arith.addf %392, %391 : vector<2x128xf32>
    %394 = arith.divf %392, %393 : vector<2x128xf32>
    %395 = math.tanh %389 : vector<2x128xf32>
    %396 = vector.extract_strided_slice %394 {offsets = [0, 0], sizes = [2, 32], strides = [1, 1]} : vector<2x128xf32> to vector<2x32xf32>
    %397 = vector.extract_strided_slice %394 {offsets = [0, 32], sizes = [2, 32], strides = [1, 1]} : vector<2x128xf32> to vector<2x32xf32>
    %398 = vector.extract_strided_slice %395 {offsets = [0, 64], sizes = [2, 32], strides = [1, 1]} : vector<2x128xf32> to vector<2x32xf32>
    %399 = vector.extract_strided_slice %394 {offsets = [0, 96], sizes = [2, 32], strides = [1, 1]} : vector<2x128xf32> to vector<2x32xf32>
    %400 = arith.mulf %397, %383 : vector<2x32xf32>
    %401 = arith.mulf %396, %398 : vector<2x32xf32>
    %402 = arith.addf %400, %401 : vector<2x32xf32>
    %403 = math.tanh %402 : vector<2x32xf32>
    %404 = arith.mulf %399, %403 : vector<2x32xf32>
    %c6_99 = arith.constant 6 : index
    %c0_100 = arith.constant 0 : index
    %405 = vector.load %arg19[%c6_99, %c0_100] : memref<16x64xf32, #tpu.memory_space<vmem>>, vector<2x32xf32>
    tpu.vector_store %arg19[%c6_99, %c0_100], %404 {strides = array<i32>} : memref<16x64xf32, #tpu.memory_space<vmem>>, vector<2x32xf32>,
    %406 = vector.extract_strided_slice %326 {offsets = [8, 0], sizes = [2, 128], strides = [1, 1]} : vector<16x128xf32> to vector<2x128xf32>
    %cst_101 = arith.constant dense<0.000000e+00> : vector<2x128xf32>
    %407 = tpu.matmul %404, %327, %cst_101 {dimension_numbers = #tpu.dot_dimension_numbers<[1], [0], [0], [1], [0, 0, 1, 1], [], []>} : vector<2x32xf32>, vector<32x128xf32>, vector<2x128xf32> -> vector<2x128xf32>
    %408 = arith.addf %406, %407 : vector<2x128xf32>
    %409 = arith.negf %408 : vector<2x128xf32>
    %410 = math.exp %409 : vector<2x128xf32>
    %cst_102 = arith.constant 1.000000e+00 : f32
    %411 = vector.broadcast %cst_102 : f32 to vector<2x128xf32>
    %412 = arith.addf %411, %410 : vector<2x128xf32>
    %413 = arith.divf %411, %412 : vector<2x128xf32>
    %414 = math.tanh %408 : vector<2x128xf32>
    %415 = vector.extract_strided_slice %413 {offsets = [0, 0], sizes = [2, 32], strides = [1, 1]} : vector<2x128xf32> to vector<2x32xf32>
    %416 = vector.extract_strided_slice %413 {offsets = [0, 32], sizes = [2, 32], strides = [1, 1]} : vector<2x128xf32> to vector<2x32xf32>
    %417 = vector.extract_strided_slice %414 {offsets = [0, 64], sizes = [2, 32], strides = [1, 1]} : vector<2x128xf32> to vector<2x32xf32>
    %418 = vector.extract_strided_slice %413 {offsets = [0, 96], sizes = [2, 32], strides = [1, 1]} : vector<2x128xf32> to vector<2x32xf32>
    %419 = arith.mulf %416, %402 : vector<2x32xf32>
    %420 = arith.mulf %415, %417 : vector<2x32xf32>
    %421 = arith.addf %419, %420 : vector<2x32xf32>
    %422 = math.tanh %421 : vector<2x32xf32>
    %423 = arith.mulf %418, %422 : vector<2x32xf32>
    %c8_103 = arith.constant 8 : index
    %c0_104 = arith.constant 0 : index
    %424 = vector.load %arg19[%c8_103, %c0_104] : memref<16x64xf32, #tpu.memory_space<vmem>>, vector<2x32xf32>
    tpu.vector_store %arg19[%c8_103, %c0_104], %423 {strides = array<i32>} : memref<16x64xf32, #tpu.memory_space<vmem>>, vector<2x32xf32>,
    %425 = vector.extract_strided_slice %326 {offsets = [10, 0], sizes = [2, 128], strides = [1, 1]} : vector<16x128xf32> to vector<2x128xf32>
    %cst_105 = arith.constant dense<0.000000e+00> : vector<2x128xf32>
    %426 = tpu.matmul %423, %327, %cst_105 {dimension_numbers = #tpu.dot_dimension_numbers<[1], [0], [0], [1], [0, 0, 1, 1], [], []>} : vector<2x32xf32>, vector<32x128xf32>, vector<2x128xf32> -> vector<2x128xf32>
    %427 = arith.addf %425, %426 : vector<2x128xf32>
    %428 = arith.negf %427 : vector<2x128xf32>
    %429 = math.exp %428 : vector<2x128xf32>
    %cst_106 = arith.constant 1.000000e+00 : f32
    %430 = vector.broadcast %cst_106 : f32 to vector<2x128xf32>
    %431 = arith.addf %430, %429 : vector<2x128xf32>
    %432 = arith.divf %430, %431 : vector<2x128xf32>
    %433 = math.tanh %427 : vector<2x128xf32>
    %434 = vector.extract_strided_slice %432 {offsets = [0, 0], sizes = [2, 32], strides = [1, 1]} : vector<2x128xf32> to vector<2x32xf32>
    %435 = vector.extract_strided_slice %432 {offsets = [0, 32], sizes = [2, 32], strides = [1, 1]} : vector<2x128xf32> to vector<2x32xf32>
    %436 = vector.extract_strided_slice %433 {offsets = [0, 64], sizes = [2, 32], strides = [1, 1]} : vector<2x128xf32> to vector<2x32xf32>
    %437 = vector.extract_strided_slice %432 {offsets = [0, 96], sizes = [2, 32], strides = [1, 1]} : vector<2x128xf32> to vector<2x32xf32>
    %438 = arith.mulf %435, %421 : vector<2x32xf32>
    %439 = arith.mulf %434, %436 : vector<2x32xf32>
    %440 = arith.addf %438, %439 : vector<2x32xf32>
    %441 = math.tanh %440 : vector<2x32xf32>
    %442 = arith.mulf %437, %441 : vector<2x32xf32>
    %c10_107 = arith.constant 10 : index
    %c0_108 = arith.constant 0 : index
    %443 = vector.load %arg19[%c10_107, %c0_108] : memref<16x64xf32, #tpu.memory_space<vmem>>, vector<2x32xf32>
    tpu.vector_store %arg19[%c10_107, %c0_108], %442 {strides = array<i32>} : memref<16x64xf32, #tpu.memory_space<vmem>>, vector<2x32xf32>,
    %444 = vector.extract_strided_slice %326 {offsets = [12, 0], sizes = [2, 128], strides = [1, 1]} : vector<16x128xf32> to vector<2x128xf32>
    %cst_109 = arith.constant dense<0.000000e+00> : vector<2x128xf32>
    %445 = tpu.matmul %442, %327, %cst_109 {dimension_numbers = #tpu.dot_dimension_numbers<[1], [0], [0], [1], [0, 0, 1, 1], [], []>} : vector<2x32xf32>, vector<32x128xf32>, vector<2x128xf32> -> vector<2x128xf32>
    %446 = arith.addf %444, %445 : vector<2x128xf32>
    %447 = arith.negf %446 : vector<2x128xf32>
    %448 = math.exp %447 : vector<2x128xf32>
    %cst_110 = arith.constant 1.000000e+00 : f32
    %449 = vector.broadcast %cst_110 : f32 to vector<2x128xf32>
    %450 = arith.addf %449, %448 : vector<2x128xf32>
    %451 = arith.divf %449, %450 : vector<2x128xf32>
    %452 = math.tanh %446 : vector<2x128xf32>
    %453 = vector.extract_strided_slice %451 {offsets = [0, 0], sizes = [2, 32], strides = [1, 1]} : vector<2x128xf32> to vector<2x32xf32>
    %454 = vector.extract_strided_slice %451 {offsets = [0, 32], sizes = [2, 32], strides = [1, 1]} : vector<2x128xf32> to vector<2x32xf32>
    %455 = vector.extract_strided_slice %452 {offsets = [0, 64], sizes = [2, 32], strides = [1, 1]} : vector<2x128xf32> to vector<2x32xf32>
    %456 = vector.extract_strided_slice %451 {offsets = [0, 96], sizes = [2, 32], strides = [1, 1]} : vector<2x128xf32> to vector<2x32xf32>
    %457 = arith.mulf %454, %440 : vector<2x32xf32>
    %458 = arith.mulf %453, %455 : vector<2x32xf32>
    %459 = arith.addf %457, %458 : vector<2x32xf32>
    %460 = math.tanh %459 : vector<2x32xf32>
    %461 = arith.mulf %456, %460 : vector<2x32xf32>
    %c12_111 = arith.constant 12 : index
    %c0_112 = arith.constant 0 : index
    %462 = vector.load %arg19[%c12_111, %c0_112] : memref<16x64xf32, #tpu.memory_space<vmem>>, vector<2x32xf32>
    tpu.vector_store %arg19[%c12_111, %c0_112], %461 {strides = array<i32>} : memref<16x64xf32, #tpu.memory_space<vmem>>, vector<2x32xf32>,
    %463 = vector.extract_strided_slice %326 {offsets = [14, 0], sizes = [2, 128], strides = [1, 1]} : vector<16x128xf32> to vector<2x128xf32>
    %cst_113 = arith.constant dense<0.000000e+00> : vector<2x128xf32>
    %464 = tpu.matmul %461, %327, %cst_113 {dimension_numbers = #tpu.dot_dimension_numbers<[1], [0], [0], [1], [0, 0, 1, 1], [], []>} : vector<2x32xf32>, vector<32x128xf32>, vector<2x128xf32> -> vector<2x128xf32>
    %465 = arith.addf %463, %464 : vector<2x128xf32>
    %466 = arith.negf %465 : vector<2x128xf32>
    %467 = math.exp %466 : vector<2x128xf32>
    %cst_114 = arith.constant 1.000000e+00 : f32
    %468 = vector.broadcast %cst_114 : f32 to vector<2x128xf32>
    %469 = arith.addf %468, %467 : vector<2x128xf32>
    %470 = arith.divf %468, %469 : vector<2x128xf32>
    %471 = math.tanh %465 : vector<2x128xf32>
    %472 = vector.extract_strided_slice %470 {offsets = [0, 0], sizes = [2, 32], strides = [1, 1]} : vector<2x128xf32> to vector<2x32xf32>
    %473 = vector.extract_strided_slice %470 {offsets = [0, 32], sizes = [2, 32], strides = [1, 1]} : vector<2x128xf32> to vector<2x32xf32>
    %474 = vector.extract_strided_slice %471 {offsets = [0, 64], sizes = [2, 32], strides = [1, 1]} : vector<2x128xf32> to vector<2x32xf32>
    %475 = vector.extract_strided_slice %470 {offsets = [0, 96], sizes = [2, 32], strides = [1, 1]} : vector<2x128xf32> to vector<2x32xf32>
    %476 = arith.mulf %473, %459 : vector<2x32xf32>
    %477 = arith.mulf %472, %474 : vector<2x32xf32>
    %478 = arith.addf %476, %477 : vector<2x32xf32>
    %479 = math.tanh %478 : vector<2x32xf32>
    %480 = arith.mulf %475, %479 : vector<2x32xf32>
    %c14_115 = arith.constant 14 : index
    %c0_116 = arith.constant 0 : index
    %481 = vector.load %arg19[%c14_115, %c0_116] : memref<16x64xf32, #tpu.memory_space<vmem>>, vector<2x32xf32>
    tpu.vector_store %arg19[%c14_115, %c0_116], %480 {strides = array<i32>} : memref<16x64xf32, #tpu.memory_space<vmem>>, vector<2x32xf32>,
    %c0_117 = arith.constant 0 : index
    %c0_118 = arith.constant 0 : index
    %482 = vector.load %arg10[%c0_117, %c0_118] : memref<64x128xf32, #tpu.memory_space<vmem>>, vector<64x128xf32>
    %cst_119 = arith.constant dense<0.000000e+00> : vector<16x128xf32>
    %483 = tpu.matmul %321, %482, %cst_119 {dimension_numbers = #tpu.dot_dimension_numbers<[1], [0], [0], [1], [0, 0, 1, 1], [], []>} : vector<16x64xf32>, vector<64x128xf32>, vector<16x128xf32> -> vector<16x128xf32>
    %c0_120 = arith.constant 0 : index
    %c0_121 = arith.constant 0 : index
    %484 = vector.load %arg12[%c0_120, %c0_121] : memref<1x128xf32, #tpu.memory_space<vmem>>, vector<1x128xf32>
    %485 = vector.broadcast %484 : vector<1x128xf32> to vector<16x128xf32>
    %486 = arith.addf %483, %485 : vector<16x128xf32>
    %c0_122 = arith.constant 0 : index
    %c0_123 = arith.constant 0 : index
    %487 = vector.load %arg11[%c0_122, %c0_123] : memref<32x128xf32, #tpu.memory_space<vmem>>, vector<32x128xf32>
    %cst_124 = arith.constant 0.000000e+00 : f32
    %488 = vector.broadcast %cst_124 : f32 to vector<2x32xf32>
    %cst_125 = arith.constant 0.000000e+00 : f32
    %489 = vector.broadcast %cst_125 : f32 to vector<2x32xf32>
    %490 = vector.extract_strided_slice %486 {offsets = [14, 0], sizes = [2, 128], strides = [1, 1]} : vector<16x128xf32> to vector<2x128xf32>
    %cst_126 = arith.constant dense<0.000000e+00> : vector<2x128xf32>
    %491 = tpu.matmul %488, %487, %cst_126 {dimension_numbers = #tpu.dot_dimension_numbers<[1], [0], [0], [1], [0, 0, 1, 1], [], []>} : vector<2x32xf32>, vector<32x128xf32>, vector<2x128xf32> -> vector<2x128xf32>
    %492 = arith.addf %490, %491 : vector<2x128xf32>
    %493 = arith.negf %492 : vector<2x128xf32>
    %494 = math.exp %493 : vector<2x128xf32>
    %cst_127 = arith.constant 1.000000e+00 : f32
    %495 = vector.broadcast %cst_127 : f32 to vector<2x128xf32>
    %496 = arith.addf %495, %494 : vector<2x128xf32>
    %497 = arith.divf %495, %496 : vector<2x128xf32>
    %498 = math.tanh %492 : vector<2x128xf32>
    %499 = vector.extract_strided_slice %497 {offsets = [0, 0], sizes = [2, 32], strides = [1, 1]} : vector<2x128xf32> to vector<2x32xf32>
    %500 = vector.extract_strided_slice %497 {offsets = [0, 32], sizes = [2, 32], strides = [1, 1]} : vector<2x128xf32> to vector<2x32xf32>
    %501 = vector.extract_strided_slice %498 {offsets = [0, 64], sizes = [2, 32], strides = [1, 1]} : vector<2x128xf32> to vector<2x32xf32>
    %502 = vector.extract_strided_slice %497 {offsets = [0, 96], sizes = [2, 32], strides = [1, 1]} : vector<2x128xf32> to vector<2x32xf32>
    %503 = arith.mulf %500, %489 : vector<2x32xf32>
    %504 = arith.mulf %499, %501 : vector<2x32xf32>
    %505 = arith.addf %503, %504 : vector<2x32xf32>
    %506 = math.tanh %505 : vector<2x32xf32>
    %507 = arith.mulf %502, %506 : vector<2x32xf32>
    %c14_128 = arith.constant 14 : index
    %c32_129 = arith.constant 32 : index
    %508 = vector.load %arg19[%c14_128, %c32_129] : memref<16x64xf32, #tpu.memory_space<vmem>>, vector<2x32xf32>
    tpu.vector_store %arg19[%c14_128, %c32_129], %507 {strides = array<i32>} : memref<16x64xf32, #tpu.memory_space<vmem>>, vector<2x32xf32>,
    %509 = vector.extract_strided_slice %486 {offsets = [12, 0], sizes = [2, 128], strides = [1, 1]} : vector<16x128xf32> to vector<2x128xf32>
    %cst_130 = arith.constant dense<0.000000e+00> : vector<2x128xf32>
    %510 = tpu.matmul %507, %487, %cst_130 {dimension_numbers = #tpu.dot_dimension_numbers<[1], [0], [0], [1], [0, 0, 1, 1], [], []>} : vector<2x32xf32>, vector<32x128xf32>, vector<2x128xf32> -> vector<2x128xf32>
    %511 = arith.addf %509, %510 : vector<2x128xf32>
    %512 = arith.negf %511 : vector<2x128xf32>
    %513 = math.exp %512 : vector<2x128xf32>
    %cst_131 = arith.constant 1.000000e+00 : f32
    %514 = vector.broadcast %cst_131 : f32 to vector<2x128xf32>
    %515 = arith.addf %514, %513 : vector<2x128xf32>
    %516 = arith.divf %514, %515 : vector<2x128xf32>
    %517 = math.tanh %511 : vector<2x128xf32>
    %518 = vector.extract_strided_slice %516 {offsets = [0, 0], sizes = [2, 32], strides = [1, 1]} : vector<2x128xf32> to vector<2x32xf32>
    %519 = vector.extract_strided_slice %516 {offsets = [0, 32], sizes = [2, 32], strides = [1, 1]} : vector<2x128xf32> to vector<2x32xf32>
    %520 = vector.extract_strided_slice %517 {offsets = [0, 64], sizes = [2, 32], strides = [1, 1]} : vector<2x128xf32> to vector<2x32xf32>
    %521 = vector.extract_strided_slice %516 {offsets = [0, 96], sizes = [2, 32], strides = [1, 1]} : vector<2x128xf32> to vector<2x32xf32>
    %522 = arith.mulf %519, %505 : vector<2x32xf32>
    %523 = arith.mulf %518, %520 : vector<2x32xf32>
    %524 = arith.addf %522, %523 : vector<2x32xf32>
    %525 = math.tanh %524 : vector<2x32xf32>
    %526 = arith.mulf %521, %525 : vector<2x32xf32>
    %c12_132 = arith.constant 12 : index
    %c32_133 = arith.constant 32 : index
    %527 = vector.load %arg19[%c12_132, %c32_133] : memref<16x64xf32, #tpu.memory_space<vmem>>, vector<2x32xf32>
    tpu.vector_store %arg19[%c12_132, %c32_133], %526 {strides = array<i32>} : memref<16x64xf32, #tpu.memory_space<vmem>>, vector<2x32xf32>,
    %528 = vector.extract_strided_slice %486 {offsets = [10, 0], sizes = [2, 128], strides = [1, 1]} : vector<16x128xf32> to vector<2x128xf32>
    %cst_134 = arith.constant dense<0.000000e+00> : vector<2x128xf32>
    %529 = tpu.matmul %526, %487, %cst_134 {dimension_numbers = #tpu.dot_dimension_numbers<[1], [0], [0], [1], [0, 0, 1, 1], [], []>} : vector<2x32xf32>, vector<32x128xf32>, vector<2x128xf32> -> vector<2x128xf32>
    %530 = arith.addf %528, %529 : vector<2x128xf32>
    %531 = arith.negf %530 : vector<2x128xf32>
    %532 = math.exp %531 : vector<2x128xf32>
    %cst_135 = arith.constant 1.000000e+00 : f32
    %533 = vector.broadcast %cst_135 : f32 to vector<2x128xf32>
    %534 = arith.addf %533, %532 : vector<2x128xf32>
    %535 = arith.divf %533, %534 : vector<2x128xf32>
    %536 = math.tanh %530 : vector<2x128xf32>
    %537 = vector.extract_strided_slice %535 {offsets = [0, 0], sizes = [2, 32], strides = [1, 1]} : vector<2x128xf32> to vector<2x32xf32>
    %538 = vector.extract_strided_slice %535 {offsets = [0, 32], sizes = [2, 32], strides = [1, 1]} : vector<2x128xf32> to vector<2x32xf32>
    %539 = vector.extract_strided_slice %536 {offsets = [0, 64], sizes = [2, 32], strides = [1, 1]} : vector<2x128xf32> to vector<2x32xf32>
    %540 = vector.extract_strided_slice %535 {offsets = [0, 96], sizes = [2, 32], strides = [1, 1]} : vector<2x128xf32> to vector<2x32xf32>
    %541 = arith.mulf %538, %524 : vector<2x32xf32>
    %542 = arith.mulf %537, %539 : vector<2x32xf32>
    %543 = arith.addf %541, %542 : vector<2x32xf32>
    %544 = math.tanh %543 : vector<2x32xf32>
    %545 = arith.mulf %540, %544 : vector<2x32xf32>
    %c10_136 = arith.constant 10 : index
    %c32_137 = arith.constant 32 : index
    %546 = vector.load %arg19[%c10_136, %c32_137] : memref<16x64xf32, #tpu.memory_space<vmem>>, vector<2x32xf32>
    tpu.vector_store %arg19[%c10_136, %c32_137], %545 {strides = array<i32>} : memref<16x64xf32, #tpu.memory_space<vmem>>, vector<2x32xf32>,
    %547 = vector.extract_strided_slice %486 {offsets = [8, 0], sizes = [2, 128], strides = [1, 1]} : vector<16x128xf32> to vector<2x128xf32>
    %cst_138 = arith.constant dense<0.000000e+00> : vector<2x128xf32>
    %548 = tpu.matmul %545, %487, %cst_138 {dimension_numbers = #tpu.dot_dimension_numbers<[1], [0], [0], [1], [0, 0, 1, 1], [], []>} : vector<2x32xf32>, vector<32x128xf32>, vector<2x128xf32> -> vector<2x128xf32>
    %549 = arith.addf %547, %548 : vector<2x128xf32>
    %550 = arith.negf %549 : vector<2x128xf32>
    %551 = math.exp %550 : vector<2x128xf32>
    %cst_139 = arith.constant 1.000000e+00 : f32
    %552 = vector.broadcast %cst_139 : f32 to vector<2x128xf32>
    %553 = arith.addf %552, %551 : vector<2x128xf32>
    %554 = arith.divf %552, %553 : vector<2x128xf32>
    %555 = math.tanh %549 : vector<2x128xf32>
    %556 = vector.extract_strided_slice %554 {offsets = [0, 0], sizes = [2, 32], strides = [1, 1]} : vector<2x128xf32> to vector<2x32xf32>
    %557 = vector.extract_strided_slice %554 {offsets = [0, 32], sizes = [2, 32], strides = [1, 1]} : vector<2x128xf32> to vector<2x32xf32>
    %558 = vector.extract_strided_slice %555 {offsets = [0, 64], sizes = [2, 32], strides = [1, 1]} : vector<2x128xf32> to vector<2x32xf32>
    %559 = vector.extract_strided_slice %554 {offsets = [0, 96], sizes = [2, 32], strides = [1, 1]} : vector<2x128xf32> to vector<2x32xf32>
    %560 = arith.mulf %557, %543 : vector<2x32xf32>
    %561 = arith.mulf %556, %558 : vector<2x32xf32>
    %562 = arith.addf %560, %561 : vector<2x32xf32>
    %563 = math.tanh %562 : vector<2x32xf32>
    %564 = arith.mulf %559, %563 : vector<2x32xf32>
    %c8_140 = arith.constant 8 : index
    %c32_141 = arith.constant 32 : index
    %565 = vector.load %arg19[%c8_140, %c32_141] : memref<16x64xf32, #tpu.memory_space<vmem>>, vector<2x32xf32>
    tpu.vector_store %arg19[%c8_140, %c32_141], %564 {strides = array<i32>} : memref<16x64xf32, #tpu.memory_space<vmem>>, vector<2x32xf32>,
    %566 = vector.extract_strided_slice %486 {offsets = [6, 0], sizes = [2, 128], strides = [1, 1]} : vector<16x128xf32> to vector<2x128xf32>
    %cst_142 = arith.constant dense<0.000000e+00> : vector<2x128xf32>
    %567 = tpu.matmul %564, %487, %cst_142 {dimension_numbers = #tpu.dot_dimension_numbers<[1], [0], [0], [1], [0, 0, 1, 1], [], []>} : vector<2x32xf32>, vector<32x128xf32>, vector<2x128xf32> -> vector<2x128xf32>
    %568 = arith.addf %566, %567 : vector<2x128xf32>
    %569 = arith.negf %568 : vector<2x128xf32>
    %570 = math.exp %569 : vector<2x128xf32>
    %cst_143 = arith.constant 1.000000e+00 : f32
    %571 = vector.broadcast %cst_143 : f32 to vector<2x128xf32>
    %572 = arith.addf %571, %570 : vector<2x128xf32>
    %573 = arith.divf %571, %572 : vector<2x128xf32>
    %574 = math.tanh %568 : vector<2x128xf32>
    %575 = vector.extract_strided_slice %573 {offsets = [0, 0], sizes = [2, 32], strides = [1, 1]} : vector<2x128xf32> to vector<2x32xf32>
    %576 = vector.extract_strided_slice %573 {offsets = [0, 32], sizes = [2, 32], strides = [1, 1]} : vector<2x128xf32> to vector<2x32xf32>
    %577 = vector.extract_strided_slice %574 {offsets = [0, 64], sizes = [2, 32], strides = [1, 1]} : vector<2x128xf32> to vector<2x32xf32>
    %578 = vector.extract_strided_slice %573 {offsets = [0, 96], sizes = [2, 32], strides = [1, 1]} : vector<2x128xf32> to vector<2x32xf32>
    %579 = arith.mulf %576, %562 : vector<2x32xf32>
    %580 = arith.mulf %575, %577 : vector<2x32xf32>
    %581 = arith.addf %579, %580 : vector<2x32xf32>
    %582 = math.tanh %581 : vector<2x32xf32>
    %583 = arith.mulf %578, %582 : vector<2x32xf32>
    %c6_144 = arith.constant 6 : index
    %c32_145 = arith.constant 32 : index
    %584 = vector.load %arg19[%c6_144, %c32_145] : memref<16x64xf32, #tpu.memory_space<vmem>>, vector<2x32xf32>
    tpu.vector_store %arg19[%c6_144, %c32_145], %583 {strides = array<i32>} : memref<16x64xf32, #tpu.memory_space<vmem>>, vector<2x32xf32>,
    %585 = vector.extract_strided_slice %486 {offsets = [4, 0], sizes = [2, 128], strides = [1, 1]} : vector<16x128xf32> to vector<2x128xf32>
    %cst_146 = arith.constant dense<0.000000e+00> : vector<2x128xf32>
    %586 = tpu.matmul %583, %487, %cst_146 {dimension_numbers = #tpu.dot_dimension_numbers<[1], [0], [0], [1], [0, 0, 1, 1], [], []>} : vector<2x32xf32>, vector<32x128xf32>, vector<2x128xf32> -> vector<2x128xf32>
    %587 = arith.addf %585, %586 : vector<2x128xf32>
    %588 = arith.negf %587 : vector<2x128xf32>
    %589 = math.exp %588 : vector<2x128xf32>
    %cst_147 = arith.constant 1.000000e+00 : f32
    %590 = vector.broadcast %cst_147 : f32 to vector<2x128xf32>
    %591 = arith.addf %590, %589 : vector<2x128xf32>
    %592 = arith.divf %590, %591 : vector<2x128xf32>
    %593 = math.tanh %587 : vector<2x128xf32>
    %594 = vector.extract_strided_slice %592 {offsets = [0, 0], sizes = [2, 32], strides = [1, 1]} : vector<2x128xf32> to vector<2x32xf32>
    %595 = vector.extract_strided_slice %592 {offsets = [0, 32], sizes = [2, 32], strides = [1, 1]} : vector<2x128xf32> to vector<2x32xf32>
    %596 = vector.extract_strided_slice %593 {offsets = [0, 64], sizes = [2, 32], strides = [1, 1]} : vector<2x128xf32> to vector<2x32xf32>
    %597 = vector.extract_strided_slice %592 {offsets = [0, 96], sizes = [2, 32], strides = [1, 1]} : vector<2x128xf32> to vector<2x32xf32>
    %598 = arith.mulf %595, %581 : vector<2x32xf32>
    %599 = arith.mulf %594, %596 : vector<2x32xf32>
    %600 = arith.addf %598, %599 : vector<2x32xf32>
    %601 = math.tanh %600 : vector<2x32xf32>
    %602 = arith.mulf %597, %601 : vector<2x32xf32>
    %c4_148 = arith.constant 4 : index
    %c32_149 = arith.constant 32 : index
    %603 = vector.load %arg19[%c4_148, %c32_149] : memref<16x64xf32, #tpu.memory_space<vmem>>, vector<2x32xf32>
    tpu.vector_store %arg19[%c4_148, %c32_149], %602 {strides = array<i32>} : memref<16x64xf32, #tpu.memory_space<vmem>>, vector<2x32xf32>,
    %604 = vector.extract_strided_slice %486 {offsets = [2, 0], sizes = [2, 128], strides = [1, 1]} : vector<16x128xf32> to vector<2x128xf32>
    %cst_150 = arith.constant dense<0.000000e+00> : vector<2x128xf32>
    %605 = tpu.matmul %602, %487, %cst_150 {dimension_numbers = #tpu.dot_dimension_numbers<[1], [0], [0], [1], [0, 0, 1, 1], [], []>} : vector<2x32xf32>, vector<32x128xf32>, vector<2x128xf32> -> vector<2x128xf32>
    %606 = arith.addf %604, %605 : vector<2x128xf32>
    %607 = arith.negf %606 : vector<2x128xf32>
    %608 = math.exp %607 : vector<2x128xf32>
    %cst_151 = arith.constant 1.000000e+00 : f32
    %609 = vector.broadcast %cst_151 : f32 to vector<2x128xf32>
    %610 = arith.addf %609, %608 : vector<2x128xf32>
    %611 = arith.divf %609, %610 : vector<2x128xf32>
    %612 = math.tanh %606 : vector<2x128xf32>
    %613 = vector.extract_strided_slice %611 {offsets = [0, 0], sizes = [2, 32], strides = [1, 1]} : vector<2x128xf32> to vector<2x32xf32>
    %614 = vector.extract_strided_slice %611 {offsets = [0, 32], sizes = [2, 32], strides = [1, 1]} : vector<2x128xf32> to vector<2x32xf32>
    %615 = vector.extract_strided_slice %612 {offsets = [0, 64], sizes = [2, 32], strides = [1, 1]} : vector<2x128xf32> to vector<2x32xf32>
    %616 = vector.extract_strided_slice %611 {offsets = [0, 96], sizes = [2, 32], strides = [1, 1]} : vector<2x128xf32> to vector<2x32xf32>
    %617 = arith.mulf %614, %600 : vector<2x32xf32>
    %618 = arith.mulf %613, %615 : vector<2x32xf32>
    %619 = arith.addf %617, %618 : vector<2x32xf32>
    %620 = math.tanh %619 : vector<2x32xf32>
    %621 = arith.mulf %616, %620 : vector<2x32xf32>
    %c2_152 = arith.constant 2 : index
    %c32_153 = arith.constant 32 : index
    %622 = vector.load %arg19[%c2_152, %c32_153] : memref<16x64xf32, #tpu.memory_space<vmem>>, vector<2x32xf32>
    tpu.vector_store %arg19[%c2_152, %c32_153], %621 {strides = array<i32>} : memref<16x64xf32, #tpu.memory_space<vmem>>, vector<2x32xf32>,
    %623 = vector.extract_strided_slice %486 {offsets = [0, 0], sizes = [2, 128], strides = [1, 1]} : vector<16x128xf32> to vector<2x128xf32>
    %cst_154 = arith.constant dense<0.000000e+00> : vector<2x128xf32>
    %624 = tpu.matmul %621, %487, %cst_154 {dimension_numbers = #tpu.dot_dimension_numbers<[1], [0], [0], [1], [0, 0, 1, 1], [], []>} : vector<2x32xf32>, vector<32x128xf32>, vector<2x128xf32> -> vector<2x128xf32>
    %625 = arith.addf %623, %624 : vector<2x128xf32>
    %626 = arith.negf %625 : vector<2x128xf32>
    %627 = math.exp %626 : vector<2x128xf32>
    %cst_155 = arith.constant 1.000000e+00 : f32
    %628 = vector.broadcast %cst_155 : f32 to vector<2x128xf32>
    %629 = arith.addf %628, %627 : vector<2x128xf32>
    %630 = arith.divf %628, %629 : vector<2x128xf32>
    %631 = math.tanh %625 : vector<2x128xf32>
    %632 = vector.extract_strided_slice %630 {offsets = [0, 0], sizes = [2, 32], strides = [1, 1]} : vector<2x128xf32> to vector<2x32xf32>
    %633 = vector.extract_strided_slice %630 {offsets = [0, 32], sizes = [2, 32], strides = [1, 1]} : vector<2x128xf32> to vector<2x32xf32>
    %634 = vector.extract_strided_slice %631 {offsets = [0, 64], sizes = [2, 32], strides = [1, 1]} : vector<2x128xf32> to vector<2x32xf32>
    %635 = vector.extract_strided_slice %630 {offsets = [0, 96], sizes = [2, 32], strides = [1, 1]} : vector<2x128xf32> to vector<2x32xf32>
    %636 = arith.mulf %633, %619 : vector<2x32xf32>
    %637 = arith.mulf %632, %634 : vector<2x32xf32>
    %638 = arith.addf %636, %637 : vector<2x32xf32>
    %639 = math.tanh %638 : vector<2x32xf32>
    %640 = arith.mulf %635, %639 : vector<2x32xf32>
    %c0_156 = arith.constant 0 : index
    %c32_157 = arith.constant 32 : index
    %641 = vector.load %arg19[%c0_156, %c32_157] : memref<16x64xf32, #tpu.memory_space<vmem>>, vector<2x32xf32>
    tpu.vector_store %arg19[%c0_156, %c32_157], %640 {strides = array<i32>} : memref<16x64xf32, #tpu.memory_space<vmem>>, vector<2x32xf32>,
    %c0_158 = arith.constant 0 : index
    %c0_159 = arith.constant 0 : index
    %642 = vector.load %arg19[%c0_158, %c0_159] : memref<16x64xf32, #tpu.memory_space<vmem>>, vector<16x64xf32>
    %c0_160 = arith.constant 0 : index
    %c0_161 = arith.constant 0 : index
    %643 = vector.load %arg13[%c0_160, %c0_161] : memref<64x32xf32, #tpu.memory_space<vmem>>, vector<64x32xf32>
    %cst_162 = arith.constant dense<0.000000e+00> : vector<16x32xf32>
    %644 = tpu.matmul %642, %643, %cst_162 {dimension_numbers = #tpu.dot_dimension_numbers<[1], [0], [0], [1], [0, 0, 1, 1], [], []>} : vector<16x64xf32>, vector<64x32xf32>, vector<16x32xf32> -> vector<16x32xf32>
    %c0_163 = arith.constant 0 : index
    %c0_164 = arith.constant 0 : index
    %645 = vector.load %arg14[%c0_163, %c0_164] : memref<1x32xf32, #tpu.memory_space<vmem>>, vector<1x32xf32>
    %646 = vector.broadcast %645 : vector<1x32xf32> to vector<16x32xf32>
    %647 = arith.addf %644, %646 : vector<16x32xf32>
    %cst_165 = arith.constant dense<0.000000e+00> : vector<16xf32>
    %648 = vector.multi_reduction <add>, %647, %cst_165 [1] : vector<16x32xf32> to vector<16xf32>
    %649 = vector.shape_cast %648 : vector<16xf32> to vector<16x1xf32>
    %cst_166 = arith.constant 3.200000e+01 : f32
    %650 = vector.broadcast %cst_166 : f32 to vector<16x1xf32>
    %651 = arith.divf %649, %650 : vector<16x1xf32>
    %652 = vector.broadcast %651 : vector<16x1xf32> to vector<16x32xf32>
    %653 = arith.subf %647, %652 : vector<16x32xf32>
    %654 = arith.mulf %653, %653 : vector<16x32xf32>
    %cst_167 = arith.constant dense<0.000000e+00> : vector<16xf32>
    %655 = vector.multi_reduction <add>, %654, %cst_167 [1] : vector<16x32xf32> to vector<16xf32>
    %656 = vector.shape_cast %655 : vector<16xf32> to vector<16x1xf32>
    %cst_168 = arith.constant 3.200000e+01 : f32
    %657 = vector.broadcast %cst_168 : f32 to vector<16x1xf32>
    %658 = arith.divf %656, %657 : vector<16x1xf32>
    %659 = vector.broadcast %651 : vector<16x1xf32> to vector<16x32xf32>
    %660 = arith.subf %647, %659 : vector<16x32xf32>
    %cst_169 = arith.constant 9.99999974E-6 : f32
    %661 = vector.broadcast %cst_169 : f32 to vector<16x1xf32>
    %662 = arith.addf %658, %661 : vector<16x1xf32>
    %663 = math.rsqrt %662 : vector<16x1xf32>
    %664 = vector.broadcast %663 : vector<16x1xf32> to vector<16x32xf32>
    %665 = arith.mulf %660, %664 : vector<16x32xf32>
    %c0_170 = arith.constant 0 : index
    %c0_171 = arith.constant 0 : index
    %666 = vector.load %arg15[%c0_170, %c0_171] : memref<1x32xf32, #tpu.memory_space<vmem>>, vector<1x32xf32>
    %667 = vector.broadcast %666 : vector<1x32xf32> to vector<16x32xf32>
    %668 = arith.mulf %665, %667 : vector<16x32xf32>
    %c0_172 = arith.constant 0 : index
    %c0_173 = arith.constant 0 : index
    %669 = vector.load %arg16[%c0_172, %c0_173] : memref<1x32xf32, #tpu.memory_space<vmem>>, vector<1x32xf32>
    %670 = vector.broadcast %669 : vector<1x32xf32> to vector<16x32xf32>
    %671 = arith.addf %668, %670 : vector<16x32xf32>
    %cst_174 = arith.constant 0.000000e+00 : f32
    %672 = vector.broadcast %cst_174 : f32 to vector<16x32xf32>
    %673 = arith.maximumf %671, %672 : vector<16x32xf32>
    %c0_175 = arith.constant 0 : index
    %c0_176 = arith.constant 0 : index
    %674 = vector.load %arg17[%c0_175, %c0_176] : memref<16x32xf32, #tpu.memory_space<vmem>>, vector<16x32xf32>
    tpu.vector_store %arg17[%c0_175, %c0_176], %673 {strides = array<i32>} : memref<16x32xf32, #tpu.memory_space<vmem>>, vector<16x32xf32>,
    return
  }
}

</mosaic_0001>

<bundles_post_ra>
// kernel: tpu_custom_call.1
= control target key start
LH: loop header
LB: loop body
LE: loop exit
PB: predicated region body
PF: predicated region fallthrough
CT: control target
= control target key end

     0   :  { %s6638_s0 = inlined_call_operand.hbm [shape: f32[16,32], index: 0, kind: input, shape index: {}]   ;;  %s6639_s1 = inlined_call_operand.hbm [shape: f32[32,128], index: 1, kind: input, shape index: {}]   ;;  %s6640_s2 = inlined_call_operand.hbm [shape: f32[32,128], index: 2, kind: input, shape index: {}]   ;;  %s6641_s3 = inlined_call_operand.vmem [shape: f32[1,128], index: 3, kind: input, shape index: {}]   ;;  %s6642_s4 = inlined_call_operand.hbm [shape: f32[32,128], index: 4, kind: input, shape index: {}]   ;;  %s6643_s5 = inlined_call_operand.hbm [shape: f32[32,128], index: 5, kind: input, shape index: {}]   ;;  %s6644_s6 = inlined_call_operand.vmem [shape: f32[1,128], index: 6, kind: input, shape index: {}]   ;;  %s6645_s7 = inlined_call_operand.vmem [shape: f32[64,128], index: 7, kind: input, shape index: {}]   ;;  %s6646_s8 = inlined_call_operand.hbm [shape: f32[32,128], index: 8, kind: input, shape index: {}]   ;;  %s6647_s9 = inlined_call_operand.hbm [shape: f32[1,128], index: 9, kind: input, shape index: {}]   ;;  %s6648_s10 = inlined_call_operand.vmem [shape: f32[64,128], index: 10, kind: input, shape index: {}]   ;;  %s6649_s11 = inlined_call_operand.hbm [shape: f32[32,128], index: 11, kind: input, shape index: {}]   ;;  %s6650_s12 = inlined_call_operand.vmem [shape: f32[1,128], index: 12, kind: input, shape index: {}]   ;;  %s6651_s13 = inlined_call_operand.vmem [shape: f32[64,32], index: 13, kind: input, shape index: {}]   ;;  %s6652_s14 = inlined_call_operand.vmem [shape: f32[1,32], index: 14, kind: input, shape index: {}]   ;;  %s6653_s15 = inlined_call_operand.vmem [shape: f32[1,32], index: 15, kind: input, shape index: {}]   ;;  %s6654_s16 = inlined_call_operand.vmem [shape: f32[1,32], index: 16, kind: input, shape index: {}]   ;;  %s6655_s17 = inlined_call_operand.hbm [shape: f32[16,32], index: 17, kind: output, shape index: {}]  }
   0x1   :  { %6659 = sst [smem:[#allocation25_spill]] %s6638_s0 }
   0x2   :  { %6660 = sst [smem:[#allocation26_spill]] %s6639_s1 }
   0x3   :  { %6661 = sst [smem:[#allocation27_spill]] %s6655_s17 }
   0x4   :  { %22 = vsyncpa [#allocation5], 0 }
   0x5   :  { %23 = vsyncpa [#allocation8], 0 }
   0x6   :  { %24 = vsyncpa [#allocation11], 0 }
   0x7   :  { %25 = vsyncpa [#allocation14], 0 }
   0x8   :  { %26 = vsyncpa [#allocation17], 0 }
   0x9   :  { %27 = vsyncpa [#allocation6], 0  ;;  %s5663_s24 = smov [#allocation7]   ;;  %s5664_s26 = smov [#allocation10]  }
   0xa   :  { %s45_s25 = sshll.u32 %s5663_s24, 4  ;;  %s71_s27 = sshll.u32 %s5664_s26, 4  ;;  %s46_s25 = int_to_ptr.vmem [resolvable:$true] %s45_s25  ;;  %s5769_s27 = int_to_ptr.vmem [resolvable:$true] %s71_s27 }
   0xb   :  { %s6662_s0 = sld [smem:[#allocation26_spill]] }
  0x11   :  { %s5453_s30 = scalar_lea.hbm %s6662_s0, 512 }
  0x12   :  { %p5454_p0 = scmp.ne.s32.totalorder %s6662_s0, %s5453_s30  ;;  %p5457_p1 = scmp.lt.u32.totalorder %s5453_s30, %s6662_s0 }
  0x14   :  { %p5459_p2 = pnand %p5457_p1, %p5454_p0 }
  0x16   :  { %5462 = shalt.err (!%p5459_p2)
}
  0x17   :  { %s5463_s21 = scalar_lea.vmem %s46_s25, 512  ;;  %p5468_p4 = scmp.lt.s32.totalorder %s46_s25, %s46_s25 }
  0x18   :  { %p5464_p3 = scmp.ne.s32.totalorder %s46_s25, %s5463_s21  ;;  %p5469_p5 = scmp.lt.s32.totalorder %s5463_s21, %s5463_s21 }
  0x1a   :  { %p5470_p6 = por %p5469_p5, %p5468_p4 }
  0x1c   :  { %p5471_p7 = pnand %p5470_p6, %p5464_p3 }
  0x1e   :  { %5474 = shalt.err (!%p5471_p7)
}
  0x1f   :  { %s5665_s22 = smov 128   ;;  %s5666_s23 = smov 8  }
  0x20   :  { %51 = dma.hbm_to_vmem [thread:$0]  %s6662_s0, 512, %s46_s25, [#allocation8], %s5665_s22, %s5665_s22, %s5666_s23  }
  0x21   :  { %s5475_s30 = scalar_lea.hbm %s6642_s4, 512 }
  0x22   :  { %p5476_p8 = scmp.ne.s32.totalorder %s6642_s4, %s5475_s30  ;;  %p5479_p9 = scmp.lt.u32.totalorder %s5475_s30, %s6642_s4 }
  0x24   :  { %p5481_p10 = pnand %p5479_p9, %p5476_p8 }
  0x26   :  { %5484 = shalt.err (!%p5481_p10)
}
  0x27   :  { %s5485_s21 = scalar_lea.vmem %s5769_s27, 512  ;;  %p5490_p12 = scmp.lt.s32.totalorder %s5769_s27, %s5769_s27 }
  0x28   :  { %p5486_p11 = scmp.ne.s32.totalorder %s5769_s27, %s5485_s21  ;;  %p5491_p13 = scmp.lt.s32.totalorder %s5485_s21, %s5485_s21 }
  0x2a   :  { %p5492_p0 = por %p5491_p13, %p5490_p12 }
  0x2c   :  { %p5493_p1 = pnand %p5492_p0, %p5486_p11 }
  0x2e   :  { %5496 = shalt.err (!%p5493_p1)
}
  0x2f   :  { %77 = dma.hbm_to_vmem [thread:$0]  %s6642_s4, 512, %s5769_s27, [#allocation11], %s5665_s22, %s5665_s22, %s5666_s23  }
  0x30   :  { %s5667_s24 = smov [#allocation13]   ;;  %s5668_s28 = smov [#allocation4]  }
  0x31   :  { %s99_s26 = sshll.u32 %s5667_s24, 4  ;;  %s33_s29 = sshll.u32 %s5668_s28, 4  ;;  %s100_s26 = int_to_ptr.vmem [resolvable:$true] %s99_s26  ;;  %s5806_s29 = int_to_ptr.vmem [resolvable:$true] %s33_s29 }
  0x32   :  { %s5497_s19 = scalar_lea.hbm %s6646_s8, 512 }
  0x33   :  { %p5498_p2 = scmp.ne.s32.totalorder %s6646_s8, %s5497_s19  ;;  %p5501_p3 = scmp.lt.u32.totalorder %s5497_s19, %s6646_s8 }
  0x35   :  { %p5503_p4 = pnand %p5501_p3, %p5498_p2 }
  0x37   :  { %5506 = shalt.err (!%p5503_p4)
}
  0x38   :  { %s5507_s4 = scalar_lea.vmem %s100_s26, 512  ;;  %p5512_p6 = scmp.lt.s32.totalorder %s100_s26, %s100_s26 }
  0x39   :  { %p5508_p5 = scmp.ne.s32.totalorder %s100_s26, %s5507_s4  ;;  %p5513_p7 = scmp.lt.s32.totalorder %s5507_s4, %s5507_s4 }
  0x3b   :  { %p5514_p8 = por %p5513_p7, %p5512_p6 }
  0x3d   :  { %p5515_p9 = pnand %p5514_p8, %p5508_p5 }
  0x3f   :  { %5518 = shalt.err (!%p5515_p9)
}
  0x40   :  { %105 = dma.hbm_to_vmem [thread:$0]  %s6646_s8, 512, %s100_s26, [#allocation14], %s5665_s22, %s5665_s22, %s5666_s23  }
  0x41   :  { %s6663_s17 = sld [smem:[#allocation25_spill]] }
  0x47   :  { %s5519_s28 = scalar_lea.hbm %s6663_s17, 256 }
  0x48   :  { %p5520_p10 = scmp.ne.s32.totalorder %s6663_s17, %s5519_s28  ;;  %p5523_p11 = scmp.lt.u32.totalorder %s5519_s28, %s6663_s17 }
  0x4a   :  { %p5525_p12 = pnand %p5523_p11, %p5520_p10 }
  0x4c   :  { %5528 = shalt.err (!%p5525_p12)
}
  0x4d   :  { %s5529_s20 = scalar_lea.vmem %s5806_s29, 256  ;;  %p5534_p0 = scmp.lt.s32.totalorder %s5806_s29, %s5806_s29 }
  0x4e   :  { %p5530_p13 = scmp.ne.s32.totalorder %s5806_s29, %s5529_s20  ;;  %p5535_p1 = scmp.lt.s32.totalorder %s5529_s20, %s5529_s20 }
  0x50   :  { %p5536_p2 = por %p5535_p1, %p5534_p0 }
  0x52   :  { %p5537_p3 = pnand %p5536_p2, %p5530_p13 }
  0x54   :  { %5540 = shalt.err (!%p5537_p3)
}
  0x55   :  { %39 = dma.hbm_to_vmem [thread:$0]  %s6663_s17, 256, %s5806_s29, [#allocation5], %s5665_s22, %s5665_s22, %s5666_s23  }
  0x56   :  { %s5669_s21 = smov [#allocation9]   ;;  %s5670_s27 = smov [#allocation12]  }
  0x57   :  { %s57_s4 = sshll.u32 %s5669_s21, 4  ;;  %s83_s25 = sshll.u32 %s5670_s27, 4  ;;  %s58_s4 = int_to_ptr.vmem [resolvable:$true] %s57_s4  ;;  %s5843_s25 = int_to_ptr.vmem [resolvable:$true] %s83_s25 }
  0x58   :  { %s5541_s28 = scalar_lea.hbm %s6640_s2, 512 }
  0x59   :  { %p5542_p4 = scmp.ne.s32.totalorder %s6640_s2, %s5541_s28  ;;  %p5545_p5 = scmp.lt.u32.totalorder %s5541_s28, %s6640_s2 }
  0x5b   :  { %p5547_p6 = pnand %p5545_p5, %p5542_p4 }
  0x5d   :  { %5550 = shalt.err (!%p5547_p6)
}
  0x5e   :  { %s5551_s29 = scalar_lea.vmem %s58_s4, 512  ;;  %p5556_p8 = scmp.lt.s32.totalorder %s58_s4, %s58_s4 }
  0x5f   :  { %p5552_p7 = scmp.ne.s32.totalorder %s58_s4, %s5551_s29  ;;  %p5557_p9 = scmp.lt.s32.totalorder %s5551_s29, %s5551_s29 }
  0x61   :  { %p5558_p10 = por %p5557_p9, %p5556_p8 }
  0x63   :  { %p5559_p11 = pnand %p5558_p10, %p5552_p7 }
  0x65   :  { %5562 = shalt.err (!%p5559_p11)
}
  0x66   :  { %63 = dma.hbm_to_vmem [thread:$0]  %s6640_s2, 512, %s58_s4, [#allocation8], %s5665_s22, %s5665_s22, %s5666_s23  }
  0x67   :  { %s5563_s21 = scalar_lea.hbm %s6643_s5, 512 }
  0x68   :  { %p5564_p12 = scmp.ne.s32.totalorder %s6643_s5, %s5563_s21  ;;  %p5567_p13 = scmp.lt.u32.totalorder %s5563_s21, %s6643_s5 }
  0x6a   :  { %p5569_p0 = pnand %p5567_p13, %p5564_p12 }
  0x6c   :  { %5572 = shalt.err (!%p5569_p0)
}
  0x6d   :  { %s5573_s30 = scalar_lea.vmem %s5843_s25, 512  ;;  %p5578_p2 = scmp.lt.s32.totalorder %s5843_s25, %s5843_s25 }
  0x6e   :  { %p5574_p1 = scmp.ne.s32.totalorder %s5843_s25, %s5573_s30  ;;  %p5579_p3 = scmp.lt.s32.totalorder %s5573_s30, %s5573_s30 }
  0x70   :  { %p5580_p4 = por %p5579_p3, %p5578_p2 }
  0x72   :  { %p5581_p5 = pnand %p5580_p4, %p5574_p1 }
  0x74   :  { %5584 = shalt.err (!%p5581_p5)
}
  0x75   :  { %89 = dma.hbm_to_vmem [thread:$0]  %s6643_s5, 512, %s5843_s25, [#allocation11], %s5665_s22, %s5665_s22, %s5666_s23  }
  0x76   :  { %s5671_s18 = smov [#allocation15]   ;;  %s5672_s1 = smov [#allocation16]  }
  0x77   :  { %s112_s19 = sshll.u32 %s5671_s18, 4  ;;  %s123_s29 = sshll.u32 %s5672_s1, 4  ;;  %s113_s19 = int_to_ptr.vmem [resolvable:$true] %s112_s19  ;;  %s5880_s29 = int_to_ptr.vmem [resolvable:$true] %s123_s29 }
  0x78   :  { %s5585_s8 = scalar_lea.hbm %s6647_s9, 16 }
  0x79   :  { %p5586_p6 = scmp.ne.s32.totalorder %s6647_s9, %s5585_s8  ;;  %p5589_p7 = scmp.lt.u32.totalorder %s5585_s8, %s6647_s9 }
  0x7b   :  { %p5591_p8 = pnand %p5589_p7, %p5586_p6 }
  0x7d   :  { %5594 = shalt.err (!%p5591_p8)
}
  0x7e   :  { %s5595_s5 = scalar_lea.vmem %s113_s19, 16  ;;  %s5599_s25 = scalar_lea.vmem %s113_s19, 32 }
  0x7f   :  { %p5596_p9 = scmp.ne.s32.totalorder %s113_s19, %s5595_s5  ;;  %p5600_p10 = scmp.lt.s32.totalorder %s113_s19, %s113_s19 }
  0x80   :  { %p5601_p11 = scmp.lt.s32.totalorder %s5599_s25, %s5595_s5 }
  0x82   :  { %p5602_p12 = por %p5601_p11, %p5600_p10 }
  0x84   :  { %p5603_p13 = pnand %p5602_p12, %p5596_p9 }
  0x86   :  { %5606 = shalt.err (!%p5603_p13)
}
  0x87   :  { %115 = dma.hbm_to_vmem [thread:$0]  %s6647_s9, 16, %s113_s19, [#allocation14]  }
  0x88   :  { %s5607_s4 = scalar_lea.hbm %s6649_s11, 512 }
  0x89   :  { %p5608_p0 = scmp.ne.s32.totalorder %s6649_s11, %s5607_s4  ;;  %p5611_p1 = scmp.lt.u32.totalorder %s5607_s4, %s6649_s11 }
  0x8b   :  { %p5613_p2 = pnand %p5611_p1, %p5608_p0 }
  0x8d   :  { %5616 = shalt.err (!%p5613_p2)
}
  0x8e   :  { %s5617_s8 = scalar_lea.vmem %s5880_s29, 512  ;;  %p5622_p4 = scmp.lt.s32.totalorder %s5880_s29, %s5880_s29 }
  0x8f   :  { %p5618_p3 = scmp.ne.s32.totalorder %s5880_s29, %s5617_s8  ;;  %p5623_p5 = scmp.lt.s32.totalorder %s5617_s8, %s5617_s8 }
  0x91   :  { %p5624_p6 = por %p5623_p5, %p5622_p4 }
  0x93   :  { %p5625_p7 = pnand %p5624_p6, %p5618_p3 }
  0x95   :  { %5628 = shalt.err (!%p5625_p7)
}
  0x96   :  { %129 = dma.hbm_to_vmem [thread:$0]  %s6649_s11, 512, %s5880_s29, [#allocation17], %s5665_s22, %s5665_s22, %s5666_s23  }
  0x97   :  { %5651 = dma.done.wait [#allocation5], 256  }
  0x98   :  { %5652 = vsyncadd [#allocation5], 4294967040 }
  0x99   :  { %5653 = dma.done.wait [#allocation8], 1024  }
  0x9a   :  { %5654 = vsyncadd [#allocation8], 4294966272 }
  0x9b   :  { %5655 = dma.done.wait [#allocation11], 1024  }
  0x9c   :  { %5656 = vsyncadd [#allocation11], 4294966272 }
  0x9d   :  { %5657 = dma.done.wait [#allocation14], 528  }
  0x9e   :  { %5658 = vsyncadd [#allocation14], 4294966768 }
  0x9f   :  { %5659 = dma.done.wait [#allocation17], 512  }
  0xa0   :  { %5660 = vsyncadd [#allocation17], 4294966784  ;;  %v5673_v0 = vmov 0.0|0.0   ;;  %vm5674_vm0 = vmmov 0   ;;  %v5675_v1 = vmov 0.0   ;;  %vm177_vm1 = vcmask 261120  }
  0xa1   :  { %4935 = vmatprep.subr.bf16.mxu0 %v5673_v0  ;;  %4520 = vmatprep.mubr.msk.f32.mxu0 %vm5674_vm0, %v5675_v1  ;;  %v166_v2 = vld [vmem:[#allocation7] sm:$0xff]  ;;  %v167_v3 = vld [vmem:[#allocation7 + $0x8] sm:$0xff]  ;;  %v168_v4 = vld [vmem:[#allocation7 + $0x10] sm:$0xff]  ;;  %s5676_s26 = smov 64   ;;  %vm365_vm2 = vcmask 254976   ;;  %vm474_vm3 = vcmask 257026  }
  0xa2   :  { %v4921_v5 = vpack.c.bf16 %v167_v3, %v166_v2  ;;  %v169_v6 = vld [vmem:[#allocation7 + $0x18] sm:$0xff]  ;;  %v5917_v7 = vld [vmem:[#allocation4] sm:$0xff]  ;;  %v259_v9 = vld [vmem:[#allocation9] sm:$0xff]  ;;  %vm698_vm4 = vcmask 261126   ;;  %vm586_vm5 = vcmask 259076   ;;  %vm1330_vm6 = vcmask 523526  }
  0xa3   :  { %v4925_v8 = vpack.c.bf16 %v169_v6, %v168_v4  ;;  %4498 = vmatprep.mubr.msk.f32.mxu1 %vm177_vm1, %v5917_v7  ;;  %v260_v10 = vld [vmem:[#allocation9 + $0x8] sm:$0xff]  ;;  %v261_v12 = vld [vmem:[#allocation9 + $0x10] sm:$0xff]  ;;  %v262_v13 = vld [vmem:[#allocation9 + $0x18] sm:$0xff]  ;;  %vm1554_vm7 = vcmask 519426   ;;  %vm1442_vm8 = vcmask 521476   ;;  %vm1663_vm9 = vcmask 517376  }
  0xa4   :  { %4922 = vmatprep.subr.bf16.mxu1 %v4921_v5  ;;  %v5921_v11 = vpack.c.bf16 %v260_v10, %v259_v9  ;;  %v5925_v14 = vpack.c.bf16 %v262_v13, %v261_v12  ;;  %v5927_v15 = vld [vmem:[#allocation4 + $0x8] sm:$0xff]  ;;  %v4211_v16 = vld [vmem:[%s6641_s3] ss:$0 sm:$0xff]  ;;  %s5677_s3 = smov 32   ;;  %vm2122_vm10 = vcmask 523264   ;;  %s5678_s4 = smov [#allocation18]  }
  0xa5   :  { %4924 = vmatpush3.bf16.msra.mxu1 %v4921_v5  ;;  %s4195_s18 = sshll.u32 %s5678_s4, 4  ;;  %s4196_s18 = int_to_ptr.vmem [resolvable:$true] %s4195_s18 }
  0xa6   :  { %4926 = vmatprep.subr.bf16.mxu1 %v4925_v8  ;;  %4937 = vmatpush3.bf16.msra.mxu0 %v5921_v11  ;;  %p5634_p9 = scmp.lt.s32.totalorder %s4196_s18, %s4196_s18 }
  0xa7   :  { %4938 = vmatprep.subr.bf16.mxu0 %v5673_v0 }
  0xa9   :  { %4928 = vmatpush3.bf16.msra.mxu1 %v4925_v8 }
  0xaa   :  { %4929 = vmatprep.subr.bf16.mxu1 %v5673_v0  ;;  %4940 = vmatpush3.bf16.msra.mxu0 %v5925_v14 }
  0xab   :  { %4947 = vmatprep.subr.bf16.mxu0 %v5673_v0 }
  0xac   :  { %4499 = vmatmul.mubr.msk.f32.vlgmr.msra.gmra.mrb[0].mxu1 %vm177_vm1, %v5927_v15 }
  0xad   :  { %4931 = vmatpush3.bf16.msra.mxu1 %v5921_v11  ;;  %4509 = vmatprep.mubr.msk.f32.mxu1 %vm5674_vm0, %v5675_v1 }
  0xae   :  { %4932 = vmatprep.subr.bf16.mxu1 %v5673_v0 }
  0xb1   :  { %4934 = vmatpush3.bf16.msra.mxu1 %v5925_v14 }
  0xb2   :  { %4941 = vmatprep.subr.bf16.mxu1 %v5673_v0 }
  0xb4   :  { %4510 = vmatmul.mubr.f32.vlgmr.msra.gmra.mrb[2].mxu1 %v5675_v1 }
  0xb5   :  { %4943 = vmatpush3.bf16.msra.mxu1 %v5921_v11  ;;  %4531 = vmatprep.mubr.msk.f32.mxu1 %vm5674_vm0, %v5675_v1 }
  0xb6   :  { %4944 = vmatprep.subr.bf16.mxu1 %v5673_v0 }
  0xb9   :  { %4946 = vmatpush3.bf16.msra.mxu1 %v5925_v14 }
  0xba   :  { %4953 = vmatprep.subr.bf16.mxu1 %v5673_v0 }
 0x17f   :  { %v4500_v17 = vpop.f32.mrb[0].mxu1 }
 0x180   :  { %v5950_v18 = vadd.f32 %v4500_v17, %v4211_v16  ;;  %v250_v19 = vpop.f32.mrb[1].mxu1 }
 0x181   :  { %v5952_v20 = vadd.f32 %v4211_v16, %v250_v19 }
 0x187   :  { %v332_v21 = vpop.f32.mrb[2].mxu1 }
 0x188   :  { %v336_v22 = vadd.f32 %v332_v21, %v5952_v20  ;;  %v4511_v23 = vpop.f32.mrb[3].mxu1 }
 0x18a   :  { %5193 = vtanh.f32 %v336_v22  ;;  %v4214_v25 = vmul.f32 -1.442695, %v336_v22 }
 0x18c   :  { %5195 = vpow2.f32 %v4214_v25 }
 0x194   :  { %v5194_v24 = vpop.eup %5193 }
 0x195   :  { %346 = vrot.lane.b32.xlu0 %v5194_v24, %s5676_s26 }
 0x196   :  { %v5196_v26 = vpop.eup %5195 }
 0x197   :  { %v340_v27 = vadd.f32 1.0, %v5196_v26 }
 0x199   :  { %5197 = vrcp.f32 %v340_v27 }
 0x1a3   :  { %v5198_v28 = vpop.eup %5197 }
 0x1a4   :  { %v344_v31 = vmul.f32 0.0, %v5198_v28 }
 0x207   :  { %v347_v29 = vpop.permute.xlu0 %346 }
 0x208   :  { %v349_v30 = vmul.f32 %v5198_v28, %v347_v29 }
 0x20a   :  { %351 = vrot.lane.b32.xlu0 %v349_v30, %s5677_s3 }
 0x27c   :  { %v352_v32 = vpop.permute.xlu0 %351 }
 0x27d   :  { %v354_v33 = vadd.f32 %v352_v32, %v344_v31 }
 0x27f   :  { %5199 = vtanh.f32 %v354_v33  ;;  %v451_v49 = vrot.slane %v354_v33, 6 }
 0x289   :  { %v5200_v34 = vpop.eup %5199 }
 0x28a   :  { %357 = vrot.lane.b32.xlu1 %v5200_v34, %s5676_s26 }
 0x2fc   :  { %v358_v35 = vpop.permute.xlu1 %357 }
 0x2fd   :  { %v360_v36 = vmul.f32 %v5198_v28, %v358_v35 }
 0x2ff   :  { %362 = vrot.lane.b32.xlu1 %v360_v36, %s5677_s3 }
 0x371   :  { %v363_v37 = vpop.permute.xlu1 %362 }
 0x372   :  { %366 = vst.msk [vmem:[#allocation2] sm:$0x3] %vm365_vm2, %v363_v37  ;;  %4521 = vmatmul.mubr.msk.f32.vlgmr.msra.gmra.mrb[0].mxu0 %vm177_vm1, %v363_v37 }
 0x373   :  { %4949 = vmatpush3.bf16.msra.mxu0 %v5921_v11  ;;  %4542 = vmatprep.mubr.msk.f32.mxu0 %vm5674_vm0, %v5675_v1 }
 0x374   :  { %4950 = vmatprep.subr.bf16.mxu0 %v5673_v0 }
 0x377   :  { %4952 = vmatpush3.bf16.msra.mxu0 %v5925_v14 }
 0x378   :  { %4959 = vmatprep.subr.bf16.mxu0 %v5673_v0 }
 0x445   :  { %v435_v38 = vpop.f32.mrb[0].mxu0 }
 0x446   :  { %v440_v39 = vrot.slane %v435_v38, 6  ;;  %v4522_v40 = vpop.f32.mrb[1].mxu0 }
 0x448   :  { %v442_v41 = vadd.f32 %v440_v39, %v5952_v20 }
 0x44a   :  { %5201 = vtanh.f32 %v442_v41  ;;  %v4216_v43 = vmul.f32 -1.442695, %v442_v41 }
 0x44c   :  { %5203 = vpow2.f32 %v4216_v43 }
 0x454   :  { %v5202_v42 = vpop.eup %5201 }
 0x455   :  { %455 = vrot.lane.b32.xlu0 %v5202_v42, %s5676_s26 }
 0x456   :  { %v5204_v44 = vpop.eup %5203 }
 0x457   :  { %v446_v45 = vadd.f32 1.0, %v5204_v44 }
 0x459   :  { %5205 = vrcp.f32 %v446_v45 }
 0x463   :  { %v5206_v46 = vpop.eup %5205 }
 0x464   :  { %v453_v50 = vmul.f32 %v5206_v46, %v451_v49 }
 0x4c7   :  { %v456_v47 = vpop.permute.xlu0 %455 }
 0x4c8   :  { %v458_v48 = vmul.f32 %v5206_v46, %v456_v47 }
 0x4ca   :  { %460 = vrot.lane.b32.xlu1 %v458_v48, %s5677_s3 }
 0x53c   :  { %v461_v51 = vpop.permute.xlu1 %460 }
 0x53d   :  { %v463_v52 = vadd.f32 %v461_v51, %v453_v50 }
 0x53f   :  { %5207 = vtanh.f32 %v463_v52  ;;  %v563_v8 = vrot.slane %v463_v52, 6 }
 0x549   :  { %v5208_v53 = vpop.eup %5207 }
 0x54a   :  { %466 = vrot.lane.b32.xlu0 %v5208_v53, %s5676_s26 }
 0x5bc   :  { %v467_v54 = vpop.permute.xlu0 %466 }
 0x5bd   :  { %v5971_v55 = vmul.f32 %v5206_v46, %v467_v54 }
 0x5bf   :  { %v476_v56 = vrot.slane %v5971_v55, 2 }
 0x5c1   :  { %477 = vrot.lane.b32.xlu1 %v476_v56, %s5677_s3 }
 0x633   :  { %v478_v57 = vpop.permute.xlu1 %477 }
 0x634   :  { %4532 = vmatmul.mubr.msk.f32.vlgmr.msra.gmra.mrb[4].mxu1 %vm177_vm1, %v478_v57 }
 0x635   :  { %4955 = vmatpush3.bf16.msra.mxu1 %v5921_v11  ;;  %4553 = vmatprep.mubr.msk.f32.mxu1 %vm5674_vm0, %v5675_v1 }
 0x636   :  { %4956 = vmatprep.subr.bf16.mxu1 %v5673_v0 }
 0x639   :  { %4958 = vmatpush3.bf16.msra.mxu1 %v5925_v14 }
 0x63a   :  { %4965 = vmatprep.subr.bf16.mxu1 %v5673_v0 }
 0x707   :  { %v547_v58 = vpop.f32.mrb[4].mxu1 }
 0x708   :  { %v552_v59 = vrot.slane %v547_v58, 4  ;;  %v4533_v60 = vpop.f32.mrb[5].mxu1 }
 0x70a   :  { %v554_v61 = vadd.f32 %v552_v59, %v5952_v20 }
 0x70c   :  { %5209 = vtanh.f32 %v554_v61  ;;  %v4218_v63 = vmul.f32 -1.442695, %v554_v61 }
 0x70e   :  { %5211 = vpow2.f32 %v4218_v63 }
 0x716   :  { %v5210_v62 = vpop.eup %5209 }
 0x717   :  { %567 = vrot.lane.b32.xlu0 %v5210_v62, %s5676_s26 }
 0x718   :  { %v5212_v2 = vpop.eup %5211 }
 0x719   :  { %v558_v3 = vadd.f32 1.0, %v5212_v2 }
 0x71b   :  { %5213 = vrcp.f32 %v558_v3 }
 0x725   :  { %v5214_v4 = vpop.eup %5213 }
 0x726   :  { %v565_v9 = vmul.f32 %v5214_v4, %v563_v8 }
 0x789   :  { %v568_v5 = vpop.permute.xlu0 %567 }
 0x78a   :  { %v570_v6 = vmul.f32 %v5214_v4, %v568_v5 }
 0x78c   :  { %572 = vrot.lane.b32.xlu1 %v570_v6, %s5677_s3 }
 0x7fe   :  { %v573_v10 = vpop.permute.xlu1 %572 }
 0x7ff   :  { %v575_v12 = vadd.f32 %v573_v10, %v565_v9 }
 0x801   :  { %5215 = vtanh.f32 %v575_v12  ;;  %v675_v33 = vrot.slane %v575_v12, 6 }
 0x80b   :  { %v5216_v13 = vpop.eup %5215 }
 0x80c   :  { %578 = vrot.lane.b32.xlu0 %v5216_v13, %s5676_s26 }
 0x87e   :  { %v579_v16 = vpop.permute.xlu0 %578 }
 0x87f   :  { %v5986_v17 = vmul.f32 %v5214_v4, %v579_v16 }
 0x881   :  { %v588_v19 = vrot.slane %v5986_v17, 4 }
 0x883   :  { %589 = vrot.lane.b32.xlu1 %v588_v19, %s5677_s3 }
 0x8f5   :  { %v590_v21 = vpop.permute.xlu1 %589 }
 0x8f6   :  { %4543 = vmatmul.mubr.msk.f32.vlgmr.msra.gmra.mrb[2].mxu0 %vm177_vm1, %v590_v21 }
 0x8f7   :  { %4961 = vmatpush3.bf16.msra.mxu0 %v5921_v11  ;;  %4564 = vmatprep.mubr.msk.f32.mxu0 %vm5674_vm0, %v5675_v1 }
 0x8f8   :  { %4962 = vmatprep.subr.bf16.mxu0 %v5673_v0 }
 0x8fb   :  { %4964 = vmatpush3.bf16.msra.mxu0 %v5925_v14 }
 0x8fc   :  { %4971 = vmatprep.subr.bf16.mxu0 %v5673_v0 }
 0x9c9   :  { %v659_v22 = vpop.f32.mrb[2].mxu0 }
 0x9ca   :  { %v664_v23 = vrot.slane %v659_v22, 2  ;;  %v4544_v24 = vpop.f32.mrb[3].mxu0 }
 0x9cc   :  { %v666_v25 = vadd.f32 %v664_v23, %v5952_v20 }
 0x9ce   :  { %5217 = vtanh.f32 %v666_v25  ;;  %v4220_v27 = vmul.f32 -1.442695, %v666_v25 }
 0x9d0   :  { %5219 = vpow2.f32 %v4220_v27 }
 0x9d8   :  { %v5218_v26 = vpop.eup %5217 }
 0x9d9   :  { %679 = vrot.lane.b32.xlu0 %v5218_v26, %s5676_s26 }
 0x9da   :  { %v5220_v28 = vpop.eup %5219 }
 0x9db   :  { %v670_v29 = vadd.f32 1.0, %v5220_v28 }
 0x9dd   :  { %5221 = vrcp.f32 %v670_v29 }
 0x9e7   :  { %v5222_v30 = vpop.eup %5221 }
 0x9e8   :  { %v677_v34 = vmul.f32 %v5222_v30, %v675_v33 }
 0xa4b   :  { %v680_v31 = vpop.permute.xlu0 %679 }
 0xa4c   :  { %v682_v32 = vmul.f32 %v5222_v30, %v680_v31 }
 0xa4e   :  { %684 = vrot.lane.b32.xlu1 %v682_v32, %s5677_s3 }
 0xac0   :  { %v685_v35 = vpop.permute.xlu1 %684 }
 0xac1   :  { %v687_v36 = vadd.f32 %v685_v35, %v677_v34 }
 0xac3   :  { %5223 = vtanh.f32 %v687_v36  ;;  %v784_v51 = vrot.slane %v687_v36, 6 }
 0xacd   :  { %v5224_v20 = vpop.eup %5223 }
 0xace   :  { %690 = vrot.lane.b32.xlu0 %v5224_v20, %s5676_s26  ;;  %v1138_v20 = vld [vmem:[#allocation10] sm:$0xff] }
 0xb40   :  { %v691_v37 = vpop.permute.xlu0 %690 }
 0xb41   :  { %v6001_v38 = vmul.f32 %v5222_v30, %v691_v37  ;;  %v1139_v37 = vld [vmem:[#allocation10 + $0x8] sm:$0xff] }
 0xb43   :  { %v700_v39 = vrot.slane %v6001_v38, 6 }
 0xb45   :  { %701 = vrot.lane.b32.xlu1 %v700_v39, %s5677_s3  ;;  %v4977_v39 = vpack.c.bf16 %v1139_v37, %v1138_v20 }
 0xbb7   :  { %v702_v40 = vpop.permute.xlu1 %701 }
 0xbb8   :  { %4554 = vmatmul.mubr.msk.f32.vlgmr.msra.gmra.mrb[6].mxu1 %vm177_vm1, %v702_v40 }
 0xbb9   :  { %4967 = vmatpush3.bf16.msra.mxu1 %v5921_v11  ;;  %4575 = vmatprep.mubr.msk.f32.mxu1 %vm5674_vm0, %v5675_v1 }
 0xbba   :  { %4968 = vmatprep.subr.bf16.mxu1 %v5673_v0 }
 0xbbd   :  { %4970 = vmatpush3.bf16.msra.mxu1 %v5925_v14 }
 0xbbe   :  { %4978 = vmatprep.subr.bf16.mxu1 %v4977_v39 }
 0xc8b   :  { %v771_v41 = vpop.f32.mrb[6].mxu1 }
 0xc8c   :  { %v775_v42 = vadd.f32 %v771_v41, %v5950_v18  ;;  %v4555_v43 = vpop.f32.mrb[7].mxu1  ;;  %v1140_v41 = vld [vmem:[#allocation10 + $0x10] sm:$0xff] }
 0xc8e   :  { %5225 = vtanh.f32 %v775_v42  ;;  %v4222_v45 = vmul.f32 -1.442695, %v775_v42  ;;  %v1141_v42 = vld [vmem:[#allocation10 + $0x18] sm:$0xff] }
 0xc8f   :  { %v4981_v43 = vpack.c.bf16 %v1141_v42, %v1140_v41 }
 0xc90   :  { %5227 = vpow2.f32 %v4222_v45  ;;  %v1225_v45 = vld [vmem:[#allocation12 + $0x8] sm:$0xff] }
 0xc98   :  { %v5226_v44 = vpop.eup %5225 }
 0xc99   :  { %788 = vrot.lane.b32.xlu0 %v5226_v44, %s5676_s26  ;;  %v1224_v44 = vld [vmem:[#allocation12] sm:$0xff] }
 0xc9a   :  { %v5228_v46 = vpop.eup %5227 }
 0xc9b   :  { %v779_v47 = vadd.f32 1.0, %v5228_v46  ;;  %v6043_v46 = vpack.c.bf16 %v1225_v45, %v1224_v44 }
 0xc9d   :  { %5229 = vrcp.f32 %v779_v47  ;;  %v1226_v47 = vld [vmem:[#allocation12 + $0x10] sm:$0xff] }
 0xca7   :  { %v5230_v48 = vpop.eup %5229 }
 0xca8   :  { %v786_v52 = vmul.f32 %v5230_v48, %v784_v51 }
 0xd0b   :  { %v789_v49 = vpop.permute.xlu0 %788 }
 0xd0c   :  { %v791_v50 = vmul.f32 %v5230_v48, %v789_v49 }
 0xd0e   :  { %793 = vrot.lane.b32.xlu1 %v791_v50, %s5677_s3 }
 0xd80   :  { %v794_v53 = vpop.permute.xlu1 %793 }
 0xd81   :  { %v796_v54 = vadd.f32 %v794_v53, %v786_v52 }
 0xd83   :  { %5231 = vtanh.f32 %v796_v54 }
 0xd8d   :  { %v5232_v56 = vpop.eup %5231 }
 0xd8e   :  { %799 = vrot.lane.b32.xlu0 %v5232_v56, %s5676_s26 }
 0xe00   :  { %v800_v57 = vpop.permute.xlu0 %799 }
 0xe01   :  { %v802_v58 = vmul.f32 %v5230_v48, %v800_v57  ;;  %v1227_v48 = vld [vmem:[#allocation12 + $0x18] sm:$0xff] }
 0xe02   :  { %v6053_v51 = vpack.c.bf16 %v1227_v48, %v1226_v47 }
 0xe03   :  { %804 = vrot.lane.b32.xlu1 %v802_v58, %s5677_s3 }
 0xe75   :  { %v805_v59 = vpop.permute.xlu1 %804 }
 0xe76   :  { %807 = vst.msk [vmem:[#allocation2 + $0x8] sm:$0x3] %vm365_vm2, %v805_v59  ;;  %4565 = vmatmul.mubr.msk.f32.vlgmr.msra.gmra.mrb[4].mxu0 %vm177_vm1, %v805_v59 }
 0xe77   :  { %4973 = vmatpush3.bf16.msra.mxu0 %v5921_v11  ;;  %4586 = vmatprep.mubr.msk.f32.mxu0 %vm5674_vm0, %v5675_v1 }
 0xe78   :  { %4974 = vmatprep.subr.bf16.mxu0 %v5673_v0 }
 0xe7b   :  { %4976 = vmatpush3.bf16.msra.mxu0 %v5925_v14  ;;  %v892_v14 = vrot.slane %v796_v54, 6  ;;  %v4229_v54 = vld [vmem:[%s6644_s6] ss:$0 sm:$0xff] }
 0xe7c   :  { %4985 = vmatprep.subr.bf16.mxu0 %v5673_v0 }
 0xf49   :  { %v876_v60 = vpop.f32.mrb[4].mxu0 }
 0xf4a   :  { %v881_v61 = vrot.slane %v876_v60, 6  ;;  %v4566_v62 = vpop.f32.mrb[5].mxu0 }
 0xf4c   :  { %v883_v63 = vadd.f32 %v881_v61, %v5950_v18 }
 0xf4e   :  { %5233 = vtanh.f32 %v883_v63  ;;  %v4224_v3 = vmul.f32 -1.442695, %v883_v63 }
 0xf50   :  { %5235 = vpow2.f32 %v4224_v3 }
 0xf58   :  { %v5234_v2 = vpop.eup %5233 }
 0xf59   :  { %896 = vrot.lane.b32.xlu0 %v5234_v2, %s5676_s26 }
 0xf5a   :  { %v5236_v11 = vpop.eup %5235 }
 0xf5b   :  { %v887_v4 = vadd.f32 1.0, %v5236_v11 }
 0xf5d   :  { %5237 = vrcp.f32 %v887_v4 }
 0xf67   :  { %v5238_v5 = vpop.eup %5237 }
 0xf68   :  { %v894_v9 = vmul.f32 %v5238_v5, %v892_v14 }
 0xfcb   :  { %v897_v6 = vpop.permute.xlu0 %896 }
 0xfcc   :  { %v899_v8 = vmul.f32 %v5238_v5, %v897_v6 }
 0xfce   :  { %901 = vrot.lane.b32.xlu1 %v899_v8, %s5677_s3 }
0x1040   :  { %v902_v10 = vpop.permute.xlu1 %901 }
0x1041   :  { %v904_v12 = vadd.f32 %v902_v10, %v894_v9 }
0x1043   :  { %5239 = vtanh.f32 %v904_v12 }
0x104d   :  { %v5240_v13 = vpop.eup %5239 }
0x104e   :  { %907 = vrot.lane.b32.xlu0 %v5240_v13, %s5676_s26 }
0x10c0   :  { %v908_v16 = vpop.permute.xlu0 %907 }
0x10c1   :  { %v6028_v19 = vmul.f32 %v5238_v5, %v908_v16 }
0x10c3   :  { %v916_v21 = vrot.slane %v6028_v19, 2 }
0x10c5   :  { %917 = vrot.lane.b32.xlu1 %v916_v21, %s5677_s3 }
0x1137   :  { %v918_v22 = vpop.permute.xlu1 %917 }
0x1138   :  { %4576 = vmatmul.mubr.msk.f32.vlgmr.msra.gmra.mrb[8].mxu1 %vm177_vm1, %v918_v22 }
0x1139   :  { %4597 = vmatprep.mubr.msk.f32.mxu1 %vm177_vm1, %v5917_v7  ;;  %v1003_v7 = vrot.slane %v904_v12, 6  ;;  %4980 = vmatpush3.bf16.msra.mxu1 %v4977_v39 }
0x113a   :  { %4982 = vmatprep.subr.bf16.mxu1 %v4981_v43 }
0x113d   :  { %4984 = vmatpush3.bf16.msra.mxu1 %v4981_v43 }
0x113e   :  { %4991 = vmatprep.subr.bf16.mxu1 %v5673_v0 }
0x1140   :  { %4598 = vmatmul.mubr.msk.f32.vlgmr.msra.gmra.mrb[10].mxu1 %vm177_vm1, %v5927_v15 }
0x1141   :  { %4993 = vmatpush3.bf16.msra.mxu1 %v6043_v46  ;;  %4619 = vmatprep.mubr.msk.f32.mxu1 %vm5674_vm0, %v5675_v1 }
0x1142   :  { %4994 = vmatprep.subr.bf16.mxu1 %v5673_v0 }
0x1145   :  { %4996 = vmatpush3.bf16.msra.mxu1 %v6053_v51 }
0x1146   :  { %5003 = vmatprep.subr.bf16.mxu1 %v5673_v0 }
0x120b   :  { %v987_v23 = vpop.f32.mrb[8].mxu1 }
0x120c   :  { %v992_v24 = vrot.slane %v987_v23, 4  ;;  %v4577_v25 = vpop.f32.mrb[9].mxu1 }
0x120e   :  { %v994_v26 = vadd.f32 %v992_v24, %v5950_v18 }
0x1210   :  { %5241 = vtanh.f32 %v994_v26  ;;  %v4226_v28 = vmul.f32 -1.442695, %v994_v26 }
0x1212   :  { %5243 = vpow2.f32 %v4226_v28 }
0x1213   :  { %v4599_v53 = vpop.f32.mrb[10].mxu1 }
0x1214   :  { %v1215_v56 = vpop.f32.mrb[11].mxu1  ;;  %v6080_v60 = vadd.f32 %v4599_v53, %v4229_v54 }
0x1215   :  { %v6076_v57 = vadd.f32 %v4229_v54, %v1215_v56 }
0x121a   :  { %v5242_v27 = vpop.eup %5241 }
0x121b   :  { %1007 = vrot.lane.b32.xlu0 %v5242_v27, %s5676_s26 }
0x121c   :  { %v5244_v29 = vpop.eup %5243 }
0x121d   :  { %v998_v30 = vadd.f32 1.0, %v5244_v29 }
0x121f   :  { %5245 = vrcp.f32 %v998_v30 }
0x1229   :  { %v5246_v31 = vpop.eup %5245 }
0x122a   :  { %v1005_v34 = vmul.f32 %v5246_v31, %v1003_v7 }
0x128d   :  { %v1008_v32 = vpop.permute.xlu0 %1007 }
0x128e   :  { %v1010_v33 = vmul.f32 %v5246_v31, %v1008_v32 }
0x1290   :  { %1012 = vrot.lane.b32.xlu1 %v1010_v33, %s5677_s3 }
0x1302   :  { %v1013_v35 = vpop.permute.xlu1 %1012 }
0x1303   :  { %v6038_v36 = vadd.f32 %v1013_v35, %v1005_v34 }
0x1305   :  { %5247 = vtanh.f32 %v6038_v36 }
0x130f   :  { %v5248_v40 = vpop.eup %5247 }
0x1310   :  { %1018 = vrot.lane.b32.xlu0 %v5248_v40, %s5676_s26 }
0x1382   :  { %v1019_v49 = vpop.permute.xlu0 %1018 }
0x1383   :  { %v6050_v50 = vmul.f32 %v5246_v31, %v1019_v49 }
0x1385   :  { %v1027_v52 = vrot.slane %v6050_v50, 4 }
0x1387   :  { %1028 = vrot.lane.b32.xlu1 %v1027_v52, %s5677_s3 }
0x13f9   :  { %v1029_v15 = vpop.permute.xlu1 %1028 }
0x13fa   :  { %4587 = vmatmul.mubr.msk.f32.vlgmr.msra.gmra.mrb[6].mxu0 %vm177_vm1, %v1029_v15 }
0x13fb   :  { %4987 = vmatpush3.bf16.msra.mxu0 %v6043_v46  ;;  %4608 = vmatprep.mubr.msk.f32.mxu0 %vm5674_vm0, %v5675_v1 }
0x13fc   :  { %4988 = vmatprep.subr.bf16.mxu0 %v5673_v0 }
0x13ff   :  { %4990 = vmatpush3.bf16.msra.mxu0 %v6053_v51 }
0x1400   :  { %4997 = vmatprep.subr.bf16.mxu0 %v5673_v0 }
0x1402   :  { %4609 = vmatmul.mubr.f32.vlgmr.msra.gmra.mrb[8].mxu0 %v5675_v1 }
0x1403   :  { %4999 = vmatpush3.bf16.msra.mxu0 %v6043_v46  ;;  %4630 = vmatprep.mubr.msk.f32.mxu0 %vm5674_vm0, %v5675_v1 }
0x1404   :  { %5000 = vmatprep.subr.bf16.mxu0 %v5673_v0 }
0x1407   :  { %5002 = vmatpush3.bf16.msra.mxu0 %v6053_v51 }
0x1408   :  { %5009 = vmatprep.subr.bf16.mxu0 %v5673_v0 }
0x14cd   :  { %v6078_v58 = vpop.f32.mrb[6].mxu0 }
0x14ce   :  { %v4588_v59 = vpop.f32.mrb[7].mxu0 }
0x14d5   :  { %v1294_v61 = vpop.f32.mrb[8].mxu0 }
0x14d6   :  { %v1299_v62 = vrot.slane %v1294_v61, 2  ;;  %v4610_v63 = vpop.f32.mrb[9].mxu0 }
0x14d8   :  { %v1301_v2 = vadd.f32 %v1299_v62, %v6080_v60 }
0x14da   :  { %5249 = vtanh.f32 %v1301_v2  ;;  %v4232_v11 = vmul.f32 -1.442695, %v1301_v2 }
0x14dc   :  { %5251 = vpow2.f32 %v4232_v11 }
0x14e4   :  { %v5250_v3 = vpop.eup %5249 }
0x14e5   :  { %1311 = vrot.lane.b32.xlu0 %v5250_v3, %s5676_s26 }
0x14e6   :  { %v5252_v4 = vpop.eup %5251 }
0x14e7   :  { %v1305_v5 = vadd.f32 1.0, %v5252_v4 }
0x14e9   :  { %5253 = vrcp.f32 %v1305_v5 }
0x14f3   :  { %v5254_v6 = vpop.eup %5253 }
0x14f4   :  { %v1309_v9 = vmul.f32 0.0, %v5254_v6 }
0x1557   :  { %v1312_v8 = vpop.permute.xlu0 %1311 }
0x1558   :  { %v1314_v14 = vmul.f32 %v5254_v6, %v1312_v8 }
0x155a   :  { %1316 = vrot.lane.b32.xlu1 %v1314_v14, %s5677_s3 }
0x15cc   :  { %v1317_v10 = vpop.permute.xlu1 %1316 }
0x15cd   :  { %v1319_v12 = vadd.f32 %v1317_v10, %v1309_v9 }
0x15cf   :  { %5255 = vtanh.f32 %v1319_v12  ;;  %v1419_v34 = vrot.slane %v1319_v12, 2 }
0x15d9   :  { %v5256_v13 = vpop.eup %5255 }
0x15da   :  { %1322 = vrot.lane.b32.xlu0 %v5256_v13, %s5676_s26 }
0x164c   :  { %v1323_v16 = vpop.permute.xlu0 %1322 }
0x164d   :  { %v6086_v21 = vmul.f32 %v5254_v6, %v1323_v16 }
0x164f   :  { %v1332_v22 = vrot.slane %v6086_v21, 6 }
0x1651   :  { %1333 = vrot.lane.b32.xlu1 %v1332_v22, %s5677_s3 }
0x16c3   :  { %v1334_v23 = vpop.permute.xlu1 %1333 }
0x16c4   :  { %4620 = vmatmul.mubr.msk.f32.vlgmr.msra.gmra.mrb[12].mxu1 %vm177_vm1, %v1334_v23 }
0x16c5   :  { %5005 = vmatpush3.bf16.msra.mxu1 %v6043_v46  ;;  %4641 = vmatprep.mubr.msk.f32.mxu1 %vm5674_vm0, %v5675_v1 }
0x16c6   :  { %5006 = vmatprep.subr.bf16.mxu1 %v5673_v0 }
0x16c9   :  { %5008 = vmatpush3.bf16.msra.mxu1 %v6053_v51 }
0x16ca   :  { %5015 = vmatprep.subr.bf16.mxu1 %v5673_v0 }
0x1797   :  { %v1403_v24 = vpop.f32.mrb[12].mxu1 }
0x1798   :  { %v1408_v25 = vrot.slane %v1403_v24, 4  ;;  %v4621_v26 = vpop.f32.mrb[13].mxu1 }
0x179a   :  { %v1410_v27 = vadd.f32 %v1408_v25, %v6080_v60 }
0x179c   :  { %5257 = vtanh.f32 %v1410_v27  ;;  %v4234_v29 = vmul.f32 -1.442695, %v1410_v27 }
0x179e   :  { %5259 = vpow2.f32 %v4234_v29 }
0x17a6   :  { %v5258_v28 = vpop.eup %5257 }
0x17a7   :  { %1423 = vrot.lane.b32.xlu0 %v5258_v28, %s5676_s26 }
0x17a8   :  { %v5260_v30 = vpop.eup %5259 }
0x17a9   :  { %v1414_v31 = vadd.f32 1.0, %v5260_v30 }
0x17ab   :  { %5261 = vrcp.f32 %v1414_v31 }
0x17b5   :  { %v5262_v32 = vpop.eup %5261 }
0x17b6   :  { %v1421_v35 = vmul.f32 %v5262_v32, %v1419_v34 }
0x1819   :  { %v1424_v33 = vpop.permute.xlu0 %1423 }
0x181a   :  { %v1426_v7 = vmul.f32 %v5262_v32, %v1424_v33 }
0x181c   :  { %1428 = vrot.lane.b32.xlu1 %v1426_v7, %s5677_s3 }
0x188e   :  { %v1429_v20 = vpop.permute.xlu1 %1428 }
0x188f   :  { %v1431_v37 = vadd.f32 %v1429_v20, %v1421_v35 }
0x1891   :  { %5263 = vtanh.f32 %v1431_v37  ;;  %v1531_v61 = vrot.slane %v1431_v37, 2 }
0x189b   :  { %v5264_v39 = vpop.eup %5263 }
0x189c   :  { %1434 = vrot.lane.b32.xlu0 %v5264_v39, %s5676_s26 }
0x190e   :  { %v1435_v40 = vpop.permute.xlu0 %1434 }
0x190f   :  { %v6101_v41 = vmul.f32 %v5262_v32, %v1435_v40 }
0x1911   :  { %v1444_v42 = vrot.slane %v6101_v41, 4 }
0x1913   :  { %1445 = vrot.lane.b32.xlu1 %v1444_v42, %s5677_s3 }
0x1985   :  { %v1446_v43 = vpop.permute.xlu1 %1445 }
0x1986   :  { %4631 = vmatmul.mubr.msk.f32.vlgmr.msra.gmra.mrb[10].mxu0 %vm177_vm1, %v1446_v43 }
0x1987   :  { %5011 = vmatpush3.bf16.msra.mxu0 %v6043_v46  ;;  %4652 = vmatprep.mubr.msk.f32.mxu0 %vm5674_vm0, %v5675_v1 }
0x1988   :  { %5012 = vmatprep.subr.bf16.mxu0 %v5673_v0 }
0x198b   :  { %5014 = vmatpush3.bf16.msra.mxu0 %v6053_v51 }
0x198c   :  { %5021 = vmatprep.subr.bf16.mxu0 %v5673_v0 }
0x1a59   :  { %v1515_v44 = vpop.f32.mrb[10].mxu0 }
0x1a5a   :  { %v1520_v45 = vrot.slane %v1515_v44, 6  ;;  %v4632_v47 = vpop.f32.mrb[11].mxu0 }
0x1a5c   :  { %v1522_v48 = vadd.f32 %v1520_v45, %v6080_v60 }
0x1a5e   :  { %5265 = vtanh.f32 %v1522_v48  ;;  %v4236_v52 = vmul.f32 -1.442695, %v1522_v48 }
0x1a60   :  { %5267 = vpow2.f32 %v4236_v52 }
0x1a68   :  { %v5266_v49 = vpop.eup %5265 }
0x1a69   :  { %1535 = vrot.lane.b32.xlu0 %v5266_v49, %s5676_s26 }
0x1a6a   :  { %v5268_v15 = vpop.eup %5267 }
0x1a6b   :  { %v1526_v53 = vadd.f32 1.0, %v5268_v15 }
0x1a6d   :  { %5269 = vrcp.f32 %v1526_v53 }
0x1a77   :  { %v5270_v54 = vpop.eup %5269 }
0x1a78   :  { %v1533_v62 = vmul.f32 %v5270_v54, %v1531_v61 }
0x1adb   :  { %v1536_v56 = vpop.permute.xlu0 %1535 }
0x1adc   :  { %v1538_v59 = vmul.f32 %v5270_v54, %v1536_v56 }
0x1ade   :  { %1540 = vrot.lane.b32.xlu1 %v1538_v59, %s5677_s3 }
0x1b50   :  { %v1541_v63 = vpop.permute.xlu1 %1540 }
0x1b51   :  { %v1543_v2 = vadd.f32 %v1541_v63, %v1533_v62 }
0x1b53   :  { %5271 = vtanh.f32 %v1543_v2  ;;  %v1640_v25 = vrot.slane %v1543_v2, 2 }
0x1b5d   :  { %v5272_v3 = vpop.eup %5271 }
0x1b5e   :  { %1546 = vrot.lane.b32.xlu0 %v5272_v3, %s5676_s26 }
0x1bd0   :  { %v1547_v11 = vpop.permute.xlu0 %1546 }
0x1bd1   :  { %v6116_v4 = vmul.f32 %v5270_v54, %v1547_v11 }
0x1bd3   :  { %v1556_v5 = vrot.slane %v6116_v4, 2 }
0x1bd5   :  { %1557 = vrot.lane.b32.xlu1 %v1556_v5, %s5677_s3 }
0x1c47   :  { %v1558_v6 = vpop.permute.xlu1 %1557 }
0x1c48   :  { %4642 = vmatmul.mubr.msk.f32.vlgmr.msra.gmra.mrb[14].mxu1 %vm177_vm1, %v1558_v6 }
0x1c49   :  { %5017 = vmatpush3.bf16.msra.mxu1 %v6043_v46  ;;  %4663 = vmatprep.mubr.msk.f32.mxu1 %vm5674_vm0, %v5675_v1 }
0x1c4a   :  { %5018 = vmatprep.subr.bf16.mxu1 %v5673_v0 }
0x1c4d   :  { %5020 = vmatpush3.bf16.msra.mxu1 %v6053_v51 }
0x1c4e   :  { %5027 = vmatprep.subr.bf16.mxu1 %v5673_v0 }
0x1d1b   :  { %v1627_v8 = vpop.f32.mrb[14].mxu1 }
0x1d1c   :  { %v1631_v14 = vadd.f32 %v1627_v8, %v6080_v60  ;;  %v4643_v9 = vpop.f32.mrb[15].mxu1 }
0x1d1e   :  { %5273 = vtanh.f32 %v1631_v14  ;;  %v4238_v12 = vmul.f32 -1.442695, %v1631_v14 }
0x1d20   :  { %5275 = vpow2.f32 %v4238_v12 }
0x1d28   :  { %v5274_v10 = vpop.eup %5273 }
0x1d29   :  { %1644 = vrot.lane.b32.xlu0 %v5274_v10, %s5676_s26 }
0x1d2a   :  { %v5276_v13 = vpop.eup %5275 }
0x1d2b   :  { %v1635_v16 = vadd.f32 1.0, %v5276_v13 }
0x1d2d   :  { %5277 = vrcp.f32 %v1635_v16 }
0x1d37   :  { %v5278_v22 = vpop.eup %5277 }
0x1d38   :  { %v1642_v26 = vmul.f32 %v5278_v22, %v1640_v25 }
0x1d9b   :  { %v1645_v23 = vpop.permute.xlu0 %1644 }
0x1d9c   :  { %v1647_v24 = vmul.f32 %v5278_v22, %v1645_v23 }
0x1d9e   :  { %1649 = vrot.lane.b32.xlu1 %v1647_v24, %s5677_s3 }
0x1e10   :  { %v1650_v27 = vpop.permute.xlu1 %1649 }
0x1e11   :  { %v1652_v28 = vadd.f32 %v1650_v27, %v1642_v26 }
0x1e13   :  { %5279 = vtanh.f32 %v1652_v28  ;;  %v1751_v44 = vrot.slane %v1652_v28, 2 }
0x1e1d   :  { %v5280_v60 = vpop.eup %5279 }
0x1e1e   :  { %1655 = vrot.lane.b32.xlu0 %v5280_v60, %s5676_s26 }
0x1e90   :  { %v1656_v29 = vpop.permute.xlu0 %1655 }
0x1e91   :  { %v6131_v30 = vmul.f32 %v5278_v22, %v1656_v29 }
0x1e93   :  { %1665 = vrot.lane.b32.xlu1 %v6131_v30, %s5677_s3 }
0x1f05   :  { %v1666_v31 = vpop.permute.xlu1 %1665 }
0x1f06   :  { %4653 = vmatmul.mubr.msk.f32.vlgmr.msra.gmra.mrb[12].mxu0 %vm177_vm1, %v1666_v31 }
0x1f07   :  { %5023 = vmatpush3.bf16.msra.mxu0 %v6043_v46  ;;  %4674 = vmatprep.mubr.msk.f32.mxu0 %vm5674_vm0, %v5675_v1 }
0x1f08   :  { %5024 = vmatprep.subr.bf16.mxu0 %v5673_v0 }
0x1f0b   :  { %5026 = vmatpush3.bf16.msra.mxu0 %v6053_v51 }
0x1fd9   :  { %v1735_v32 = vpop.f32.mrb[12].mxu0 }
0x1fda   :  { %v1740_v33 = vrot.slane %v1735_v32, 2  ;;  %v4654_v7 = vpop.f32.mrb[13].mxu0 }
0x1fdc   :  { %v1742_v34 = vadd.f32 %v1740_v33, %v6076_v57 }
0x1fde   :  { %5281 = vtanh.f32 %v1742_v34  ;;  %v4240_v20 = vmul.f32 -1.442695, %v1742_v34  ;;  %v1103_v34 = vrot.slane %v6078_v58, 2 }
0x1fe0   :  { %5283 = vpow2.f32 %v4240_v20 }
0x1fe8   :  { %v5282_v35 = vpop.eup %5281 }
0x1fe9   :  { %1755 = vrot.lane.b32.xlu0 %v5282_v35, %s5676_s26 }
0x1fea   :  { %v5284_v37 = vpop.eup %5283 }
0x1feb   :  { %v1746_v39 = vadd.f32 1.0, %v5284_v37 }
0x1fed   :  { %5285 = vrcp.f32 %v1746_v39  ;;  %v1105_v39 = vadd.f32 %v1103_v34, %v5950_v18 }
0x1ff7   :  { %v5286_v40 = vpop.eup %5285 }
0x1ff8   :  { %v1753_v45 = vmul.f32 %v5286_v40, %v1751_v44 }
0x205b   :  { %v1756_v42 = vpop.permute.xlu0 %1755 }
0x205c   :  { %v1758_v43 = vmul.f32 %v5286_v40, %v1756_v42 }
0x205e   :  { %1760 = vrot.lane.b32.xlu1 %v1758_v43, %s5677_s3  ;;  %v4228_v43 = vmul.f32 -1.442695, %v1105_v39 }
0x20d0   :  { %v1761_v47 = vpop.permute.xlu1 %1760 }
0x20d1   :  { %v1763_v48 = vadd.f32 %v1761_v47, %v1753_v45 }
0x20d3   :  { %5287 = vtanh.f32 %v1763_v48 }
0x20dd   :  { %v5288_v49 = vpop.eup %5287 }
0x20de   :  { %1766 = vrot.lane.b32.xlu0 %v5288_v49, %s5676_s26 }
0x2150   :  { %v1767_v52 = vpop.permute.xlu0 %1766 }
0x2151   :  { %v6145_v15 = vmul.f32 %v5286_v40, %v1767_v52 }
0x2153   :  { %v1775_v53 = vrot.slane %v6145_v15, 6 }
0x2155   :  { %1776 = vrot.lane.b32.xlu1 %v1775_v53, %s5677_s3  ;;  %v1114_v53 = vrot.slane %v6038_v36, 6 }
0x21c7   :  { %v1777_v54 = vpop.permute.xlu1 %1776 }
0x21c8   :  { %4664 = vmatmul.mubr.msk.f32.vlgmr.msra.gmra.mrb[16].mxu1 %vm177_vm1, %v1777_v54 }
0x21c9   :  { %5029 = vmatpush3.bf16.msra.mxu1 %v6043_v46  ;;  %4685 = vmatprep.mubr.msk.f32.mxu1 %vm5674_vm0, %v5675_v1 }
0x21ca   :  { %5030 = vmatprep.subr.bf16.mxu1 %v5673_v0 }
0x21cd   :  { %5032 = vmatpush3.bf16.msra.mxu1 %v6053_v51  ;;  %v1862_v51 = vrot.slane %v1763_v48, 2 }
0x21ce   :  { %5049 = vmatprep.subr.bf16.mxu1 %v5673_v0 }
0x229b   :  { %v1846_v56 = vpop.f32.mrb[16].mxu1 }
0x229c   :  { %v1851_v59 = vrot.slane %v1846_v56, 4  ;;  %v4665_v61 = vpop.f32.mrb[17].mxu1 }
0x229e   :  { %v1853_v62 = vadd.f32 %v1851_v59, %v6076_v57 }
0x22a0   :  { %5289 = vtanh.f32 %v1853_v62  ;;  %v4242_v2 = vmul.f32 -1.442695, %v1853_v62 }
0x22a2   :  { %5291 = vpow2.f32 %v4242_v2 }
0x22aa   :  { %v5290_v63 = vpop.eup %5289 }
0x22ab   :  { %1866 = vrot.lane.b32.xlu0 %v5290_v63, %s5676_s26 }
0x22ac   :  { %v5292_v46 = vpop.eup %5291 }
0x22ad   :  { %v1857_v3 = vadd.f32 1.0, %v5292_v46 }
0x22af   :  { %5293 = vrcp.f32 %v1857_v3 }
0x22b9   :  { %v5294_v11 = vpop.eup %5293 }
0x22ba   :  { %v1864_v8 = vmul.f32 %v5294_v11, %v1862_v51 }
0x231d   :  { %v1867_v5 = vpop.permute.xlu0 %1866 }
0x231e   :  { %v1869_v6 = vmul.f32 %v5294_v11, %v1867_v5 }
0x2320   :  { %1871 = vrot.lane.b32.xlu1 %v1869_v6, %s5677_s3 }
0x2392   :  { %v1872_v14 = vpop.permute.xlu1 %1871 }
0x2393   :  { %v1874_v9 = vadd.f32 %v1872_v14, %v1864_v8 }
0x2395   :  { %5295 = vtanh.f32 %v1874_v9  ;;  %v1973_v7 = vrot.slane %v1874_v9, 2 }
0x239f   :  { %v5296_v10 = vpop.eup %5295 }
0x23a0   :  { %1877 = vrot.lane.b32.xlu0 %v5296_v10, %s5676_s26 }
0x2412   :  { %v1878_v12 = vpop.permute.xlu0 %1877 }
0x2413   :  { %v6160_v13 = vmul.f32 %v5294_v11, %v1878_v12 }
0x2415   :  { %v1886_v16 = vrot.slane %v6160_v13, 4 }
0x2417   :  { %1887 = vrot.lane.b32.xlu1 %v1886_v16, %s5677_s3  ;;  %v2107_v16 = vld [vmem:[%s6645_s7] sm:$0xff] }
0x2489   :  { %v1888_v22 = vpop.permute.xlu1 %1887 }
0x248a   :  { %4675 = vmatmul.mubr.msk.f32.vlgmr.msra.gmra.mrb[14].mxu0 %vm177_vm1, %v1888_v22  ;;  %v2108_v22 = vld [vmem:[%s6645_s7 + $0x8] sm:$0xff] }
0x255d   :  { %v1957_v23 = vpop.f32.mrb[14].mxu0 }
0x255e   :  { %v1962_v24 = vrot.slane %v1957_v23, 6  ;;  %v4676_v25 = vpop.f32.mrb[15].mxu0  ;;  %v5033_v23 = vpack.c.bf16 %v2108_v22, %v2107_v16 }
0x2560   :  { %v1964_v26 = vadd.f32 %v1962_v24, %v6076_v57  ;;  %5034 = vmatprep.subr.bf16.mxu0 %v5033_v23 }
0x2561   :  { %5036 = vmatpush3.bf16.msra.mxu0 %v5033_v23 }
0x2562   :  { %5297 = vtanh.f32 %v1964_v26  ;;  %v4244_v28 = vmul.f32 -1.442695, %v1964_v26  ;;  %v2111_v26 = vld [vmem:[%s6645_s7 + $0x20] sm:$0xff] }
0x2564   :  { %5299 = vpow2.f32 %v4244_v28  ;;  %v2205_v28 = vld [vmem:[#allocation13 + $0x8] sm:$0xff] }
0x256c   :  { %v5298_v27 = vpop.eup %5297 }
0x256d   :  { %1977 = vrot.lane.b32.xlu0 %v5298_v27, %s5676_s26  ;;  %v2204_v27 = vld [vmem:[#allocation13] sm:$0xff] }
0x256e   :  { %v5300_v60 = vpop.eup %5299 }
0x256f   :  { %v1968_v29 = vadd.f32 1.0, %v5300_v60  ;;  %v2113_v60 = vld [vmem:[%s6645_s7 + $0x30] sm:$0xff] }
0x2571   :  { %5301 = vrcp.f32 %v1968_v29  ;;  %v6240_v29 = vpack.c.bf16 %v2205_v28, %v2204_v27 }
0x257b   :  { %v5302_v31 = vpop.eup %5301 }
0x257c   :  { %v1975_v35 = vmul.f32 %v5302_v31, %v1973_v7  ;;  %v2207_v7 = vld [vmem:[#allocation13 + $0x18] sm:$0xff] }
0x25df   :  { %v1978_v32 = vpop.permute.xlu0 %1977 }
0x25e0   :  { %v1980_v33 = vmul.f32 %v5302_v31, %v1978_v32 }
0x25e2   :  { %1982 = vrot.lane.b32.xlu1 %v1980_v33, %s5677_s3  ;;  %v2206_v33 = vld [vmem:[#allocation13 + $0x10] sm:$0xff] }
0x25e3   :  { %v6247_v34 = vpack.c.bf16 %v2207_v7, %v2206_v33 }
0x2654   :  { %v1983_v20 = vpop.permute.xlu1 %1982 }
0x2655   :  { %v6169_v37 = vadd.f32 %v1983_v20, %v1975_v35 }
0x2657   :  { %5303 = vtanh.f32 %v6169_v37  ;;  %v2081_v14 = vrot.slane %v6169_v37, 2 }
0x2658   :  { %5305 = vtanh.f32 %v1105_v39 }
0x2659   :  { %5307 = vpow2.f32 %v4228_v43 }
0x2661   :  { %v5304_v40 = vpop.eup %5303 }
0x2662   :  { %1988 = vrot.lane.b32.xlu0 %v5304_v40, %s5676_s26  ;;  %v5306_v42 = vpop.eup %5305 }
0x2663   :  { %v5308_v44 = vpop.eup %5307 }
0x2664   :  { %v1109_v45 = vadd.f32 1.0, %v5308_v44 }
0x2666   :  { %1118 = vrot.lane.b32.xlu0 %v5306_v42, %s5676_s26  ;;  %5309 = vrcp.f32 %v1109_v45 }
0x2670   :  { %v6175_v49 = vpop.eup %5309 }
0x2671   :  { %v1116_v56 = vmul.f32 %v6175_v49, %v1114_v53 }
0x26d4   :  { %v1989_v58 = vpop.permute.xlu0 %1988 }
0x26d5   :  { %v1991_v47 = vmul.f32 %v5302_v31, %v1989_v58  ;;  %v2114_v31 = vld [vmem:[%s6645_s7 + $0x38] sm:$0xff] }
0x26d6   :  { %v5045_v32 = vpack.c.bf16 %v2114_v31, %v2113_v60 }
0x26d7   :  { %v1997_v48 = vrot.slane %v1991_v47, 2 }
0x26d8   :  { %v1119_v18 = vpop.permute.xlu0 %1118 }
0x26d9   :  { %v1121_v52 = vmul.f32 %v6175_v49, %v1119_v18  ;;  %1998 = vrot.lane.b32.xlu1 %v1997_v48, %s5677_s3 }
0x26db   :  { %1123 = vrot.lane.b32.xlu0 %v1121_v52, %s5677_s3  ;;  %v4247_v52 = vld [vmem:[#allocation15] ss:$0 sm:$0xff] }
0x274b   :  { %v1999_v54 = vpop.permute.xlu1 %1998 }
0x274c   :  { %4686 = vmatmul.mubr.msk.f32.vlgmr.msra.gmra.mrb[18].mxu1 %vm177_vm1, %v1999_v54 }
0x274d   :  { %v1124_v59 = vpop.permute.xlu0 %1123  ;;  %4715 = vmatprep.mubr.msk.f32.mxu1 %vm5674_vm0, %v5675_v1  ;;  %5051 = vmatpush3.bf16.msra.mxu1 %v6240_v29 }
0x274e   :  { %v1126_v61 = vadd.f32 %v1124_v59, %v1116_v56  ;;  %5052 = vmatprep.subr.bf16.mxu1 %v5673_v0 }
0x2750   :  { %5311 = vtanh.f32 %v1126_v61 }
0x2751   :  { %5054 = vmatpush3.bf16.msra.mxu1 %v6247_v34 }
0x2752   :  { %5055 = vmatprep.subr.bf16.mxu1 %v5673_v0 }
0x2754   :  { %4716 = vmatmul.mubr.f32.vlgmr.msra.gmra.mrb[20].mxu1 %v5675_v1 }
0x2755   :  { %5057 = vmatpush3.bf16.msra.mxu1 %v6240_v29  ;;  %4726 = vmatprep.mubr.msk.f32.mxu1 %vm5674_vm0, %v5675_v1 }
0x2756   :  { %5058 = vmatprep.subr.bf16.mxu1 %v5673_v0 }
0x2759   :  { %5060 = vmatpush3.bf16.msra.mxu1 %v6247_v34 }
0x275a   :  { %v5312_v62 = vpop.eup %5311  ;;  %5067 = vmatprep.subr.bf16.mxu1 %v5673_v0 }
0x275b   :  { %1129 = vrot.lane.b32.xlu0 %v5312_v62, %s5676_s26 }
0x275f   :  { %471 = vrot.lane.b32.xlu0 %v5971_v55, %s5677_s3 }
0x2763   :  { %695 = vrot.lane.b32.xlu0 %v6001_v38, %s5677_s3 }
0x2767   :  { %1023 = vrot.lane.b32.xlu0 %v6050_v50, %s5677_s3 }
0x276b   :  { %1771 = vrot.lane.b32.xlu0 %v6145_v15, %s5676_s26 }
0x276f   :  { %1993 = vrot.lane.b32.xlu0 %v1991_v47, %s5676_s26 }
0x2773   :  { %1327 = vrot.lane.b32.xlu0 %v6086_v21, %s5676_s26 }
0x2777   :  { %1551 = vrot.lane.b32.xlu0 %v6116_v4, %s5676_s26 }
0x27cd   :  { %v1130_v36 = vpop.permute.xlu0 %1129 }
0x27ce   :  { %v1132_v24 = vmul.f32 %v6175_v49, %v1130_v36 }
0x27d1   :  { %v472_v55 = vpop.permute.xlu0 %471 }
0x27d2   :  { %475 = vst.msk [vmem:[#allocation2] sm:$0xc] %vm474_vm3, %v472_v55 }
0x27d5   :  { %v696_v38 = vpop.permute.xlu0 %695 }
0x27d6   :  { %699 = vst.msk [vmem:[#allocation2] sm:$0xc0] %vm698_vm4, %v696_v38 }
0x27d9   :  { %v1024_v50 = vpop.permute.xlu0 %1023 }
0x27da   :  { %1026 = vst.msk [vmem:[#allocation2 + $0x8] sm:$0x30] %vm586_vm5, %v1024_v50 }
0x27dd   :  { %v1772_v15 = vpop.permute.xlu0 %1771 }
0x27de   :  { %1774 = vst.msk [vmem:[#allocation2] sm:$0xc0] %vm1330_vm6, %v1772_v15 }
0x27e1   :  { %v1994_v21 = vpop.permute.xlu0 %1993 }
0x27e2   :  { %1996 = vst.msk [vmem:[#allocation2] sm:$0xc] %vm1554_vm7, %v1994_v21 }
0x27e5   :  { %v1328_v37 = vpop.permute.xlu0 %1327 }
0x27e9   :  { %v1552_v42 = vpop.permute.xlu0 %1551 }
0x281f   :  { %v2068_v4 = vpop.f32.mrb[18].mxu1 }
0x2820   :  { %v2072_v63 = vadd.f32 %v2068_v4, %v6076_v57  ;;  %v4687_v2 = vpop.f32.mrb[19].mxu1 }
0x2822   :  { %5313 = vtanh.f32 %v2072_v63  ;;  %v4246_v3 = vmul.f32 -1.442695, %v2072_v63 }
0x2824   :  { %5315 = vpow2.f32 %v4246_v3 }
0x2827   :  { %v2274_v49 = vpop.f32.mrb[20].mxu1 }
0x2828   :  { %v4717_v18 = vpop.f32.mrb[21].mxu1 }
0x282c   :  { %v5314_v46 = vpop.eup %5313 }
0x282d   :  { %2085 = vrot.lane.b32.xlu1 %v5314_v46, %s5676_s26 }
0x282e   :  { %v5316_v11 = vpop.eup %5315 }
0x282f   :  { %v2076_v5 = vadd.f32 1.0, %v5316_v11 }
0x2831   :  { %5317 = vrcp.f32 %v2076_v5 }
0x283b   :  { %v5318_v6 = vpop.eup %5317 }
0x283c   :  { %v2083_v9 = vmul.f32 %v5318_v6, %v2081_v14 }
0x289f   :  { %v2086_v51 = vpop.permute.xlu1 %2085 }
0x28a0   :  { %v2088_v8 = vmul.f32 %v5318_v6, %v2086_v51 }
0x28a2   :  { %2090 = vrot.lane.b32.xlu1 %v2088_v8, %s5677_s3 }
0x2914   :  { %v2091_v10 = vpop.permute.xlu1 %2090 }
0x2915   :  { %v2093_v57 = vadd.f32 %v2091_v10, %v2083_v9 }
0x2917   :  { %5319 = vtanh.f32 %v2093_v57 }
0x2921   :  { %v5320_v12 = vpop.eup %5319 }
0x2922   :  { %2096 = vrot.lane.b32.xlu1 %v5320_v12, %s5676_s26 }
0x2926   :  { %583 = vrot.lane.b32.xlu1 %v5986_v17, %s5677_s3  ;;  %v2109_v17 = vld [vmem:[%s6645_s7 + $0x10] sm:$0xff] }
0x292a   :  { %912 = vrot.lane.b32.xlu1 %v6028_v19, %s5677_s3  ;;  %v2110_v19 = vld [vmem:[%s6645_s7 + $0x18] sm:$0xff] }
0x292b   :  { %v5037_v25 = vpack.c.bf16 %v2110_v19, %v2109_v17 }
0x292d   :  { %5038 = vmatprep.subr.bf16.mxu0 %v5037_v25 }
0x292e   :  { %1134 = vrot.lane.b32.xlu1 %v1132_v24, %s5677_s3  ;;  %5040 = vmatpush3.bf16.msra.mxu0 %v5037_v25 }
0x2932   :  { %1882 = vrot.lane.b32.xlu1 %v6160_v13, %s5676_s26  ;;  %v2112_v13 = vld [vmem:[%s6645_s7 + $0x28] sm:$0xff] }
0x2936   :  { %1439 = vrot.lane.b32.xlu1 %v6101_v41, %s5676_s26  ;;  %v5041_v41 = vpack.c.bf16 %v2112_v13, %v2111_v26 }
0x2938   :  { %5042 = vmatprep.subr.bf16.mxu0 %v5041_v41 }
0x2939   :  { %5044 = vmatpush3.bf16.msra.mxu0 %v5041_v41 }
0x293a   :  { %5046 = vmatprep.subr.bf16.mxu0 %v5045_v32 }
0x293d   :  { %5048 = vmatpush3.bf16.msra.mxu0 %v5045_v32 }
0x293e   :  { %5061 = vmatprep.subr.bf16.mxu0 %v5673_v0 }
0x2994   :  { %v2097_v35 = vpop.permute.xlu1 %2096 }
0x2995   :  { %v2099_v20 = vmul.f32 %v5318_v6, %v2097_v35 }
0x2997   :  { %2101 = vrot.lane.b32.xlu1 %v2099_v20, %s5676_s26 }
0x2998   :  { %v584_v39 = vpop.permute.xlu1 %583 }
0x2999   :  { %587 = vst.msk [vmem:[#allocation2] sm:$0x30] %vm586_vm5, %v584_v39 }
0x299b   :  { %1660 = vrot.lane.b32.xlu1 %v6131_v30, %s5676_s26 }
0x299c   :  { %v913_v40 = vpop.permute.xlu1 %912 }
0x299d   :  { %915 = vst.msk [vmem:[#allocation2 + $0x8] sm:$0xc] %vm474_vm3, %v913_v40 }
0x299e   :  { %1555 = vst.msk [vmem:[#allocation2 + $0x8] sm:$0xc] %vm1554_vm7, %v1552_v42 }
0x29a0   :  { %v1135_v43 = vpop.permute.xlu1 %1134 }
0x29a1   :  { %1137 = vst.msk [vmem:[#allocation2 + $0x8] sm:$0xc0] %vm698_vm4, %v1135_v43 }
0x29a2   :  { %1331 = vst.msk [vmem:[#allocation2 + $0x8] sm:$0xc0] %vm1330_vm6, %v1328_v37 }
0x29a4   :  { %v1883_v44 = vpop.permute.xlu1 %1882 }
0x29a5   :  { %1885 = vst.msk [vmem:[#allocation2] sm:$0x30] %vm1442_vm8, %v1883_v44 }
0x29a8   :  { %v1440_v30 = vpop.permute.xlu1 %1439 }
0x29a9   :  { %1443 = vst.msk [vmem:[#allocation2 + $0x8] sm:$0x30] %vm1442_vm8, %v1440_v30 }
0x2a09   :  { %v2102_v45 = vpop.permute.xlu1 %2101 }
0x2a0a   :  { %2104 = vst.msk [vmem:[#allocation2] sm:$0x3] %vm1663_vm9, %v2102_v45 }
0x2a0d   :  { %v1661_v58 = vpop.permute.xlu1 %1660 }
0x2a0e   :  { %1664 = vst.msk [vmem:[#allocation2 + $0x8] sm:$0x3] %vm1663_vm9, %v1661_v58 }
0x2a11   :  { %v6271_v47 = vld [vmem:[#allocation2] sm:$0xff] }
0x2a12   :  { %4704 = vmatprep.mubr.msk.f32.mxu0 %vm2122_vm10, %v6271_v47 }
0x2a15   :  { %v6275_v48 = vld [vmem:[#allocation2 + $0x8] sm:$0xff] }
0x2a16   :  { %4705 = vmatmul.mubr.msk.f32.vlgmr.msra.gmra.mrb[16].mxu0 %vm2122_vm10, %v6275_v48 }
0x2a17   :  { %5063 = vmatpush3.bf16.msra.mxu0 %v6240_v29  ;;  %4737 = vmatprep.mubr.msk.f32.mxu0 %vm5674_vm0, %v5675_v1 }
0x2a18   :  { %5064 = vmatprep.subr.bf16.mxu0 %v5673_v0 }
0x2a1b   :  { %5066 = vmatpush3.bf16.msra.mxu0 %v6247_v34 }
0x2a1c   :  { %5073 = vmatprep.subr.bf16.mxu0 %v5673_v0 }
0x2ae9   :  { %v4706_v53 = vpop.f32.mrb[16].mxu0 }
0x2aea   :  { %v6285_v54 = vadd.f32 %v4706_v53, %v4247_v52  ;;  %v2195_v56 = vpop.f32.mrb[17].mxu0 }
0x2aeb   :  { %v6287_v59 = vadd.f32 %v4247_v52, %v2195_v56 }
0x2aed   :  { %v2278_v61 = vadd.f32 %v2274_v49, %v6287_v59 }
0x2aef   :  { %5321 = vtanh.f32 %v2278_v61  ;;  %v4250_v36 = vmul.f32 -1.442695, %v2278_v61 }
0x2af1   :  { %5323 = vpow2.f32 %v4250_v36 }
0x2af9   :  { %v5322_v62 = vpop.eup %5321 }
0x2afa   :  { %2288 = vrot.lane.b32.xlu0 %v5322_v62, %s5676_s26 }
0x2afb   :  { %v5324_v55 = vpop.eup %5323 }
0x2afc   :  { %v2282_v38 = vadd.f32 1.0, %v5324_v55 }
0x2afe   :  { %5325 = vrcp.f32 %v2282_v38 }
0x2b08   :  { %v5326_v50 = vpop.eup %5325 }
0x2b09   :  { %v2286_v4 = vmul.f32 0.0, %v5326_v50 }
0x2b6c   :  { %v2289_v15 = vpop.permute.xlu0 %2288 }
0x2b6d   :  { %v2291_v21 = vmul.f32 %v5326_v50, %v2289_v15 }
0x2b6f   :  { %2293 = vrot.lane.b32.xlu1 %v2291_v21, %s5677_s3 }
0x2be1   :  { %v2294_v63 = vpop.permute.xlu1 %2293 }
0x2be2   :  { %v2296_v2 = vadd.f32 %v2294_v63, %v2286_v4 }
0x2be4   :  { %5327 = vtanh.f32 %v2296_v2  ;;  %v2392_v24 = vrot.slane %v2296_v2, 6 }
0x2bee   :  { %v5328_v46 = vpop.eup %5327 }
0x2bef   :  { %2299 = vrot.lane.b32.xlu0 %v5328_v46, %s5676_s26 }
0x2c61   :  { %v2300_v3 = vpop.permute.xlu0 %2299 }
0x2c62   :  { %v2302_v11 = vmul.f32 %v5326_v50, %v2300_v3 }
0x2c64   :  { %2304 = vrot.lane.b32.xlu1 %v2302_v11, %s5677_s3 }
0x2cd6   :  { %v2305_v5 = vpop.permute.xlu1 %2304 }
0x2cd7   :  { %2307 = vst.msk [vmem:[#allocation3] sm:$0x3] %vm365_vm2, %v2305_v5  ;;  %4727 = vmatmul.mubr.msk.f32.vlgmr.msra.gmra.mrb[22].mxu1 %vm177_vm1, %v2305_v5 }
0x2cd8   :  { %5069 = vmatpush3.bf16.msra.mxu1 %v6240_v29  ;;  %4748 = vmatprep.mubr.msk.f32.mxu1 %vm5674_vm0, %v5675_v1 }
0x2cd9   :  { %5070 = vmatprep.subr.bf16.mxu1 %v5673_v0 }
0x2cdc   :  { %5072 = vmatpush3.bf16.msra.mxu1 %v6247_v34 }
0x2cdd   :  { %5079 = vmatprep.subr.bf16.mxu1 %v5673_v0 }
0x2daa   :  { %v2376_v6 = vpop.f32.mrb[22].mxu1 }
0x2dab   :  { %v2381_v51 = vrot.slane %v2376_v6, 6  ;;  %v4728_v8 = vpop.f32.mrb[23].mxu1 }
0x2dad   :  { %v2383_v14 = vadd.f32 %v2381_v51, %v6287_v59 }
0x2daf   :  { %5329 = vtanh.f32 %v2383_v14  ;;  %v4252_v10 = vmul.f32 -1.442695, %v2383_v14 }
0x2db1   :  { %5331 = vpow2.f32 %v4252_v10 }
0x2db9   :  { %v5330_v9 = vpop.eup %5329 }
0x2dba   :  { %2396 = vrot.lane.b32.xlu0 %v5330_v9, %s5676_s26 }
0x2dbb   :  { %v5332_v57 = vpop.eup %5331 }
0x2dbc   :  { %v2387_v12 = vadd.f32 1.0, %v5332_v57 }
0x2dbe   :  { %5333 = vrcp.f32 %v2387_v12 }
0x2dc8   :  { %v5334_v16 = vpop.eup %5333 }
0x2dc9   :  { %v2394_v17 = vmul.f32 %v5334_v16, %v2392_v24 }
0x2e2c   :  { %v2397_v22 = vpop.permute.xlu0 %2396 }
0x2e2d   :  { %v2399_v23 = vmul.f32 %v5334_v16, %v2397_v22 }
0x2e2f   :  { %2401 = vrot.lane.b32.xlu1 %v2399_v23, %s5677_s3 }
0x2ea1   :  { %v2402_v19 = vpop.permute.xlu1 %2401 }
0x2ea2   :  { %v2404_v25 = vadd.f32 %v2402_v19, %v2394_v17 }
0x2ea4   :  { %5335 = vtanh.f32 %v2404_v25  ;;  %v2503_v43 = vrot.slane %v2404_v25, 6 }
0x2eae   :  { %v5336_v26 = vpop.eup %5335 }
0x2eaf   :  { %2407 = vrot.lane.b32.xlu0 %v5336_v26, %s5676_s26 }
0x2f21   :  { %v2408_v13 = vpop.permute.xlu0 %2407 }
0x2f22   :  { %v6306_v41 = vmul.f32 %v5334_v16, %v2408_v13 }
0x2f24   :  { %v2416_v27 = vrot.slane %v6306_v41, 2 }
0x2f26   :  { %2417 = vrot.lane.b32.xlu1 %v2416_v27, %s5677_s3 }
0x2f98   :  { %v2418_v28 = vpop.permute.xlu1 %2417 }
0x2f99   :  { %4738 = vmatmul.mubr.msk.f32.vlgmr.msra.gmra.mrb[18].mxu0 %vm177_vm1, %v2418_v28 }
0x2f9a   :  { %5075 = vmatpush3.bf16.msra.mxu0 %v6240_v29  ;;  %4759 = vmatprep.mubr.msk.f32.mxu0 %vm5674_vm0, %v5675_v1 }
0x2f9b   :  { %5076 = vmatprep.subr.bf16.mxu0 %v5673_v0 }
0x2f9e   :  { %5078 = vmatpush3.bf16.msra.mxu0 %v6247_v34 }
0x2f9f   :  { %5085 = vmatprep.subr.bf16.mxu0 %v5673_v0 }
0x306c   :  { %v2487_v60 = vpop.f32.mrb[18].mxu0 }
0x306d   :  { %v2492_v31 = vrot.slane %v2487_v60, 4  ;;  %v4739_v32 = vpop.f32.mrb[19].mxu0 }
0x306f   :  { %v2494_v33 = vadd.f32 %v2492_v31, %v6287_v59 }
0x3071   :  { %5337 = vtanh.f32 %v2494_v33  ;;  %v4254_v35 = vmul.f32 -1.442695, %v2494_v33 }
0x3073   :  { %5339 = vpow2.f32 %v4254_v35 }
0x307b   :  { %v5338_v7 = vpop.eup %5337 }
0x307c   :  { %2507 = vrot.lane.b32.xlu0 %v5338_v7, %s5676_s26 }
0x307d   :  { %v5340_v20 = vpop.eup %5339 }
0x307e   :  { %v2498_v37 = vadd.f32 1.0, %v5340_v20 }
0x3080   :  { %5341 = vrcp.f32 %v2498_v37 }
0x308a   :  { %v5342_v39 = vpop.eup %5341 }
0x308b   :  { %v2505_v44 = vmul.f32 %v5342_v39, %v2503_v43 }
0x30ee   :  { %v2508_v40 = vpop.permute.xlu0 %2507 }
0x30ef   :  { %v2510_v42 = vmul.f32 %v5342_v39, %v2508_v40 }
0x30f1   :  { %2512 = vrot.lane.b32.xlu1 %v2510_v42, %s5677_s3 }
0x3163   :  { %v2513_v30 = vpop.permute.xlu1 %2512 }
0x3164   :  { %v2515_v45 = vadd.f32 %v2513_v30, %v2505_v44 }
0x3166   :  { %5343 = vtanh.f32 %v2515_v45  ;;  %v2614_v2 = vrot.slane %v2515_v45, 6 }
0x3170   :  { %v5344_v58 = vpop.eup %5343 }
0x3171   :  { %2518 = vrot.lane.b32.xlu0 %v5344_v58, %s5676_s26  ;;  %v3076_v58 = vld [vmem:[%s6648_s10] sm:$0xff] }
0x31e3   :  { %v2519_v49 = vpop.permute.xlu0 %2518 }
0x31e4   :  { %v6321_v18 = vmul.f32 %v5342_v39, %v2519_v49  ;;  %v3077_v49 = vld [vmem:[%s6648_s10 + $0x8] sm:$0xff] }
0x31e6   :  { %v2527_v52 = vrot.slane %v6321_v18, 4 }
0x31e8   :  { %2528 = vrot.lane.b32.xlu1 %v2527_v52, %s5677_s3  ;;  %v5097_v52 = vpack.c.bf16 %v3077_v49, %v3076_v58 }
0x325a   :  { %v2529_v53 = vpop.permute.xlu1 %2528 }
0x325b   :  { %4749 = vmatmul.mubr.msk.f32.vlgmr.msra.gmra.mrb[24].mxu1 %vm177_vm1, %v2529_v53 }
0x325c   :  { %5081 = vmatpush3.bf16.msra.mxu1 %v6240_v29  ;;  %4770 = vmatprep.mubr.msk.f32.mxu1 %vm5674_vm0, %v5675_v1 }
0x325d   :  { %5082 = vmatprep.subr.bf16.mxu1 %v5673_v0 }
0x3260   :  { %5084 = vmatpush3.bf16.msra.mxu1 %v6247_v34 }
0x3261   :  { %5091 = vmatprep.subr.bf16.mxu1 %v5673_v0 }
0x332e   :  { %v2598_v56 = vpop.f32.mrb[24].mxu1 }
0x332f   :  { %v2603_v61 = vrot.slane %v2598_v56, 2  ;;  %v4750_v62 = vpop.f32.mrb[25].mxu1 }
0x3331   :  { %v2605_v36 = vadd.f32 %v2603_v61, %v6287_v59 }
0x3333   :  { %5345 = vtanh.f32 %v2605_v36  ;;  %v4256_v38 = vmul.f32 -1.442695, %v2605_v36  ;;  %v3078_v36 = vld [vmem:[%s6648_s10 + $0x10] sm:$0xff] }
0x3335   :  { %5347 = vpow2.f32 %v4256_v38 }
0x333d   :  { %v5346_v55 = vpop.eup %5345 }
0x333e   :  { %2618 = vrot.lane.b32.xlu0 %v5346_v55, %s5676_s26  ;;  %v3079_v55 = vld [vmem:[%s6648_s10 + $0x18] sm:$0xff] }
0x333f   :  { %v5348_v50 = vpop.eup %5347  ;;  %v5101_v38 = vpack.c.bf16 %v3079_v55, %v3078_v36 }
0x3340   :  { %v2609_v15 = vadd.f32 1.0, %v5348_v50 }
0x3342   :  { %5349 = vrcp.f32 %v2609_v15  ;;  %v3080_v15 = vld [vmem:[%s6648_s10 + $0x20] sm:$0xff] }
0x334c   :  { %v5350_v21 = vpop.eup %5349 }
0x334d   :  { %v2616_v46 = vmul.f32 %v5350_v21, %v2614_v2  ;;  %v3083_v2 = vld [vmem:[%s6648_s10 + $0x38] sm:$0xff] }
0x33b0   :  { %v2619_v4 = vpop.permute.xlu0 %2618 }
0x33b1   :  { %v2621_v63 = vmul.f32 %v5350_v21, %v2619_v4 }
0x33b3   :  { %2623 = vrot.lane.b32.xlu1 %v2621_v63, %s5677_s3  ;;  %v3082_v63 = vld [vmem:[%s6648_s10 + $0x30] sm:$0xff] }
0x3425   :  { %v2624_v3 = vpop.permute.xlu1 %2623 }
0x3426   :  { %v2626_v11 = vadd.f32 %v2624_v3, %v2616_v46  ;;  %v5109_v46 = vpack.c.bf16 %v3083_v2, %v3082_v63 }
0x3428   :  { %5351 = vtanh.f32 %v2626_v11  ;;  %v2722_v19 = vrot.slane %v2626_v11, 6 }
0x3432   :  { %v5352_v59 = vpop.eup %5351 }
0x3433   :  { %2629 = vrot.lane.b32.xlu0 %v5352_v59, %s5676_s26 }
0x34a5   :  { %v2630_v5 = vpop.permute.xlu0 %2629 }
0x34a6   :  { %v6336_v6 = vmul.f32 %v5350_v21, %v2630_v5  ;;  %v3081_v21 = vld [vmem:[%s6648_s10 + $0x28] sm:$0xff] }
0x34a7   :  { %v5105_v4 = vpack.c.bf16 %v3081_v21, %v3080_v15 }
0x34a8   :  { %v2638_v51 = vrot.slane %v6336_v6, 6 }
0x34aa   :  { %2639 = vrot.lane.b32.xlu1 %v2638_v51, %s5677_s3  ;;  %v4265_v51 = vld [vmem:[%s6650_s12] ss:$0 sm:$0xff] }
0x351c   :  { %v2640_v8 = vpop.permute.xlu1 %2639 }
0x351d   :  { %4760 = vmatmul.mubr.msk.f32.vlgmr.msra.gmra.mrb[20].mxu0 %vm177_vm1, %v2640_v8 }
0x351e   :  { %5087 = vmatpush3.bf16.msra.mxu0 %v6240_v29  ;;  %4781 = vmatprep.mubr.msk.f32.mxu0 %vm5674_vm0, %v5675_v1 }
0x351f   :  { %5088 = vmatprep.subr.bf16.mxu0 %v5673_v0 }
0x3522   :  { %5090 = vmatpush3.bf16.msra.mxu0 %v6247_v34 }
0x3523   :  { %5098 = vmatprep.subr.bf16.mxu0 %v5097_v52 }
0x35f0   :  { %v2709_v14 = vpop.f32.mrb[20].mxu0 }
0x35f1   :  { %v2713_v9 = vadd.f32 %v2709_v14, %v6285_v54  ;;  %v4761_v10 = vpop.f32.mrb[21].mxu0 }
0x35f3   :  { %5353 = vtanh.f32 %v2713_v9  ;;  %v4258_v12 = vmul.f32 -1.442695, %v2713_v9 }
0x35f5   :  { %5355 = vpow2.f32 %v4258_v12 }
0x35fd   :  { %v5354_v57 = vpop.eup %5353 }
0x35fe   :  { %2726 = vrot.lane.b32.xlu0 %v5354_v57, %s5676_s26 }
0x35ff   :  { %v5356_v16 = vpop.eup %5355 }
0x3600   :  { %v2717_v22 = vadd.f32 1.0, %v5356_v16 }
0x3602   :  { %5357 = vrcp.f32 %v2717_v22 }
0x360c   :  { %v5358_v23 = vpop.eup %5357 }
0x360d   :  { %v2724_v25 = vmul.f32 %v5358_v23, %v2722_v19 }
0x3670   :  { %v2727_v24 = vpop.permute.xlu0 %2726 }
0x3671   :  { %v2729_v17 = vmul.f32 %v5358_v23, %v2727_v24 }
0x3673   :  { %2731 = vrot.lane.b32.xlu1 %v2729_v17, %s5677_s3 }
0x36e5   :  { %v2732_v26 = vpop.permute.xlu1 %2731 }
0x36e6   :  { %v2734_v13 = vadd.f32 %v2732_v26, %v2724_v25  ;;  %v3166_v26 = vld [vmem:[#allocation16] sm:$0xff] }
0x36e8   :  { %5359 = vtanh.f32 %v2734_v13 }
0x36f2   :  { %v5360_v27 = vpop.eup %5359 }
0x36f3   :  { %2737 = vrot.lane.b32.xlu0 %v5360_v27, %s5676_s26 }
0x3765   :  { %v2738_v28 = vpop.permute.xlu0 %2737 }
0x3766   :  { %v2740_v60 = vmul.f32 %v5358_v23, %v2738_v28  ;;  %v3168_v28 = vld [vmem:[#allocation16 + $0x10] sm:$0xff] }
0x3768   :  { %2742 = vrot.lane.b32.xlu1 %v2740_v60, %s5677_s3  ;;  %v3169_v60 = vld [vmem:[#allocation16 + $0x18] sm:$0xff] }
0x37da   :  { %v2743_v31 = vpop.permute.xlu1 %2742 }
0x37db   :  { %2745 = vst.msk [vmem:[#allocation3 + $0x8] sm:$0x3] %vm365_vm2, %v2743_v31  ;;  %4771 = vmatmul.mubr.msk.f32.vlgmr.msra.gmra.mrb[26].mxu1 %vm177_vm1, %v2743_v31  ;;  %v6415_v31 = vpack.c.bf16 %v3169_v60, %v3168_v28 }
0x37dc   :  { %5093 = vmatpush3.bf16.msra.mxu1 %v6240_v29  ;;  %4792 = vmatprep.mubr.msk.f32.mxu1 %vm5674_vm0, %v5675_v1 }
0x37dd   :  { %5094 = vmatprep.subr.bf16.mxu1 %v5673_v0 }
0x37e0   :  { %5096 = vmatpush3.bf16.msra.mxu1 %v6247_v34  ;;  %v2830_v34 = vrot.slane %v2734_v13, 6  ;;  %v3167_v13 = vld [vmem:[#allocation16 + $0x8] sm:$0xff] }
0x37e1   :  { %5113 = vmatprep.subr.bf16.mxu1 %v5673_v0  ;;  %v6411_v27 = vpack.c.bf16 %v3167_v13, %v3166_v26 }
0x38ae   :  { %v2814_v32 = vpop.f32.mrb[26].mxu1 }
0x38af   :  { %v2819_v33 = vrot.slane %v2814_v32, 6  ;;  %v4772_v7 = vpop.f32.mrb[27].mxu1 }
0x38b1   :  { %v2821_v35 = vadd.f32 %v2819_v33, %v6285_v54 }
0x38b3   :  { %5361 = vtanh.f32 %v2821_v35  ;;  %v4260_v37 = vmul.f32 -1.442695, %v2821_v35 }
0x38b5   :  { %5363 = vpow2.f32 %v4260_v37 }
0x38bd   :  { %v5362_v20 = vpop.eup %5361 }
0x38be   :  { %2834 = vrot.lane.b32.xlu0 %v5362_v20, %s5676_s26 }
0x38bf   :  { %v5364_v29 = vpop.eup %5363 }
0x38c0   :  { %v2825_v39 = vadd.f32 1.0, %v5364_v29 }
0x38c2   :  { %5365 = vrcp.f32 %v2825_v39 }
0x38cc   :  { %v5366_v40 = vpop.eup %5365 }
0x38cd   :  { %v2832_v44 = vmul.f32 %v5366_v40, %v2830_v34 }
0x3930   :  { %v2835_v42 = vpop.permute.xlu0 %2834 }
0x3931   :  { %v2837_v43 = vmul.f32 %v5366_v40, %v2835_v42 }
0x3933   :  { %2839 = vrot.lane.b32.xlu1 %v2837_v43, %s5677_s3 }
0x39a5   :  { %v2840_v30 = vpop.permute.xlu1 %2839 }
0x39a6   :  { %v2842_v45 = vadd.f32 %v2840_v30, %v2832_v44 }
0x39a8   :  { %5367 = vtanh.f32 %v2842_v45  ;;  %v2941_v23 = vrot.slane %v2842_v45, 6 }
0x39b2   :  { %v5368_v53 = vpop.eup %5367 }
0x39b3   :  { %2845 = vrot.lane.b32.xlu0 %v5368_v53, %s5676_s26 }
0x3a25   :  { %v2846_v56 = vpop.permute.xlu0 %2845 }
0x3a26   :  { %v6369_v61 = vmul.f32 %v5366_v40, %v2846_v56 }
0x3a28   :  { %v2854_v62 = vrot.slane %v6369_v61, 2 }
0x3a2a   :  { %2855 = vrot.lane.b32.xlu1 %v2854_v62, %s5677_s3 }
0x3a9c   :  { %v2856_v50 = vpop.permute.xlu1 %2855 }
0x3a9d   :  { %4782 = vmatmul.mubr.msk.f32.vlgmr.msra.gmra.mrb[22].mxu0 %vm177_vm1, %v2856_v50 }
0x3a9e   :  { %5100 = vmatpush3.bf16.msra.mxu0 %v5097_v52  ;;  %4811 = vmatprep.mubr.msk.f32.mxu0 %vm2122_vm10, %v6271_v47 }
0x3a9f   :  { %5102 = vmatprep.subr.bf16.mxu0 %v5101_v38 }
0x3aa2   :  { %5104 = vmatpush3.bf16.msra.mxu0 %v5101_v38 }
0x3aa3   :  { %5106 = vmatprep.subr.bf16.mxu0 %v5105_v4 }
0x3aa6   :  { %5108 = vmatpush3.bf16.msra.mxu0 %v5105_v4 }
0x3aa7   :  { %5110 = vmatprep.subr.bf16.mxu0 %v5109_v46 }
0x3aaa   :  { %5112 = vmatpush3.bf16.msra.mxu0 %v5109_v46 }
0x3aab   :  { %5125 = vmatprep.subr.bf16.mxu0 %v5673_v0 }
0x3aad   :  { %4812 = vmatmul.mubr.msk.f32.vlgmr.msra.gmra.mrb[24].mxu0 %vm2122_vm10, %v6275_v48 }
0x3aae   :  { %4844 = vmatprep.mubr.msk.f32.mxu0 %vm5674_vm0, %v5675_v1  ;;  %5127 = vmatpush3.bf16.msra.mxu0 %v6411_v27 }
0x3aaf   :  { %5128 = vmatprep.subr.bf16.mxu0 %v5673_v0 }
0x3ab2   :  { %5130 = vmatpush3.bf16.msra.mxu0 %v6415_v31 }
0x3ab3   :  { %5137 = vmatprep.subr.bf16.mxu0 %v5673_v0 }
0x3b70   :  { %v2925_v47 = vpop.f32.mrb[22].mxu0 }
0x3b71   :  { %v2930_v3 = vrot.slane %v2925_v47, 4  ;;  %v4783_v11 = vpop.f32.mrb[23].mxu0 }
0x3b73   :  { %v2932_v59 = vadd.f32 %v2930_v3, %v6285_v54 }
0x3b75   :  { %5369 = vtanh.f32 %v2932_v59  ;;  %v4262_v48 = vmul.f32 -1.442695, %v2932_v59 }
0x3b77   :  { %5371 = vpow2.f32 %v4262_v48 }
0x3b7f   :  { %v5370_v5 = vpop.eup %5369 }
0x3b80   :  { %v4813_v8 = vpop.f32.mrb[24].mxu0  ;;  %2945 = vrot.lane.b32.xlu0 %v5370_v5, %s5676_s26 }
0x3b81   :  { %v3157_v14 = vpop.f32.mrb[25].mxu0  ;;  %v5372_v10 = vpop.eup %5371  ;;  %v6439_v39 = vadd.f32 %v4813_v8, %v4265_v51 }
0x3b82   :  { %v6404_v9 = vadd.f32 %v4265_v51, %v3157_v14  ;;  %v2936_v57 = vadd.f32 1.0, %v5372_v10 }
0x3b84   :  { %5373 = vrcp.f32 %v2936_v57 }
0x3b8e   :  { %v5374_v12 = vpop.eup %5373 }
0x3b8f   :  { %v2943_v24 = vmul.f32 %v5374_v12, %v2941_v23 }
0x3bf2   :  { %v2946_v16 = vpop.permute.xlu0 %2945 }
0x3bf3   :  { %v2948_v22 = vmul.f32 %v5374_v12, %v2946_v16 }
0x3bf5   :  { %2950 = vrot.lane.b32.xlu1 %v2948_v22, %s5677_s3 }
0x3c67   :  { %v2951_v17 = vpop.permute.xlu1 %2950 }
0x3c68   :  { %v6407_v19 = vadd.f32 %v2951_v17, %v2943_v24 }
0x3c6a   :  { %5375 = vtanh.f32 %v6407_v19 }
0x3c74   :  { %v5376_v25 = vpop.eup %5375 }
0x3c75   :  { %2956 = vrot.lane.b32.xlu0 %v5376_v25, %s5676_s26 }
0x3ce7   :  { %v2957_v32 = vpop.permute.xlu0 %2956 }
0x3ce8   :  { %v6419_v33 = vmul.f32 %v5374_v12, %v2957_v32 }
0x3cea   :  { %v2965_v7 = vrot.slane %v6419_v33, 4 }
0x3cec   :  { %2966 = vrot.lane.b32.xlu1 %v2965_v7, %s5677_s3 }
0x3d5e   :  { %v2967_v35 = vpop.permute.xlu1 %2966 }
0x3d5f   :  { %4793 = vmatmul.mubr.msk.f32.vlgmr.msra.gmra.mrb[28].mxu1 %vm177_vm1, %v2967_v35 }
0x3d60   :  { %5115 = vmatpush3.bf16.msra.mxu1 %v6411_v27  ;;  %4822 = vmatprep.mubr.msk.f32.mxu1 %vm5674_vm0, %v5675_v1 }
0x3d61   :  { %5116 = vmatprep.subr.bf16.mxu1 %v5673_v0 }
0x3d64   :  { %5118 = vmatpush3.bf16.msra.mxu1 %v6415_v31 }
0x3d65   :  { %5119 = vmatprep.subr.bf16.mxu1 %v5673_v0 }
0x3d67   :  { %4823 = vmatmul.mubr.f32.vlgmr.msra.gmra.mrb[30].mxu1 %v5675_v1 }
0x3d68   :  { %5121 = vmatpush3.bf16.msra.mxu1 %v6411_v27  ;;  %4833 = vmatprep.mubr.msk.f32.mxu1 %vm5674_vm0, %v5675_v1 }
0x3d69   :  { %5122 = vmatprep.subr.bf16.mxu1 %v5673_v0 }
0x3d6c   :  { %5124 = vmatpush3.bf16.msra.mxu1 %v6415_v31 }
0x3d6d   :  { %5131 = vmatprep.subr.bf16.mxu1 %v5673_v0 }
0x3e32   :  { %v6437_v20 = vpop.f32.mrb[28].mxu1 }
0x3e33   :  { %v4794_v37 = vpop.f32.mrb[29].mxu1 }
0x3e3a   :  { %v3236_v29 = vpop.f32.mrb[30].mxu1 }
0x3e3b   :  { %v3241_v40 = vrot.slane %v3236_v29, 2  ;;  %v4824_v42 = vpop.f32.mrb[31].mxu1 }
0x3e3d   :  { %v3243_v43 = vadd.f32 %v3241_v40, %v6439_v39 }
0x3e3f   :  { %5377 = vtanh.f32 %v3243_v43  ;;  %v4268_v44 = vmul.f32 -1.442695, %v3243_v43 }
0x3e41   :  { %5379 = vpow2.f32 %v4268_v44 }
0x3e49   :  { %v5378_v34 = vpop.eup %5377 }
0x3e4a   :  { %3253 = vrot.lane.b32.xlu0 %v5378_v34, %s5676_s26 }
0x3e4b   :  { %v5380_v30 = vpop.eup %5379 }
0x3e4c   :  { %v3247_v45 = vadd.f32 1.0, %v5380_v30 }
0x3e4e   :  { %5381 = vrcp.f32 %v3247_v45 }
0x3e58   :  { %v5382_v58 = vpop.eup %5381 }
0x3e59   :  { %v3251_v53 = vmul.f32 0.0, %v5382_v58 }
0x3ebc   :  { %v3254_v49 = vpop.permute.xlu0 %3253 }
0x3ebd   :  { %v3256_v52 = vmul.f32 %v5382_v58, %v3254_v49 }
0x3ebf   :  { %3258 = vrot.lane.b32.xlu1 %v3256_v52, %s5677_s3 }
0x3f31   :  { %v3259_v56 = vpop.permute.xlu1 %3258 }
0x3f32   :  { %v3261_v62 = vadd.f32 %v3259_v56, %v3251_v53 }
0x3f34   :  { %5383 = vtanh.f32 %v3261_v62  ;;  %v3360_v8 = vrot.slane %v3261_v62, 2 }
0x3f3e   :  { %v5384_v36 = vpop.eup %5383 }
0x3f3f   :  { %3264 = vrot.lane.b32.xlu0 %v5384_v36, %s5676_s26 }
0x3fb1   :  { %v3265_v55 = vpop.permute.xlu0 %3264 }
0x3fb2   :  { %v6445_v38 = vmul.f32 %v5382_v58, %v3265_v55 }
0x3fb4   :  { %v3273_v50 = vrot.slane %v6445_v38, 6 }
0x3fb6   :  { %3274 = vrot.lane.b32.xlu1 %v3273_v50, %s5677_s3 }
0x4028   :  { %v3275_v15 = vpop.permute.xlu1 %3274 }
0x4029   :  { %4834 = vmatmul.mubr.msk.f32.vlgmr.msra.gmra.mrb[32].mxu1 %vm177_vm1, %v3275_v15 }
0x402a   :  { %5133 = vmatpush3.bf16.msra.mxu1 %v6411_v27  ;;  %4855 = vmatprep.mubr.msk.f32.mxu1 %vm5674_vm0, %v5675_v1 }
0x402b   :  { %5134 = vmatprep.subr.bf16.mxu1 %v5673_v0 }
0x402e   :  { %5136 = vmatpush3.bf16.msra.mxu1 %v6415_v31 }
0x402f   :  { %5143 = vmatprep.subr.bf16.mxu1 %v5673_v0 }
0x40fc   :  { %v3344_v21 = vpop.f32.mrb[32].mxu1 }
0x40fd   :  { %v3349_v4 = vrot.slane %v3344_v21, 4  ;;  %v4835_v63 = vpop.f32.mrb[33].mxu1 }
0x40ff   :  { %v3351_v2 = vadd.f32 %v3349_v4, %v6439_v39 }
0x4101   :  { %5385 = vtanh.f32 %v3351_v2  ;;  %v4270_v47 = vmul.f32 -1.442695, %v3351_v2 }
0x4103   :  { %5387 = vpow2.f32 %v4270_v47 }
0x410b   :  { %v5386_v46 = vpop.eup %5385 }
0x410c   :  { %3364 = vrot.lane.b32.xlu0 %v5386_v46, %s5676_s26 }
0x410d   :  { %v5388_v3 = vpop.eup %5387 }
0x410e   :  { %v3355_v11 = vadd.f32 1.0, %v5388_v3 }
0x4110   :  { %5389 = vrcp.f32 %v3355_v11 }
0x411a   :  { %v5390_v59 = vpop.eup %5389 }
0x411b   :  { %v3362_v14 = vmul.f32 %v5390_v59, %v3360_v8 }
0x417e   :  { %v3365_v5 = vpop.permute.xlu0 %3364 }
0x417f   :  { %v3367_v51 = vmul.f32 %v5390_v59, %v3365_v5 }
0x4181   :  { %3369 = vrot.lane.b32.xlu1 %v3367_v51, %s5677_s3 }
0x41f3   :  { %v3370_v48 = vpop.permute.xlu1 %3369 }
0x41f4   :  { %v3372_v10 = vadd.f32 %v3370_v48, %v3362_v14 }
0x41f6   :  { %5391 = vtanh.f32 %v3372_v10  ;;  %v3471_v29 = vrot.slane %v3372_v10, 2 }
0x4200   :  { %v5392_v57 = vpop.eup %5391 }
0x4201   :  { %3375 = vrot.lane.b32.xlu0 %v5392_v57, %s5676_s26 }
0x4273   :  { %v3376_v12 = vpop.permute.xlu0 %3375 }
0x4274   :  { %v6460_v16 = vmul.f32 %v5390_v59, %v3376_v12 }
0x4276   :  { %v3384_v22 = vrot.slane %v6460_v16, 4 }
0x4278   :  { %3385 = vrot.lane.b32.xlu1 %v3384_v22, %s5677_s3 }
0x42ea   :  { %v3386_v23 = vpop.permute.xlu1 %3385 }
0x42eb   :  { %4845 = vmatmul.mubr.msk.f32.vlgmr.msra.gmra.mrb[26].mxu0 %vm177_vm1, %v3386_v23 }
0x42ec   :  { %5139 = vmatpush3.bf16.msra.mxu0 %v6411_v27  ;;  %4866 = vmatprep.mubr.msk.f32.mxu0 %vm5674_vm0, %v5675_v1 }
0x42ed   :  { %5140 = vmatprep.subr.bf16.mxu0 %v5673_v0 }
0x42f0   :  { %5142 = vmatpush3.bf16.msra.mxu0 %v6415_v31 }
0x42f1   :  { %5149 = vmatprep.subr.bf16.mxu0 %v5673_v0 }
0x43be   :  { %v3455_v24 = vpop.f32.mrb[26].mxu0 }
0x43bf   :  { %v3460_v17 = vrot.slane %v3455_v24, 6  ;;  %v4846_v25 = vpop.f32.mrb[27].mxu0 }
0x43c1   :  { %v3462_v26 = vadd.f32 %v3460_v17, %v6439_v39 }
0x43c3   :  { %5393 = vtanh.f32 %v3462_v26  ;;  %v4272_v28 = vmul.f32 -1.442695, %v3462_v26 }
0x43c5   :  { %5395 = vpow2.f32 %v4272_v28 }
0x43cd   :  { %v5394_v13 = vpop.eup %5393 }
0x43ce   :  { %3475 = vrot.lane.b32.xlu0 %v5394_v13, %s5676_s26 }
0x43cf   :  { %v5396_v60 = vpop.eup %5395 }
0x43d0   :  { %v3466_v32 = vadd.f32 1.0, %v5396_v60 }
0x43d2   :  { %5397 = vrcp.f32 %v3466_v32 }
0x43dc   :  { %v5398_v7 = vpop.eup %5397 }
0x43dd   :  { %v3473_v40 = vmul.f32 %v5398_v7, %v3471_v29 }
0x4440   :  { %v3476_v35 = vpop.permute.xlu0 %3475 }
0x4441   :  { %v3478_v37 = vmul.f32 %v5398_v7, %v3476_v35 }
0x4443   :  { %3480 = vrot.lane.b32.xlu1 %v3478_v37, %s5677_s3 }
0x44b5   :  { %v3481_v42 = vpop.permute.xlu1 %3480 }
0x44b6   :  { %v3483_v43 = vadd.f32 %v3481_v42, %v3473_v40 }
0x44b8   :  { %5399 = vtanh.f32 %v3483_v43  ;;  %v3579_v4 = vrot.slane %v3483_v43, 2 }
0x44c2   :  { %v5400_v34 = vpop.eup %5399 }
0x44c3   :  { %3486 = vrot.lane.b32.xlu0 %v5400_v34, %s5676_s26 }
0x4535   :  { %v3487_v44 = vpop.permute.xlu0 %3486 }
0x4536   :  { %v6475_v30 = vmul.f32 %v5398_v7, %v3487_v44 }
0x4538   :  { %v3495_v45 = vrot.slane %v6475_v30, 2 }
0x453a   :  { %3496 = vrot.lane.b32.xlu1 %v3495_v45, %s5677_s3 }
0x45ac   :  { %v3497_v58 = vpop.permute.xlu1 %3496 }
0x45ad   :  { %4856 = vmatmul.mubr.msk.f32.vlgmr.msra.gmra.mrb[34].mxu1 %vm177_vm1, %v3497_v58 }
0x45ae   :  { %5145 = vmatpush3.bf16.msra.mxu1 %v6411_v27  ;;  %4877 = vmatprep.mubr.msk.f32.mxu1 %vm5674_vm0, %v5675_v1 }
0x45af   :  { %5146 = vmatprep.subr.bf16.mxu1 %v5673_v0 }
0x45b2   :  { %5148 = vmatpush3.bf16.msra.mxu1 %v6415_v31 }
0x45b3   :  { %5155 = vmatprep.subr.bf16.mxu1 %v5673_v0 }
0x4680   :  { %v3566_v49 = vpop.f32.mrb[34].mxu1 }
0x4681   :  { %v3570_v52 = vadd.f32 %v3566_v49, %v6439_v39  ;;  %v4857_v53 = vpop.f32.mrb[35].mxu1 }
0x4683   :  { %5401 = vtanh.f32 %v3570_v52  ;;  %v4274_v62 = vmul.f32 -1.442695, %v3570_v52 }
0x4685   :  { %5403 = vpow2.f32 %v4274_v62 }
0x468d   :  { %v5402_v56 = vpop.eup %5401 }
0x468e   :  { %3583 = vrot.lane.b32.xlu0 %v5402_v56, %s5676_s26 }
0x468f   :  { %v5404_v36 = vpop.eup %5403 }
0x4690   :  { %v3574_v55 = vadd.f32 1.0, %v5404_v36 }
0x4692   :  { %5405 = vrcp.f32 %v3574_v55 }
0x469c   :  { %v5406_v50 = vpop.eup %5405 }
0x469d   :  { %v3581_v63 = vmul.f32 %v5406_v50, %v3579_v4 }
0x4700   :  { %v3584_v15 = vpop.permute.xlu0 %3583 }
0x4701   :  { %v3586_v21 = vmul.f32 %v5406_v50, %v3584_v15 }
0x4703   :  { %3588 = vrot.lane.b32.xlu1 %v3586_v21, %s5677_s3 }
0x4775   :  { %v3589_v2 = vpop.permute.xlu1 %3588 }
0x4776   :  { %v3591_v46 = vadd.f32 %v3589_v2, %v3581_v63 }
0x4778   :  { %5407 = vtanh.f32 %v3591_v46  ;;  %v3689_v24 = vrot.slane %v3591_v46, 2 }
0x4782   :  { %v5408_v39 = vpop.eup %5407 }
0x4783   :  { %3594 = vrot.lane.b32.xlu0 %v5408_v39, %s5676_s26 }
0x47f5   :  { %v3595_v47 = vpop.permute.xlu0 %3594 }
0x47f6   :  { %v6490_v3 = vmul.f32 %v5406_v50, %v3595_v47 }
0x47f8   :  { %3603 = vrot.lane.b32.xlu1 %v6490_v3, %s5677_s3 }
0x486a   :  { %v3604_v11 = vpop.permute.xlu1 %3603 }
0x486b   :  { %4867 = vmatmul.mubr.msk.f32.vlgmr.msra.gmra.mrb[28].mxu0 %vm177_vm1, %v3604_v11 }
0x486c   :  { %5151 = vmatpush3.bf16.msra.mxu0 %v6411_v27  ;;  %4888 = vmatprep.mubr.msk.f32.mxu0 %vm5674_vm0, %v5675_v1 }
0x486d   :  { %5152 = vmatprep.subr.bf16.mxu0 %v5673_v0 }
0x4870   :  { %5154 = vmatpush3.bf16.msra.mxu0 %v6415_v31 }
0x493e   :  { %v3673_v59 = vpop.f32.mrb[28].mxu0 }
0x493f   :  { %v3678_v5 = vrot.slane %v3673_v59, 2  ;;  %v4868_v51 = vpop.f32.mrb[29].mxu0 }
0x4941   :  { %v3680_v8 = vadd.f32 %v3678_v5, %v6404_v9  ;;  %v3041_v5 = vrot.slane %v6437_v20, 2 }
0x4943   :  { %5409 = vtanh.f32 %v3680_v8  ;;  %v4276_v48 = vmul.f32 -1.442695, %v3680_v8 }
0x4945   :  { %5411 = vpow2.f32 %v4276_v48  ;;  %v3043_v48 = vadd.f32 %v3041_v5, %v6285_v54 }
0x494d   :  { %v5410_v14 = vpop.eup %5409 }
0x494e   :  { %3693 = vrot.lane.b32.xlu0 %v5410_v14, %s5676_s26 }
0x494f   :  { %v5412_v10 = vpop.eup %5411 }
0x4950   :  { %v3684_v57 = vadd.f32 1.0, %v5412_v10 }
0x4952   :  { %5413 = vrcp.f32 %v3684_v57 }
0x495c   :  { %v5414_v12 = vpop.eup %5413 }
0x495d   :  { %v3691_v17 = vmul.f32 %v5414_v12, %v3689_v24 }
0x49c0   :  { %v3694_v22 = vpop.permute.xlu0 %3693 }
0x49c1   :  { %v3696_v23 = vmul.f32 %v5414_v12, %v3694_v22 }
0x49c3   :  { %3698 = vrot.lane.b32.xlu1 %v3696_v23, %s5677_s3 }
0x4a35   :  { %v3699_v25 = vpop.permute.xlu1 %3698 }
0x4a36   :  { %v3701_v26 = vadd.f32 %v3699_v25, %v3691_v17 }
0x4a38   :  { %5415 = vtanh.f32 %v3701_v26 }
0x4a42   :  { %v5416_v13 = vpop.eup %5415 }
0x4a43   :  { %3704 = vrot.lane.b32.xlu0 %v5416_v13, %s5676_s26  ;;  %v3052_v13 = vrot.slane %v6407_v19, 6 }
0x4ab5   :  { %v3705_v28 = vpop.permute.xlu0 %3704 }
0x4ab6   :  { %v6504_v60 = vmul.f32 %v5414_v12, %v3705_v28  ;;  %v4264_v12 = vmul.f32 -1.442695, %v3043_v48 }
0x4ab8   :  { %v3713_v32 = vrot.slane %v6504_v60, 6 }
0x4aba   :  { %3714 = vrot.lane.b32.xlu1 %v3713_v32, %s5677_s3 }
0x4b2c   :  { %v3715_v7 = vpop.permute.xlu1 %3714 }
0x4b2d   :  { %4878 = vmatmul.mubr.msk.f32.vlgmr.msra.gmra.mrb[36].mxu1 %vm177_vm1, %v3715_v7 }
0x4b2e   :  { %5157 = vmatpush3.bf16.msra.mxu1 %v6411_v27  ;;  %4899 = vmatprep.mubr.msk.f32.mxu1 %vm5674_vm0, %v5675_v1 }
0x4b2f   :  { %5158 = vmatprep.subr.bf16.mxu1 %v5673_v0  ;;  %v3800_v0 = vrot.slane %v3701_v26, 2 }
0x4b32   :  { %5160 = vmatpush3.bf16.msra.mxu1 %v6415_v31 }
0x4c00   :  { %v3784_v35 = vpop.f32.mrb[36].mxu1 }
0x4c01   :  { %v3789_v37 = vrot.slane %v3784_v35, 4  ;;  %v4879_v29 = vpop.f32.mrb[37].mxu1 }
0x4c03   :  { %v3791_v40 = vadd.f32 %v3789_v37, %v6404_v9 }
0x4c05   :  { %5417 = vtanh.f32 %v3791_v40  ;;  %v4278_v43 = vmul.f32 -1.442695, %v3791_v40 }
0x4c07   :  { %5419 = vpow2.f32 %v4278_v43 }
0x4c0f   :  { %v5418_v42 = vpop.eup %5417 }
0x4c10   :  { %3804 = vrot.lane.b32.xlu0 %v5418_v42, %s5676_s26 }
0x4c11   :  { %v5420_v34 = vpop.eup %5419 }
0x4c12   :  { %v3795_v27 = vadd.f32 1.0, %v5420_v34 }
0x4c14   :  { %5421 = vrcp.f32 %v3795_v27 }
0x4c1e   :  { %v5422_v44 = vpop.eup %5421 }
0x4c1f   :  { %v3802_v31 = vmul.f32 %v5422_v44, %v3800_v0 }
0x4c82   :  { %v3805_v1 = vpop.permute.xlu0 %3804 }
0x4c83   :  { %v3807_v45 = vmul.f32 %v5422_v44, %v3805_v1 }
0x4c85   :  { %3809 = vrot.lane.b32.xlu1 %v3807_v45, %s5677_s3 }
0x4cf7   :  { %v3810_v58 = vpop.permute.xlu1 %3809 }
0x4cf8   :  { %v3812_v49 = vadd.f32 %v3810_v58, %v3802_v31 }
0x4cfa   :  { %5423 = vtanh.f32 %v3812_v49  ;;  %v3911_v59 = vrot.slane %v3812_v49, 2 }
0x4d04   :  { %v5424_v52 = vpop.eup %5423 }
0x4d05   :  { %3815 = vrot.lane.b32.xlu0 %v5424_v52, %s5676_s26  ;;  %v4045_v52 = vld [vmem:[%s6651_s13] sm:$0xff] }
0x4d77   :  { %v3816_v53 = vpop.permute.xlu0 %3815 }
0x4d78   :  { %v6518_v56 = vmul.f32 %v5422_v44, %v3816_v53  ;;  %v4046_v53 = vld [vmem:[%s6651_s13 + $0x8] sm:$0xff] }
0x4d7a   :  { %v3824_v62 = vrot.slane %v6518_v56, 4 }
0x4d7c   :  { %3825 = vrot.lane.b32.xlu1 %v3824_v62, %s5677_s3  ;;  %v5161_v62 = vpack.c.bf16 %v4046_v53, %v4045_v52 }
0x4d7e   :  { %5162 = vmatprep.subr.bf16.mxu0 %v5161_v62 }
0x4dee   :  { %v3826_v36 = vpop.permute.xlu1 %3825 }
0x4def   :  { %4889 = vmatmul.mubr.msk.f32.vlgmr.msra.gmra.mrb[30].mxu0 %vm177_vm1, %v3826_v36 }
0x4df0   :  { %5164 = vmatpush3.bf16.msra.mxu0 %v5161_v62 }
0x4ec2   :  { %v3895_v55 = vpop.f32.mrb[30].mxu0 }
0x4ec3   :  { %v3900_v50 = vrot.slane %v3895_v55, 6  ;;  %v4890_v15 = vpop.f32.mrb[31].mxu0 }
0x4ec4   :  { %v4051_v15 = vld [vmem:[%s6651_s13 + $0x30] sm:$0xff] }
0x4ec5   :  { %v3902_v21 = vadd.f32 %v3900_v50, %v6404_v9  ;;  %v4049_v50 = vld [vmem:[%s6651_s13 + $0x20] sm:$0xff] }
0x4ec7   :  { %5425 = vtanh.f32 %v3902_v21  ;;  %v4280_v63 = vmul.f32 -1.442695, %v3902_v21  ;;  %v4052_v21 = vld [vmem:[%s6651_s13 + $0x38] sm:$0xff] }
0x4ec9   :  { %5427 = vpow2.f32 %v4280_v63 }
0x4ed1   :  { %v5426_v4 = vpop.eup %5425 }
0x4ed2   :  { %3915 = vrot.lane.b32.xlu0 %v5426_v4, %s5676_s26  ;;  %v5173_v4 = vpack.c.bf16 %v4052_v21, %v4051_v15 }
0x4ed3   :  { %v5428_v2 = vpop.eup %5427 }
0x4ed4   :  { %v3906_v46 = vadd.f32 1.0, %v5428_v2 }
0x4ed6   :  { %5429 = vrcp.f32 %v3906_v46 }
0x4ee0   :  { %v5430_v39 = vpop.eup %5429 }
0x4ee1   :  { %v3913_v51 = vmul.f32 %v5430_v39, %v3911_v59 }
0x4f44   :  { %v3916_v47 = vpop.permute.xlu0 %3915 }
0x4f45   :  { %v3918_v11 = vmul.f32 %v5430_v39, %v3916_v47 }
0x4f47   :  { %3920 = vrot.lane.b32.xlu1 %v3918_v11, %s5677_s3 }
0x4fb9   :  { %v3921_v8 = vpop.permute.xlu1 %3920 }
0x4fba   :  { %v6527_v14 = vadd.f32 %v3921_v8, %v3913_v51 }
0x4fbc   :  { %5431 = vtanh.f32 %v6527_v14  ;;  %v4019_v0 = vrot.slane %v6527_v14, 2 }
0x4fbd   :  { %5433 = vtanh.f32 %v3043_v48 }
0x4fbe   :  { %5435 = vpow2.f32 %v4264_v12 }
0x4fc6   :  { %v5432_v10 = vpop.eup %5431 }
0x4fc7   :  { %3926 = vrot.lane.b32.xlu0 %v5432_v10, %s5676_s26  ;;  %v5434_v57 = vpop.eup %5433  ;;  %v4283_v10 = vld [vmem:[%s6652_s14] ss:$0 sm:$0xff] }
0x4fc8   :  { %v5436_v22 = vpop.eup %5435 }
0x4fc9   :  { %v3047_v23 = vadd.f32 1.0, %v5436_v22 }
0x4fcb   :  { %3056 = vrot.lane.b32.xlu0 %v5434_v57, %s5676_s26  ;;  %5437 = vrcp.f32 %v3047_v23 }
0x4fd5   :  { %v5438_v25 = vpop.eup %5437 }
0x4fd6   :  { %v3054_v32 = vmul.f32 %v5438_v25, %v3052_v13 }
0x5039   :  { %v3927_v20 = vpop.permute.xlu0 %3926 }
0x503a   :  { %v3929_v24 = vmul.f32 %v5430_v39, %v3927_v20 }
0x503c   :  { %v3935_v17 = vrot.slane %v3929_v24, 2 }
0x503d   :  { %v3057_v26 = vpop.permute.xlu0 %3056 }
0x503e   :  { %v3059_v54 = vmul.f32 %v5438_v25, %v3057_v26  ;;  %3936 = vrot.lane.b32.xlu1 %v3935_v17, %s5677_s3 }
0x5040   :  { %3061 = vrot.lane.b32.xlu0 %v3059_v54, %s5677_s3 }
0x50b0   :  { %v3937_v28 = vpop.permute.xlu1 %3936 }
0x50b1   :  { %4900 = vmatmul.mubr.msk.f32.vlgmr.msra.gmra.mrb[38].mxu1 %vm177_vm1, %v3937_v28 }
0x50b2   :  { %v3062_v7 = vpop.permute.xlu0 %3061 }
0x50b3   :  { %v3064_v35 = vadd.f32 %v3062_v7, %v3054_v32 }
0x50b5   :  { %5439 = vtanh.f32 %v3064_v35 }
0x50bf   :  { %v5440_v37 = vpop.eup %5439 }
0x50c0   :  { %3067 = vrot.lane.b32.xlu0 %v5440_v37, %s5676_s26 }
0x50c4   :  { %2412 = vrot.lane.b32.xlu0 %v6306_v41, %s5677_s3 }
0x50c8   :  { %2634 = vrot.lane.b32.xlu0 %v6336_v6, %s5677_s3 }
0x50cc   :  { %2961 = vrot.lane.b32.xlu0 %v6419_v33, %s5677_s3 }
0x50d0   :  { %3709 = vrot.lane.b32.xlu0 %v6504_v60, %s5676_s26 }
0x50d4   :  { %3931 = vrot.lane.b32.xlu0 %v3929_v24, %s5676_s26 }
0x50d8   :  { %3269 = vrot.lane.b32.xlu0 %v6445_v38, %s5676_s26 }
0x50dc   :  { %3491 = vrot.lane.b32.xlu0 %v6475_v30, %s5676_s26 }
0x5132   :  { %v3068_v19 = vpop.permute.xlu0 %3067 }
0x5133   :  { %v3070_v36 = vmul.f32 %v5438_v25, %v3068_v19 }
0x5136   :  { %v2413_v29 = vpop.permute.xlu0 %2412 }
0x5137   :  { %2415 = vst.msk [vmem:[#allocation3] sm:$0xc] %vm474_vm3, %v2413_v29 }
0x513a   :  { %v2635_v41 = vpop.permute.xlu0 %2634 }
0x513b   :  { %2637 = vst.msk [vmem:[#allocation3] sm:$0xc0] %vm698_vm4, %v2635_v41 }
0x513e   :  { %v2962_v6 = vpop.permute.xlu0 %2961 }
0x513f   :  { %2964 = vst.msk [vmem:[#allocation3 + $0x8] sm:$0x30] %vm586_vm5, %v2962_v6 }
0x5142   :  { %v3710_v33 = vpop.permute.xlu0 %3709 }
0x5143   :  { %3712 = vst.msk [vmem:[#allocation3] sm:$0xc0] %vm1330_vm6, %v3710_v33 }
0x5146   :  { %v3932_v60 = vpop.permute.xlu0 %3931 }
0x5147   :  { %3934 = vst.msk [vmem:[#allocation3] sm:$0xc] %vm1554_vm7, %v3932_v60 }
0x514a   :  { %v3270_v46 = vpop.permute.xlu0 %3269 }
0x514e   :  { %v3492_v11 = vpop.permute.xlu0 %3491 }
0x5184   :  { %v4006_v38 = vpop.f32.mrb[38].mxu1 }
0x5185   :  { %v4010_v40 = vadd.f32 %v4006_v38, %v6404_v9  ;;  %v4901_v30 = vpop.f32.mrb[39].mxu1 }
0x5187   :  { %5441 = vtanh.f32 %v4010_v40  ;;  %v4282_v43 = vmul.f32 -1.442695, %v4010_v40  ;;  %v4286_v40 = vld [vmem:[%s6653_s15] ss:$0 sm:$0xff]  ;;  %s5629_s15 = scalar_lea.vmem %s4196_s18, 256 }
0x5188   :  { %p5630_p8 = scmp.ne.s32.totalorder %s4196_s18, %s5629_s15  ;;  %p5635_p10 = scmp.lt.s32.totalorder %s5629_s15, %s5629_s15 }
0x5189   :  { %5443 = vpow2.f32 %v4282_v43 }
0x518a   :  { %p5636_p11 = por %p5635_p10, %p5634_p9 }
0x518c   :  { %p5637_p12 = pnand %p5636_p11, %p5630_p8 }
0x5191   :  { %v5442_v42 = vpop.eup %5441 }
0x5192   :  { %4023 = vrot.lane.b32.xlu1 %v5442_v42, %s5676_s26  ;;  %v4287_v42 = vld [vmem:[%s6654_s16] ss:$0 sm:$0xff] }
0x5193   :  { %v5444_v34 = vpop.eup %5443 }
0x5194   :  { %v4014_v27 = vadd.f32 1.0, %v5444_v34 }
0x5196   :  { %5445 = vrcp.f32 %v4014_v27 }
0x51a0   :  { %v5446_v44 = vpop.eup %5445 }
0x51a1   :  { %v4021_v31 = vmul.f32 %v5446_v44, %v4019_v0 }
0x5204   :  { %v4024_v1 = vpop.permute.xlu1 %4023 }
0x5205   :  { %v4026_v45 = vmul.f32 %v5446_v44, %v4024_v1 }
0x5207   :  { %4028 = vrot.lane.b32.xlu1 %v4026_v45, %s5677_s3 }
0x5279   :  { %v4029_v58 = vpop.permute.xlu1 %4028 }
0x527a   :  { %v4031_v9 = vadd.f32 %v4029_v58, %v4021_v31 }
0x527c   :  { %5447 = vtanh.f32 %v4031_v9 }
0x5286   :  { %v5448_v49 = vpop.eup %5447 }
0x5287   :  { %4034 = vrot.lane.b32.xlu1 %v5448_v49, %s5676_s26 }
0x528b   :  { %2523 = vrot.lane.b32.xlu1 %v6321_v18, %s5677_s3  ;;  %v4047_v18 = vld [vmem:[%s6651_s13 + $0x10] sm:$0xff] }
0x528f   :  { %2850 = vrot.lane.b32.xlu1 %v6369_v61, %s5677_s3  ;;  %v4048_v61 = vld [vmem:[%s6651_s13 + $0x18] sm:$0xff] }
0x5290   :  { %v5165_v55 = vpack.c.bf16 %v4048_v61, %v4047_v18 }
0x5292   :  { %5166 = vmatprep.subr.bf16.mxu0 %v5165_v55 }
0x5293   :  { %3072 = vrot.lane.b32.xlu1 %v3070_v36, %s5677_s3  ;;  %5168 = vmatpush3.bf16.msra.mxu0 %v5165_v55 }
0x5297   :  { %3820 = vrot.lane.b32.xlu1 %v6518_v56, %s5676_s26  ;;  %v4050_v56 = vld [vmem:[%s6651_s13 + $0x28] sm:$0xff] }
0x529b   :  { %3380 = vrot.lane.b32.xlu1 %v6460_v16, %s5676_s26  ;;  %v5169_v16 = vpack.c.bf16 %v4050_v56, %v4049_v50 }
0x529d   :  { %5170 = vmatprep.subr.bf16.mxu0 %v5169_v16 }
0x529e   :  { %5172 = vmatpush3.bf16.msra.mxu0 %v5169_v16 }
0x529f   :  { %5174 = vmatprep.subr.bf16.mxu0 %v5173_v4 }
0x52a2   :  { %5176 = vmatpush3.bf16.msra.mxu0 %v5173_v4 }
0x52f9   :  { %v4035_v63 = vpop.permute.xlu1 %4034 }
0x52fa   :  { %v4037_v2 = vmul.f32 %v5446_v44, %v4035_v63 }
0x52fc   :  { %4039 = vrot.lane.b32.xlu1 %v4037_v2, %s5676_s26 }
0x52fd   :  { %v2524_v39 = vpop.permute.xlu1 %2523 }
0x52fe   :  { %2526 = vst.msk [vmem:[#allocation3] sm:$0x30] %vm586_vm5, %v2524_v39 }
0x5300   :  { %3599 = vrot.lane.b32.xlu1 %v6490_v3, %s5676_s26 }
0x5301   :  { %v2851_v47 = vpop.permute.xlu1 %2850 }
0x5302   :  { %2853 = vst.msk [vmem:[#allocation3 + $0x8] sm:$0xc] %vm474_vm3, %v2851_v47 }
0x5303   :  { %3494 = vst.msk [vmem:[#allocation3 + $0x8] sm:$0xc] %vm1554_vm7, %v3492_v11 }
0x5305   :  { %v3073_v59 = vpop.permute.xlu1 %3072 }
0x5306   :  { %3075 = vst.msk [vmem:[#allocation3 + $0x8] sm:$0xc0] %vm698_vm4, %v3073_v59 }
0x5307   :  { %3272 = vst.msk [vmem:[#allocation3 + $0x8] sm:$0xc0] %vm1330_vm6, %v3270_v46 }
0x5309   :  { %v3821_v5 = vpop.permute.xlu1 %3820 }
0x530a   :  { %3823 = vst.msk [vmem:[#allocation3] sm:$0x30] %vm1442_vm8, %v3821_v5 }
0x530d   :  { %v3381_v51 = vpop.permute.xlu1 %3380 }
0x530e   :  { %3383 = vst.msk [vmem:[#allocation3 + $0x8] sm:$0x30] %vm1442_vm8, %v3381_v51 }
0x536e   :  { %v4040_v8 = vpop.permute.xlu1 %4039 }
0x536f   :  { %4042 = vst.msk [vmem:[#allocation3] sm:$0x3] %vm1663_vm9, %v4040_v8 }
0x5372   :  { %v3600_v3 = vpop.permute.xlu1 %3599 }
0x5373   :  { %3602 = vst.msk [vmem:[#allocation3 + $0x8] sm:$0x3] %vm1663_vm9, %v3600_v3 }
0x5376   :  { %v4043_v14 = vld [vmem:[#allocation3] sm:$0xff] }
0x5377   :  { %4918 = vmatprep.mubr.msk.f32.mxu0 %vm2122_vm10, %v4043_v14 }
0x537a   :  { %v4044_v48 = vld [vmem:[#allocation3 + $0x8] sm:$0xff] }
0x537b   :  { %4919 = vmatmul.mubr.msk.f32.vlgmr.msra.gmra.mrb[32].mxu0 %vm2122_vm10, %v4044_v48 }
0x544e   :  { %v4920_v57 = vpop.f32.mrb[32].mxu0 }
0x544f   :  { %v4138_v12 = vadd.f32 %v4920_v57, %v4283_v10  ;;  %v4132_v22 = vpop.f32.mrb[33].mxu0 }
0x5450   :  { %v4133_v23 = vadd.f32 %v4283_v10, %v4132_v22 }
0x5451   :  { %v4144_v20 = vsel %vm177_vm1, %v4138_v12, 0.0 }
0x5452   :  { %4145 = vadd.xlane.f32.xlu1 %v4144_v20  ;;  %v4141_v24 = vsel %vm177_vm1, %v4133_v23, 0.0 }
0x5453   :  { %4142 = vadd.xlane.f32.xlu0 %v4141_v24 }
0x54df   :  { %v4146_v17 = vpop.xlane.xlu1 %4145 }
0x54e0   :  { %v4149_v25 = vmul.f32 0.03125, %v4146_v17  ;;  %v4143_v26 = vpop.xlane.xlu0 %4142 }
0x54e1   :  { %v4148_v54 = vmul.f32 0.03125, %v4143_v26 }
0x54e2   :  { %v4151_v13 = vsub.f32 %v4138_v12, %v4149_v25 }
0x54e3   :  { %v4150_v28 = vsub.f32 %v4133_v23, %v4148_v54 }
0x54e4   :  { %v4153_v35 = vmul.f32 %v4151_v13, %v4151_v13 }
0x54e5   :  { %v4152_v32 = vmul.f32 %v4150_v28, %v4150_v28 }
0x54e6   :  { %v4157_v37 = vsel %vm177_vm1, %v4153_v35, 0.0 }
0x54e7   :  { %v4154_v7 = vsel %vm177_vm1, %v4152_v32, 0.0 }
0x54e8   :  { %4155 = vadd.xlane.f32.xlu0 %v4154_v7 }
0x54ec   :  { %4158 = vadd.xlane.f32.xlu0 %v4157_v37 }
0x5575   :  { %v4156_v19 = vpop.xlane.xlu0 %4155 }
0x5576   :  { %v4160_v29 = vmul.f32 0.03125, %v4156_v19 }
0x5578   :  { %v4162_v41 = vadd.f32 1e-05, %v4160_v29 }
0x5579   :  { %v4159_v6 = vpop.xlane.xlu0 %4158 }
0x557a   :  { %5449 = vrsqrt.f32 %v4162_v41  ;;  %v4161_v33 = vmul.f32 0.03125, %v4159_v6 }
0x557c   :  { %v4163_v60 = vadd.f32 1e-05, %v4161_v33 }
0x557e   :  { %5451 = vrsqrt.f32 %v4163_v60 }
0x5584   :  { %v5450_v38 = vpop.eup %5449 }
0x5585   :  { %v4166_v30 = vmul.f32 %v5450_v38, %v4150_v28 }
0x5587   :  { %v4175_v43 = vmul.f32 %v4286_v40, %v4166_v30 }
0x5588   :  { %v5452_v34 = vpop.eup %5451 }
0x5589   :  { %v4167_v27 = vmul.f32 %v5452_v34, %v4151_v13  ;;  %v4184_v44 = vadd.f32 %v4287_v42, %v4175_v43 }
0x558b   :  { %v4176_v1 = vmul.f32 %v4286_v40, %v4167_v27  ;;  %v4186_v45 = vmax.f32 %v4184_v44, 0.0 }
0x558d   :  { %v4185_v0 = vadd.f32 %v4287_v42, %v4176_v1  ;;  %4188 = vst.msk [vmem:[#allocation18] sm:$0xff] %vm177_vm1, %v4186_v45 }
0x558f   :  { %v4187_v31 = vmax.f32 %v4185_v0, 0.0 }
0x5591   :  { %4189 = vst.msk [vmem:[#allocation18 + $0x8] sm:$0xff] %vm177_vm1, %v4187_v31 }
0x5592   :  { %5640 = shalt.err (!%p5637_p12)
}
0x5593   :  { %s6664_s10 = sld [smem:[#allocation27_spill]] }
0x5599   :  { %s5641_s17 = scalar_lea.hbm %s6664_s10, 256 }
0x559a   :  { %p5642_p13 = scmp.ne.s32.totalorder %s6664_s10, %s5641_s17  ;;  %p5645_p0 = scmp.lt.u32.totalorder %s5641_s17, %s6664_s10 }
0x559c   :  { %p5647_p1 = pnand %p5645_p0, %p5642_p13 }
0x559e   :  { %5650 = shalt.err (!%p5647_p1)
}
0x559f   :  { %4201 = dma.vmem_to_hbm [thread:$0]  %s4196_s18, 256, %s6664_s10, [#allocation6], %s5665_s22, %s5665_s22, %s5666_s23  }
0x55a0   :  { %5661 = dma.done.wait [#allocation6], 256  }
0x55a1   :  { %5662 = vsyncadd [#allocation6], 4294967040 }
0x55a2   :  { %4205 = vsyncpa [#allocation5], 1 }
0x55a3   :  { %4206 = vsyncpa [#allocation8], 1 }
0x55a4   :  { %4207 = vsyncpa [#allocation11], 1 }
0x55a5   :  { %4208 = vsyncpa [#allocation14], 1 }
0x55a6   :  { %4209 = vsyncpa [#allocation17], 1 }
0x55a7   :  { %4210 = vsyncpa [#allocation6], 1 }

</bundles_post_ra>
